<compile_context>
chip_gen: v6e
topology: v6e:2x2x1
jax: 0.10.0
libtpu: 0.0.40
codegen_flags: <defaults>
</compile_context>

<pallas_src>
import functools

import numpy as np
import jax
import jax.numpy as jnp
from jax import lax
from jax.experimental import pallas as pl
from jax.experimental.pallas import tpu as pltpu

LN_EPS = 1e-5  # nn.LayerNorm default eps
BF16 = jnp.bfloat16


def _round_up(x, m):
    return ((x + m - 1) // m) * m


def _largest_divisor_leq(n, cap):
    best = 1
    for d in range(1, min(cap, n) + 1):
        if n % d == 0:
            best = d
    return best


# ----------------------------- Pallas kernels ------------------------------

def _ln(x, w, b):
    mu = jnp.mean(x, axis=-1, keepdims=True)
    xc = x - mu
    var = jnp.mean(xc * xc, axis=-1, keepdims=True)
    return xc * lax.rsqrt(var + LN_EPS) * w + b


def _patch_embed_kernel(x_ref, w_ref, b_ref, pos_ref, o_ref):
    # x: (RT, P) bf16, w: (P, D) bf16, b: (1, D) f32, pos: (RT, D) f32 -> (RT, D) f32
    o_ref[...] = (jnp.dot(x_ref[...], w_ref[...],
                          preferred_element_type=jnp.float32)
                  + b_ref[...] + pos_ref[...])


def _linear_rows_kernel(x_ref, w_ref, b_ref, o_ref):
    # x: (RT, Din) bf16, w: (Din, Dout) bf16, b: (1, Dout) f32 -> (RT, Dout) f32
    o_ref[...] = jnp.dot(x_ref[...], w_ref[...],
                         preferred_element_type=jnp.float32) + b_ref[...]


def _block_stack_kernel(x_ref, ln1w_ref, ln1b_ref, qkvw_ref, qkvb_ref,
                        projw_ref, projb_ref, ln2w_ref, ln2b_ref,
                        fc1w_ref, fc1b_ref, fc2w_ref, fc2b_ref,
                        fnw_ref, fnb_ref, o_ref, acc_ref,
                        *, num_heads, s_valid):
    """grid = (N//Nb, depth): Nb batch rows, all transformer blocks.

    The (Nb, S, D) f32 residual stream lives in the VMEM scratch `acc_ref`
    across the whole depth axis; only per-layer weight tiles are streamed from
    HBM.  The trailing LayerNorm is fused into the last depth step.
    """
    d = pl.program_id(1)

    @pl.when(d == 0)
    def _():
        acc_ref[...] = x_ref[...]

    Nb, S, D = acc_ref.shape
    R = Nb * S
    H = num_heads
    hd = D // H
    scale = hd ** -0.5

    x = acc_ref[...].reshape(R, D)                  # (R, D) f32

    # Additive bias masking the zero-padded key rows (S padded to multiple of 8).
    if s_valid < S:
        key_ok = lax.broadcasted_iota(jnp.int32, (1, 1, S), 2) < s_valid
        key_bias = jnp.where(key_ok, 0.0, -1e30)    # (1, 1, S) f32
    else:
        key_bias = None

    # ---- multi-head self attention (pre-LN) ----
    xn = _ln(x, ln1w_ref[0], ln1b_ref[0])
    qkv16 = (jnp.dot(xn.astype(BF16), qkvw_ref[0],
                     preferred_element_type=jnp.float32)
             + qkvb_ref[0]).astype(BF16)            # (R, 3D), single materialization
    qkv3 = qkv16.reshape(Nb, S, 3 * D)

    # Head split: fold heads into the leading (batch) dim, head-major, so both
    # attention matmuls run as single batched MXU contractions (no per-head
    # unroll, no live head-output concat across a loop).
    q = jnp.concatenate([qkv3[:, :, h * hd:(h + 1) * hd]
                         for h in range(H)], axis=0)                 # (H*Nb, S, hd)
    k = jnp.concatenate([qkv3[:, :, D + h * hd:D + (h + 1) * hd]
                         for h in range(H)], axis=0)
    v = jnp.concatenate([qkv3[:, :, 2 * D + h * hd:2 * D + (h + 1) * hd]
                         for h in range(H)], axis=0)

    att = jnp.einsum('bqd,bkd->bqk', q, k,
                     preferred_element_type=jnp.float32) * scale     # (H*Nb, S, S)
    if key_bias is not None:
        att = att + key_bias
    att = att - jnp.max(att, axis=-1, keepdims=True)
    p = jnp.exp(att)
    p = p * pl.reciprocal(jnp.sum(p, axis=-1, keepdims=True), approx=True)
    pv = jnp.einsum('bqk,bkd->bqd', p.astype(BF16), v,
                    preferred_element_type=jnp.float32)              # (H*Nb, S, hd)

    # Merge heads back onto the lane dim (head-major batch -> contiguous slabs).
    attn = jnp.concatenate([pv[h * Nb:(h + 1) * Nb] for h in range(H)],
                           axis=-1).reshape(R, D)                    # (R, D) f32
    attn = jnp.dot(attn.astype(BF16), projw_ref[0],
                   preferred_element_type=jnp.float32) + projb_ref[0]
    x = x + attn

    # ---- MLP (pre-LN) ----
    xn2 = _ln(x, ln2w_ref[0], ln2b_ref[0])
    h1 = jnp.dot(xn2.astype(BF16), fc1w_ref[0],
                 preferred_element_type=jnp.float32) + fc1b_ref[0]
    # TODO(synk): torch nn.GELU defaults to exact erf; tanh approximation is
    # used for a Mosaic-safe EUP lowering (small numerical drift).
    h1 = jax.nn.gelu(h1, approximate=True)
    h2 = jnp.dot(h1.astype(BF16), fc2w_ref[0],
                 preferred_element_type=jnp.float32) + fc2b_ref[0]
    x = x + h2

    acc_ref[...] = x.reshape(Nb, S, D)

    # fused final LayerNorm (encoder `norm` / decoder `decoder_norm`)
    @pl.when(d == pl.num_programs(1) - 1)
    def _():
        o_ref[...] = _ln(x, fnw_ref[...], fnb_ref[...]).reshape(Nb, S, D)


def _pred_loss_kernel(xd_ref, w_ref, b_ref, tgt_ref, msk_ref, out_ref,
                      num_ref, den_ref):
    # grid = (N,), "arbitrary": fused decoder_pred matmul + masked-MSE loss.
    # pred never touches HBM; num/den accumulate in VMEM across batch rows.
    i = pl.program_id(0)

    @pl.when(i == 0)
    def _():
        num_ref[...] = jnp.zeros_like(num_ref)
        den_ref[...] = jnp.zeros_like(den_ref)

    pred = jnp.dot(xd_ref[0], w_ref[...],
                   preferred_element_type=jnp.float32) + b_ref[...]   # (S_pad, P)
    diff = pred - tgt_ref[0]                                          # (S_pad, P)
    per_tok = jnp.mean(diff * diff, axis=-1, keepdims=True)           # (S_pad, 1)
    m = msk_ref[0]                                                    # (S_pad, 1)
    num_ref[...] = num_ref[...] + jnp.sum(per_tok * m)
    den_ref[...] = den_ref[...] + jnp.sum(m)
    out_ref[...] = num_ref[...] / den_ref[...]


# ----------------------------- kernel wrappers ------------------------------

def pallas_patch_embed(x_patches, w, b, pos, row_tile=256):
    """(N, L, P) patches -> (N, L, D) embeddings (+ pos), rows folded into MXU M.

    Rows are tiled in fixed multiple-of-8 chunks (padded), so production L
    (e.g. 196) keeps clean (8,128) tiling; pos is passed as a row-tiled array.
    """
    N, L, P = x_patches.shape
    D = w.shape[1]
    R = N * L
    rt = min(row_tile, _round_up(R, 8))
    Rp = _round_up(R, rt)
    x2d = x_patches.reshape(R, P).astype(BF16)
    pos_rows = jnp.tile(pos, (N, 1))                                  # (R, D) f32
    if Rp != R:
        x2d = jnp.pad(x2d, ((0, Rp - R), (0, 0)))
        pos_rows = jnp.pad(pos_rows, ((0, Rp - R), (0, 0)))
    # TODO(synk): grid-invariant weight blocks could use pipeline_mode=
    # pl.Buffered(1) to drop redundant double buffering on v7x's 64 MiB VMEM.
    out = pl.pallas_call(
        _patch_embed_kernel,
        out_shape=jax.ShapeDtypeStruct((Rp, D), jnp.float32),
        grid=(Rp // rt,),
        in_specs=[
            pl.BlockSpec((rt, P), lambda r: (r, 0)),
            pl.BlockSpec((P, D), lambda r: (0, 0)),
            pl.BlockSpec((1, D), lambda r: (0, 0)),
            pl.BlockSpec((rt, D), lambda r: (r, 0)),
        ],
        out_specs=pl.BlockSpec((rt, D), lambda r: (r, 0)),
        compiler_params=pltpu.CompilerParams(dimension_semantics=("parallel",)),
    )(x2d, w, b, pos_rows)
    return out[:R].reshape(N, L, D)


def pallas_linear_rows(x, w, b, row_tile=256):
    """y = x @ w + b with (N*S) folded into MXU row tiles.  x: (R, Din) -> (R, Dout)."""
    R, Din = x.shape
    Dout = w.shape[1]
    rt = min(row_tile, _round_up(R, 8))
    Rp = _round_up(R, rt)
    x16 = x.astype(BF16)
    if Rp != R:
        x16 = jnp.pad(x16, ((0, Rp - R), (0, 0)))
    out = pl.pallas_call(
        _linear_rows_kernel,
        out_shape=jax.ShapeDtypeStruct((Rp, Dout), jnp.float32),
        grid=(Rp // rt,),
        in_specs=[
            pl.BlockSpec((rt, Din), lambda r: (r, 0)),
            pl.BlockSpec((Din, Dout), lambda r: (0, 0)),
            pl.BlockSpec((1, Dout), lambda r: (0, 0)),
        ],
        out_specs=pl.BlockSpec((rt, Dout), lambda r: (r, 0)),
        compiler_params=pltpu.CompilerParams(dimension_semantics=("parallel",)),
    )(x16, w, b)
    return out[:R]


def _stack_vmem_limit_bytes(Nb, S, D, hid, H):
    """Rough upper bound: double-buffered weight/activation blocks + temporaries."""
    f32, bf16 = 4, 2
    R = Nb * S
    w_layer = (3 * D * D + D * D + D * hid + hid * D) * bf16 \
        + (3 * D + D + hid + 5 * D) * f32
    blocks = 2 * (w_layer + R * D * f32 + R * D * f32) + R * D * f32
    interm = R * (3 * D * (f32 + 2 * bf16) + hid * (f32 + bf16) + 4 * D * f32) \
        + 2 * H * Nb * S * S * f32
    est = int((blocks + interm) * 1.25) + (4 << 20)
    return max(32 << 20, min(est, 100 << 20))


def pallas_block_stack(x, stack, fn_w, fn_b, num_heads, s_valid, batch_block=8):
    """All transformer blocks + trailing LayerNorm in one pallas_call.

    grid=(N//Nb, depth): Nb batch rows stay resident in VMEM across all layers,
    so per-layer weights are streamed from HBM only N/Nb times.
    """
    N, S, D = x.shape
    depth = stack['qkv_w'].shape[0]
    hid = stack['fc1_w'].shape[2]
    # Largest divisor of N up to batch_block.  TODO(synk): on v7x prefer Nb
    # with N//Nb >= 2 (and even) so both TensorCores get 'parallel' work.
    Nb = _largest_divisor_leq(N, batch_block)

    xmap = lambda i, d: (i, 0, 0)
    wmap = lambda i, d: (d, 0, 0)
    cmap = lambda i, d: (0, 0)

    in_specs = [
        pl.BlockSpec((Nb, S, D), xmap),
        pl.BlockSpec((1, 1, D), wmap),          # ln1_w
        pl.BlockSpec((1, 1, D), wmap),          # ln1_b
        pl.BlockSpec((1, D, 3 * D), wmap),      # qkv_w  (bf16)
        pl.BlockSpec((1, 1, 3 * D), wmap),      # qkv_b
        pl.BlockSpec((1, D, D), wmap),          # proj_w (bf16)
        pl.BlockSpec((1, 1, D), wmap),          # proj_b
        pl.BlockSpec((1, 1, D), wmap),          # ln2_w
        pl.BlockSpec((1, 1, D), wmap),          # ln2_b
        pl.BlockSpec((1, D, hid), wmap),        # fc1_w  (bf16)
        pl.BlockSpec((1, 1, hid), wmap),        # fc1_b
        pl.BlockSpec((1, hid, D), wmap),        # fc2_w  (bf16)
        pl.BlockSpec((1, 1, D), wmap),          # fc2_b
        pl.BlockSpec((1, D), cmap),             # final norm w
        pl.BlockSpec((1, D), cmap),             # final norm b
    ]
    # TODO(synk): at D>=1024 (ViT-L/H) add an 'arbitrary' grid axis tiling the
    # MLP hidden dim (fc1/fc2 blocks + f32 (R, D) accumulator) so the
    # double-buffered weights fit v7x's 64 MiB VMEM; also mark grid-invariant
    # blocks (fn_w/fn_b) with pipeline_mode=pl.Buffered(1).
    return pl.pallas_call(
        functools.partial(_block_stack_kernel, num_heads=num_heads,
                          s_valid=s_valid),
        out_shape=jax.ShapeDtypeStruct((N, S, D), jnp.float32),
        grid=(N // Nb, depth),
        in_specs=in_specs,
        out_specs=pl.BlockSpec((Nb, S, D), xmap),
        scratch_shapes=[pltpu.VMEM((Nb, S, D), jnp.float32)],
        compiler_params=pltpu.CompilerParams(
            dimension_semantics=("parallel", "arbitrary"),
            vmem_limit_bytes=_stack_vmem_limit_bytes(Nb, S, D, hid, num_heads)),
    )(x, stack['ln1_w'], stack['ln1_b'], stack['qkv_w'], stack['qkv_b'],
      stack['proj_w'], stack['proj_b'], stack['ln2_w'], stack['ln2_b'],
      stack['fc1_w'], stack['fc1_b'], stack['fc2_w'], stack['fc2_b'],
      fn_w, fn_b)


def pallas_pred_loss(xd, pred_w, pred_b, target, mask, num_patches):
    """Fused decoder_pred (xd @ W + b) + masked-MSE loss; pred never hits HBM.

    xd: (N, S_pad, Dd) decoder output (row 0 = cls, rows 1..L = patch tokens,
    trailing rows = padding).  target: (N, L, P).  mask: (N, L).
    """
    N, S_pad, Dd = xd.shape
    P = pred_w.shape[1]
    L = num_patches
    xd16 = xd.astype(BF16)
    # Shift target/mask by the cls row and zero-pad to S_pad so the kernel needs
    # no in-kernel slicing; padded / cls / kept rows contribute 0 via the mask.
    tgt = jnp.pad(target, ((0, 0), (1, S_pad - 1 - L), (0, 0)))
    msk = jnp.pad(mask[:, :, None], ((0, 0), (1, S_pad - 1 - L), (0, 0)))
    out = pl.pallas_call(
        _pred_loss_kernel,
        out_shape=jax.ShapeDtypeStruct((1, 1), jnp.float32),
        grid=(N,),
        in_specs=[
            pl.BlockSpec((1, S_pad, Dd), lambda i: (i, 0, 0)),
            pl.BlockSpec((Dd, P), lambda i: (0, 0)),
            pl.BlockSpec((1, P), lambda i: (0, 0)),
            pl.BlockSpec((1, S_pad, P), lambda i: (i, 0, 0)),
            pl.BlockSpec((1, S_pad, 1), lambda i: (i, 0, 0)),
        ],
        out_specs=pl.BlockSpec((1, 1), lambda i: (0, 0)),
        scratch_shapes=[pltpu.VMEM((1, 1), jnp.float32),
                        pltpu.VMEM((1, 1), jnp.float32)],
        compiler_params=pltpu.CompilerParams(dimension_semantics=("arbitrary",)),
    )(xd16, pred_w, pred_b, tgt, msk)
    return out[0, 0]


# ----------------------------- JAX glue -------------------------------------

def patchify(imgs, p):
    # imgs: (N, C, H, W) -> (N, L, p*p*C), channel fastest-varying (nhwpqc).
    N, C, H, W = imgs.shape
    h = w = H // p
    x = imgs.reshape(N, C, h, p, w, p)
    x = jnp.einsum('nchpwq->nhwpqc', x)
    return x.reshape(N, h * w, p * p * C)


def get_1d_sincos_pos_embed_from_grid(embed_dim, pos):
    omega = np.arange(embed_dim // 2, dtype=np.float64)
    omega /= embed_dim / 2.0
    omega = 1.0 / 10000 ** omega
    pos = pos.reshape(-1)
    out = np.einsum('m,d->md', pos, omega)
    return np.concatenate([np.sin(out), np.cos(out)], axis=1)


def get_2d_sincos_pos_embed(embed_dim, grid_size, cls_token=False):
    grid_h = np.arange(grid_size, dtype=np.float32)
    grid_w = np.arange(grid_size, dtype=np.float32)
    grid = np.meshgrid(grid_w, grid_h)
    grid = np.stack(grid, axis=0).reshape([2, 1, grid_size, grid_size])
    emb_h = get_1d_sincos_pos_embed_from_grid(embed_dim // 2, grid[0])
    emb_w = get_1d_sincos_pos_embed_from_grid(embed_dim // 2, grid[1])
    pos_embed = np.concatenate([emb_h, emb_w], axis=1)
    if cls_token:
        pos_embed = np.concatenate([np.zeros([1, embed_dim]), pos_embed], axis=0)
    return pos_embed.astype(np.float32)


def xavier_uniform(key, shape, fan_in, fan_out):
    bound = float(np.sqrt(6.0 / (fan_in + fan_out)))
    return jax.random.uniform(key, shape, jnp.float32, -bound, bound)


def init_block_params(key, dim, hidden):
    ks = jax.random.split(key, 4)
    return {
        'ln1_w': jnp.ones((1, dim), jnp.float32),
        'ln1_b': jnp.zeros((1, dim), jnp.float32),
        'qkv_w': xavier_uniform(ks[0], (dim, 3 * dim), dim, 3 * dim),
        'qkv_b': jnp.zeros((1, 3 * dim), jnp.float32),
        'proj_w': xavier_uniform(ks[1], (dim, dim), dim, dim),
        'proj_b': jnp.zeros((1, dim), jnp.float32),
        'ln2_w': jnp.ones((1, dim), jnp.float32),
        'ln2_b': jnp.zeros((1, dim), jnp.float32),
        'fc1_w': xavier_uniform(ks[2], (dim, hidden), dim, hidden),
        'fc1_b': jnp.zeros((1, hidden), jnp.float32),
        'fc2_w': xavier_uniform(ks[3], (hidden, dim), hidden, dim),
        'fc2_b': jnp.zeros((1, dim), jnp.float32),
    }


def stack_block_params(blocks):
    """Stack per-block params with a leading depth axis; big matmul weights -> bf16."""
    def st(name, dtype=jnp.float32):
        return jnp.stack([b[name] for b in blocks], axis=0).astype(dtype)
    return {
        'ln1_w': st('ln1_w'), 'ln1_b': st('ln1_b'),
        'qkv_w': st('qkv_w', BF16), 'qkv_b': st('qkv_b'),
        'proj_w': st('proj_w', BF16), 'proj_b': st('proj_b'),
        'ln2_w': st('ln2_w'), 'ln2_b': st('ln2_b'),
        'fc1_w': st('fc1_w', BF16), 'fc1_b': st('fc1_b'),
        'fc2_w': st('fc2_w', BF16), 'fc2_b': st('fc2_b'),
    }


def init_model_params(key, cfg):
    p, C = cfg['patch_size'], cfg['in_chans']
    D, Dd = cfg['embed_dim'], cfg['decoder_embed_dim']
    gs = cfg['img_size'] // p
    hidden = int(D * cfg['mlp_ratio'])
    dec_hidden = int(Dd * cfg['mlp_ratio'])

    keys = jax.random.split(key, 8 + cfg['depth'] + cfg['decoder_depth'])
    ki = iter(keys)

    # PatchEmbed conv (kernel=stride=p) as a linear over flattened patches.
    w_conv = xavier_uniform(next(ki), (D, C, p, p), C * p * p, D)
    patch_w = jnp.transpose(w_conv, (2, 3, 1, 0)).reshape(p * p * C, D)

    enc_blocks = [init_block_params(next(ki), D, hidden)
                  for _ in range(cfg['depth'])]
    dec_blocks = [init_block_params(next(ki), Dd, dec_hidden)
                  for _ in range(cfg['decoder_depth'])]

    return {
        'patch_w': patch_w.astype(BF16),
        'patch_b': jnp.zeros((1, D), jnp.float32),
        'cls_token': 0.02 * jax.random.normal(next(ki), (1, 1, D), jnp.float32),
        'mask_token': 0.02 * jax.random.normal(next(ki), (1, 1, Dd), jnp.float32),
        'pos_embed': jnp.asarray(
            get_2d_sincos_pos_embed(D, gs, cls_token=True))[None, ...],
        'decoder_pos_embed': jnp.asarray(
            get_2d_sincos_pos_embed(Dd, gs, cls_token=True))[None, ...],
        'enc_stack': stack_block_params(enc_blocks),
        'enc_norm_w': jnp.ones((1, D), jnp.float32),
        'enc_norm_b': jnp.zeros((1, D), jnp.float32),
        'dec_embed_w': xavier_uniform(next(ki), (D, Dd), D, Dd).astype(BF16),
        'dec_embed_b': jnp.zeros((1, Dd), jnp.float32),
        'dec_stack': stack_block_params(dec_blocks),
        'dec_norm_w': jnp.ones((1, Dd), jnp.float32),
        'dec_norm_b': jnp.zeros((1, Dd), jnp.float32),
        'dec_pred_w': xavier_uniform(next(ki), (Dd, p * p * C),
                                     Dd, p * p * C).astype(BF16),
        'dec_pred_b': jnp.zeros((1, p * p * C), jnp.float32),
    }


def mae_forward(params, imgs, mask_key, mask_ratio, cfg):
    p = cfg['patch_size']
    N = imgs.shape[0]
    D, Dd = cfg['embed_dim'], cfg['decoder_embed_dim']
    gs = cfg['img_size'] // p
    L = gs * gs

    # ---------------- encoder ----------------
    x_patches = patchify(imgs, p)                                   # (N, L, p*p*C)
    x = pallas_patch_embed(x_patches, params['patch_w'], params['patch_b'],
                           params['pos_embed'][0, 1:, :])           # (N, L, D)

    # random masking (rand + argsort + gather kept in JAX glue)
    len_keep = int(L * (1 - mask_ratio))
    noise = jax.random.uniform(mask_key, (N, L))
    ids_shuffle = jnp.argsort(noise, axis=1)
    ids_restore = jnp.argsort(ids_shuffle, axis=1)
    ids_keep = ids_shuffle[:, :len_keep]
    x_masked = jnp.take_along_axis(
        x, jnp.broadcast_to(ids_keep[:, :, None], (N, len_keep, D)), axis=1)
    mask = jnp.ones((N, L), jnp.float32).at[:, :len_keep].set(0.0)
    mask = jnp.take_along_axis(mask, ids_restore, axis=1)

    cls = params['cls_token'] + params['pos_embed'][:, :1, :]       # (1, 1, D)
    x = jnp.concatenate([jnp.broadcast_to(cls, (N, 1, D)), x_masked], axis=1)
    s_enc = 1 + len_keep
    s_enc_pad = _round_up(s_enc, 8)
    if s_enc_pad != s_enc:
        x = jnp.pad(x, ((0, 0), (0, s_enc_pad - s_enc), (0, 0)))

    x = pallas_block_stack(x, params['enc_stack'], params['enc_norm_w'],
                           params['enc_norm_b'], cfg['num_heads'], s_enc)
    latent = x[:, :s_enc, :]                                        # (N, s_enc, D)

    # ---------------- decoder ----------------
    xd = pallas_linear_rows(latent.reshape(N * s_enc, D),
                            params['dec_embed_w'], params['dec_embed_b'])
    xd = xd.reshape(N, s_enc, Dd)
    mask_tokens = jnp.broadcast_to(params['mask_token'], (N, L + 1 - s_enc, Dd))
    x_ = jnp.concatenate([xd[:, 1:, :], mask_tokens], axis=1)        # (N, L, Dd)
    x_ = jnp.take_along_axis(
        x_, jnp.broadcast_to(ids_restore[:, :, None], (N, L, Dd)), axis=1)
    xd = jnp.concatenate([xd[:, :1, :], x_], axis=1)                 # (N, L+1, Dd)
    xd = xd + params['decoder_pos_embed']

    s_dec = L + 1
    s_dec_pad = _round_up(s_dec, 8)
    if s_dec_pad != s_dec:
        xd = jnp.pad(xd, ((0, 0), (0, s_dec_pad - s_dec), (0, 0)))
    xd = pallas_block_stack(xd, params['dec_stack'], params['dec_norm_w'],
                            params['dec_norm_b'], cfg['decoder_num_heads'], s_dec)

    # ---------------- fused decoder_pred + loss ----------------
    target = patchify(imgs, p)   # norm_pix_loss=False
    loss = pallas_pred_loss(xd, params['dec_pred_w'], params['dec_pred_b'],
                            target, mask, L)
    return loss, latent, mask, ids_restore


if __name__ == "__main__":
    cfg = dict(img_size=16, patch_size=4, in_chans=3, embed_dim=32, depth=2,
               num_heads=4, decoder_embed_dim=32, decoder_depth=2,
               decoder_num_heads=4, mlp_ratio=4.0)
    key = jax.random.PRNGKey(0)
    pkey, ikey, mkey = jax.random.split(key, 3)
    params = init_model_params(pkey, cfg)
    imgs = jax.random.normal(
        ikey, (2, cfg['in_chans'], cfg['img_size'], cfg['img_size']), jnp.float32)

    fwd = jax.jit(functools.partial(mae_forward, mask_ratio=0.75, cfg=cfg))
    loss, latent, mask, ids_restore = fwd(params, imgs, mkey)
    jax.block_until_ready((loss, latent, mask, ids_restore))

    L = (cfg['img_size'] // cfg['patch_size']) ** 2
    assert latent.shape == (2, 1 + int(L * 0.25), cfg['embed_dim'])
    assert mask.shape == (2, L) and ids_restore.shape == (2, L)
    assert bool(jnp.isfinite(loss))
    print("KERNEL_OK")
</pallas_src>

<mosaic_0001>
module attributes {stable_mosaic.version = 11 : i64} {
  func.func @_patch_embed_kernel(%arg0: i32, %arg1: memref<32x48xbf16, #tpu.memory_space<vmem>>, %arg2: memref<48x32xbf16, #tpu.memory_space<vmem>>, %arg3: memref<1x32xf32, #tpu.memory_space<vmem>>, %arg4: memref<32x32xf32, #tpu.memory_space<vmem>>, %arg5: memref<32x32xf32, #tpu.memory_space<vmem>>) attributes {dimension_semantics = [#tpu.dimension_semantics<parallel>], iteration_bounds = array<i64: 1>, scalar_prefetch = 0 : i64, scratch_operands = 0 : i64, tpu.core_type = #tpu.core_type<tc>, window_params = [{transform_indices = @transform_0, window_bounds = array<i64: 32, 48>}, {pipeline_mode = #tpu.pipeline_mode<synchronous>, transform_indices = @transform_1, window_bounds = array<i64: 48, 32>}, {pipeline_mode = #tpu.pipeline_mode<synchronous>, transform_indices = @transform_2, window_bounds = array<i64: 1, 32>}, {transform_indices = @transform_3, window_bounds = array<i64: 32, 32>}, {transform_indices = @transform_4, window_bounds = array<i64: 32, 32>}]} {
    %c0 = arith.constant 0 : index
    %c0_0 = arith.constant 0 : index
    %0 = vector.load %arg1[%c0, %c0_0] : memref<32x48xbf16, #tpu.memory_space<vmem>>, vector<32x48xbf16>
    %c0_1 = arith.constant 0 : index
    %c0_2 = arith.constant 0 : index
    %1 = vector.load %arg2[%c0_1, %c0_2] : memref<48x32xbf16, #tpu.memory_space<vmem>>, vector<48x32xbf16>
    %cst = arith.constant dense<0.000000e+00> : vector<32x32xf32>
    %2 = tpu.matmul %0, %1, %cst {dimension_numbers = #tpu.dot_dimension_numbers<[1], [0], [0], [1], [0, 0, 1, 1], [], []>} : vector<32x48xbf16>, vector<48x32xbf16>, vector<32x32xf32> -> vector<32x32xf32>
    %c0_3 = arith.constant 0 : index
    %c0_4 = arith.constant 0 : index
    %3 = vector.load %arg3[%c0_3, %c0_4] : memref<1x32xf32, #tpu.memory_space<vmem>>, vector<1x32xf32>
    %4 = vector.broadcast %3 : vector<1x32xf32> to vector<32x32xf32>
    %5 = arith.addf %2, %4 : vector<32x32xf32>
    %c0_5 = arith.constant 0 : index
    %c0_6 = arith.constant 0 : index
    %6 = vector.load %arg4[%c0_5, %c0_6] : memref<32x32xf32, #tpu.memory_space<vmem>>, vector<32x32xf32>
    %7 = arith.addf %5, %6 : vector<32x32xf32>
    %c0_7 = arith.constant 0 : index
    %c0_8 = arith.constant 0 : index
    %8 = vector.load %arg5[%c0_7, %c0_8] : memref<32x32xf32, #tpu.memory_space<vmem>>, vector<32x32xf32>
    tpu.vector_store %arg5[%c0_7, %c0_8], %7 {strides = array<i32>} : memref<32x32xf32, #tpu.memory_space<vmem>>, vector<32x32xf32>,
    return
  }
  func.func @transform_0(%arg0: i32) -> (i32, i32) {
    %c0_i32 = arith.constant 0 : i32
    %c0_i32_0 = arith.constant 0 : i32
    return %arg0, %c0_i32 : i32, i32
  }
  func.func @transform_1(%arg0: i32) -> (i32, i32) {
    %c0_i32 = arith.constant 0 : i32
    %c0_i32_0 = arith.constant 0 : i32
    %c0_i32_1 = arith.constant 0 : i32
    return %c0_i32, %c0_i32_0 : i32, i32
  }
  func.func @transform_2(%arg0: i32) -> (i32, i32) {
    %c0_i32 = arith.constant 0 : i32
    %c0_i32_0 = arith.constant 0 : i32
    %c0_i32_1 = arith.constant 0 : i32
    return %c0_i32, %c0_i32_0 : i32, i32
  }
  func.func @transform_3(%arg0: i32) -> (i32, i32) {
    %c0_i32 = arith.constant 0 : i32
    %c0_i32_0 = arith.constant 0 : i32
    return %arg0, %c0_i32 : i32, i32
  }
  func.func @transform_4(%arg0: i32) -> (i32, i32) {
    %c0_i32 = arith.constant 0 : i32
    %c0_i32_0 = arith.constant 0 : i32
    return %arg0, %c0_i32 : i32, i32
  }
}

module attributes {stable_mosaic.version = 11 : i64} {
  func.func @_block_stack_kernel(%arg0: i32, %arg1: i32, %arg2: memref<2x8x32xf32, #tpu.memory_space<vmem>>, %arg3: memref<1x1x32xf32, #tpu.memory_space<vmem>>, %arg4: memref<1x1x32xf32, #tpu.memory_space<vmem>>, %arg5: memref<1x32x96xbf16, #tpu.memory_space<vmem>>, %arg6: memref<1x1x96xf32, #tpu.memory_space<vmem>>, %arg7: memref<1x32x32xbf16, #tpu.memory_space<vmem>>, %arg8: memref<1x1x32xf32, #tpu.memory_space<vmem>>, %arg9: memref<1x1x32xf32, #tpu.memory_space<vmem>>, %arg10: memref<1x1x32xf32, #tpu.memory_space<vmem>>, %arg11: memref<1x32x128xbf16, #tpu.memory_space<vmem>>, %arg12: memref<1x1x128xf32, #tpu.memory_space<vmem>>, %arg13: memref<1x128x32xbf16, #tpu.memory_space<vmem>>, %arg14: memref<1x1x32xf32, #tpu.memory_space<vmem>>, %arg15: memref<1x32xf32, #tpu.memory_space<vmem>>, %arg16: memref<1x32xf32, #tpu.memory_space<vmem>>, %arg17: memref<2x8x32xf32, #tpu.memory_space<vmem>>, %arg18: memref<2x8x32xf32, #tpu.memory_space<vmem>>) attributes {dimension_semantics = [#tpu.dimension_semantics<parallel>, #tpu.dimension_semantics<arbitrary>], iteration_bounds = array<i64: 1, 2>, scalar_prefetch = 0 : i64, scratch_operands = 1 : i64, tpu.core_type = #tpu.core_type<tc>, window_params = [{transform_indices = @transform_0, window_bounds = array<i64: 2, 8, 32>}, {transform_indices = @transform_1, window_bounds = array<i64: 1, 1, 32>}, {transform_indices = @transform_2, window_bounds = array<i64: 1, 1, 32>}, {transform_indices = @transform_3, window_bounds = array<i64: 1, 32, 96>}, {transform_indices = @transform_4, window_bounds = array<i64: 1, 1, 96>}, {transform_indices = @transform_5, window_bounds = array<i64: 1, 32, 32>}, {transform_indices = @transform_6, window_bounds = array<i64: 1, 1, 32>}, {transform_indices = @transform_7, window_bounds = array<i64: 1, 1, 32>}, {transform_indices = @transform_8, window_bounds = array<i64: 1, 1, 32>}, {transform_indices = @transform_9, window_bounds = array<i64: 1, 32, 128>}, {transform_indices = @transform_10, window_bounds = array<i64: 1, 1, 128>}, {transform_indices = @transform_11, window_bounds = array<i64: 1, 128, 32>}, {transform_indices = @transform_12, window_bounds = array<i64: 1, 1, 32>}, {pipeline_mode = #tpu.pipeline_mode<synchronous>, transform_indices = @transform_13, window_bounds = array<i64: 1, 32>}, {pipeline_mode = #tpu.pipeline_mode<synchronous>, transform_indices = @transform_14, window_bounds = array<i64: 1, 32>}, {transform_indices = @transform_15, window_bounds = array<i64: 2, 8, 32>}]} {
    %c0_i32 = arith.constant 0 : i32
    %0 = arith.cmpi eq, %arg1, %c0_i32 : i32
    %1 = arith.extui %0 : i1 to i32
    %c0_i32_0 = arith.constant 0 : i32
    %2 = arith.cmpi ne, %1, %c0_i32_0 : i32
    scf.if %2 {
      %c0_67 = arith.constant 0 : index
      %c0_68 = arith.constant 0 : index
      %c0_69 = arith.constant 0 : index
      %151 = vector.load %arg2[%c0_67, %c0_68, %c0_69] : memref<2x8x32xf32, #tpu.memory_space<vmem>>, vector<2x8x32xf32>
      %c0_70 = arith.constant 0 : index
      %c0_71 = arith.constant 0 : index
      %c0_72 = arith.constant 0 : index
      %152 = vector.load %arg18[%c0_70, %c0_71, %c0_72] : memref<2x8x32xf32, #tpu.memory_space<vmem>>, vector<2x8x32xf32>
      tpu.vector_store %arg18[%c0_70, %c0_71, %c0_72], %151 {strides = array<i32>} : memref<2x8x32xf32, #tpu.memory_space<vmem>>, vector<2x8x32xf32>,
    } else {
    }
    %c0 = arith.constant 0 : index
    %c0_1 = arith.constant 0 : index
    %c0_2 = arith.constant 0 : index
    %3 = vector.load %arg18[%c0, %c0_1, %c0_2] : memref<2x8x32xf32, #tpu.memory_space<vmem>>, vector<2x8x32xf32>
    %4 = vector.shape_cast %3 : vector<2x8x32xf32> to vector<16x32xf32>
    %5 = tpu.iota {dimensions = array<i32: 2>} : vector<1x1x8xi32>
    %c5_i32 = arith.constant 5 : i32
    %6 = vector.broadcast %c5_i32 : i32 to vector<1x1x8xi32>
    %7 = arith.cmpi slt, %5, %6 : vector<1x1x8xi32>
    %cst = arith.constant 0.000000e+00 : f32
    %cst_3 = arith.constant -1.000000e+30 : f32
    %8 = vector.broadcast %cst : f32 to vector<1x1x8xf32>
    %9 = vector.broadcast %cst_3 : f32 to vector<1x1x8xf32>
    %10 = arith.select %7, %8, %9 : vector<1x1x8xi1>, vector<1x1x8xf32>
    %c0_4 = arith.constant 0 : index
    %c0_5 = arith.constant 0 : index
    %c0_6 = arith.constant 0 : index
    %11 = vector.load %arg3[%c0_4, %c0_5, %c0_6] : memref<1x1x32xf32, #tpu.memory_space<vmem>>, vector<1x1x32xf32>
    %12 = vector.shape_cast %11 : vector<1x1x32xf32> to vector<1x32xf32>
    %c0_7 = arith.constant 0 : index
    %c0_8 = arith.constant 0 : index
    %c0_9 = arith.constant 0 : index
    %13 = vector.load %arg4[%c0_7, %c0_8, %c0_9] : memref<1x1x32xf32, #tpu.memory_space<vmem>>, vector<1x1x32xf32>
    %14 = vector.shape_cast %13 : vector<1x1x32xf32> to vector<1x32xf32>
    %cst_10 = arith.constant dense<0.000000e+00> : vector<16xf32>
    %15 = vector.multi_reduction <add>, %4, %cst_10 [1] : vector<16x32xf32> to vector<16xf32>
    %16 = vector.shape_cast %15 : vector<16xf32> to vector<16x1xf32>
    %cst_11 = arith.constant 3.200000e+01 : f32
    %17 = vector.broadcast %cst_11 : f32 to vector<16x1xf32>
    %18 = arith.divf %16, %17 : vector<16x1xf32>
    %19 = vector.broadcast %18 : vector<16x1xf32> to vector<16x32xf32>
    %20 = arith.subf %4, %19 : vector<16x32xf32>
    %21 = arith.mulf %20, %20 : vector<16x32xf32>
    %cst_12 = arith.constant dense<0.000000e+00> : vector<16xf32>
    %22 = vector.multi_reduction <add>, %21, %cst_12 [1] : vector<16x32xf32> to vector<16xf32>
    %23 = vector.shape_cast %22 : vector<16xf32> to vector<16x1xf32>
    %cst_13 = arith.constant 3.200000e+01 : f32
    %24 = vector.broadcast %cst_13 : f32 to vector<16x1xf32>
    %25 = arith.divf %23, %24 : vector<16x1xf32>
    %cst_14 = arith.constant 9.99999974E-6 : f32
    %26 = vector.broadcast %cst_14 : f32 to vector<16x1xf32>
    %27 = arith.addf %25, %26 : vector<16x1xf32>
    %28 = math.rsqrt %27 : vector<16x1xf32>
    %29 = vector.broadcast %28 : vector<16x1xf32> to vector<16x32xf32>
    %30 = arith.mulf %20, %29 : vector<16x32xf32>
    %31 = vector.broadcast %12 : vector<1x32xf32> to vector<16x32xf32>
    %32 = arith.mulf %30, %31 : vector<16x32xf32>
    %33 = vector.broadcast %14 : vector<1x32xf32> to vector<16x32xf32>
    %34 = arith.addf %32, %33 : vector<16x32xf32>
    %35 = arith.truncf %34 : vector<16x32xf32> to vector<16x32xbf16>
    %c0_15 = arith.constant 0 : index
    %c0_16 = arith.constant 0 : index
    %c0_17 = arith.constant 0 : index
    %36 = vector.load %arg5[%c0_15, %c0_16, %c0_17] : memref<1x32x96xbf16, #tpu.memory_space<vmem>>, vector<1x32x96xbf16>
    %37 = vector.shape_cast %36 : vector<1x32x96xbf16> to vector<32x96xbf16>
    %cst_18 = arith.constant dense<0.000000e+00> : vector<16x96xf32>
    %38 = tpu.matmul %35, %37, %cst_18 {dimension_numbers = #tpu.dot_dimension_numbers<[1], [0], [0], [1], [0, 0, 1, 1], [], []>} : vector<16x32xbf16>, vector<32x96xbf16>, vector<16x96xf32> -> vector<16x96xf32>
    %c0_19 = arith.constant 0 : index
    %c0_20 = arith.constant 0 : index
    %c0_21 = arith.constant 0 : index
    %39 = vector.load %arg6[%c0_19, %c0_20, %c0_21] : memref<1x1x96xf32, #tpu.memory_space<vmem>>, vector<1x1x96xf32>
    %40 = vector.shape_cast %39 : vector<1x1x96xf32> to vector<1x96xf32>
    %41 = vector.broadcast %40 : vector<1x96xf32> to vector<16x96xf32>
    %42 = arith.addf %38, %41 : vector<16x96xf32>
    %43 = arith.truncf %42 : vector<16x96xf32> to vector<16x96xbf16>
    %44 = vector.shape_cast %43 : vector<16x96xbf16> to vector<2x8x96xbf16>
    %45 = vector.extract_strided_slice %44 {offsets = [0, 0, 0], sizes = [2, 8, 8], strides = [1, 1, 1]} : vector<2x8x96xbf16> to vector<2x8x8xbf16>
    %46 = vector.extract_strided_slice %44 {offsets = [0, 0, 8], sizes = [2, 8, 8], strides = [1, 1, 1]} : vector<2x8x96xbf16> to vector<2x8x8xbf16>
    %47 = vector.extract_strided_slice %44 {offsets = [0, 0, 16], sizes = [2, 8, 8], strides = [1, 1, 1]} : vector<2x8x96xbf16> to vector<2x8x8xbf16>
    %48 = vector.extract_strided_slice %44 {offsets = [0, 0, 24], sizes = [2, 8, 8], strides = [1, 1, 1]} : vector<2x8x96xbf16> to vector<2x8x8xbf16>
    %49 = tpu.concatenate %45, %46, %47, %48 in 0 : vector<2x8x8xbf16>, vector<2x8x8xbf16>, vector<2x8x8xbf16>, vector<2x8x8xbf16> -> vector<8x8x8xbf16>
    %50 = vector.extract_strided_slice %44 {offsets = [0, 0, 32], sizes = [2, 8, 8], strides = [1, 1, 1]} : vector<2x8x96xbf16> to vector<2x8x8xbf16>
    %51 = vector.extract_strided_slice %44 {offsets = [0, 0, 40], sizes = [2, 8, 8], strides = [1, 1, 1]} : vector<2x8x96xbf16> to vector<2x8x8xbf16>
    %52 = vector.extract_strided_slice %44 {offsets = [0, 0, 48], sizes = [2, 8, 8], strides = [1, 1, 1]} : vector<2x8x96xbf16> to vector<2x8x8xbf16>
    %53 = vector.extract_strided_slice %44 {offsets = [0, 0, 56], sizes = [2, 8, 8], strides = [1, 1, 1]} : vector<2x8x96xbf16> to vector<2x8x8xbf16>
    %54 = tpu.concatenate %50, %51, %52, %53 in 0 : vector<2x8x8xbf16>, vector<2x8x8xbf16>, vector<2x8x8xbf16>, vector<2x8x8xbf16> -> vector<8x8x8xbf16>
    %55 = vector.extract_strided_slice %44 {offsets = [0, 0, 64], sizes = [2, 8, 8], strides = [1, 1, 1]} : vector<2x8x96xbf16> to vector<2x8x8xbf16>
    %56 = vector.extract_strided_slice %44 {offsets = [0, 0, 72], sizes = [2, 8, 8], strides = [1, 1, 1]} : vector<2x8x96xbf16> to vector<2x8x8xbf16>
    %57 = vector.extract_strided_slice %44 {offsets = [0, 0, 80], sizes = [2, 8, 8], strides = [1, 1, 1]} : vector<2x8x96xbf16> to vector<2x8x8xbf16>
    %58 = vector.extract_strided_slice %44 {offsets = [0, 0, 88], sizes = [2, 8, 8], strides = [1, 1, 1]} : vector<2x8x96xbf16> to vector<2x8x8xbf16>
    %59 = tpu.concatenate %55, %56, %57, %58 in 0 : vector<2x8x8xbf16>, vector<2x8x8xbf16>, vector<2x8x8xbf16>, vector<2x8x8xbf16> -> vector<8x8x8xbf16>
    "tpu.trace_start"() <{level = 10 : i32, message = "bqd,bkd->bqk"}> : () -> ()
    %cst_22 = arith.constant dense<0.000000e+00> : vector<8x8x8xf32>
    %60 = tpu.matmul %49, %54, %cst_22 {dimension_numbers = #tpu.dot_dimension_numbers<[2], [2], [1], [1], [0, 0, 0, 1, 1, 1], [0], [0]>} : vector<8x8x8xbf16>, vector<8x8x8xbf16>, vector<8x8x8xf32> -> vector<8x8x8xf32>
    "tpu.trace_stop"() : () -> ()
    %cst_23 = arith.constant 0.353553385 : f32
    %61 = vector.broadcast %cst_23 : f32 to vector<8x8x8xf32>
    %62 = arith.mulf %60, %61 : vector<8x8x8xf32>
    %63 = vector.broadcast %10 : vector<1x1x8xf32> to vector<8x8x8xf32>
    %64 = arith.addf %62, %63 : vector<8x8x8xf32>
    %cst_24 = arith.constant dense<0xFF800000> : vector<8x8xf32>
    %65 = vector.multi_reduction <maximumf>, %64, %cst_24 [2] : vector<8x8x8xf32> to vector<8x8xf32>
    %66 = vector.shape_cast %65 : vector<8x8xf32> to vector<8x8x1xf32>
    %67 = vector.broadcast %66 : vector<8x8x1xf32> to vector<8x8x8xf32>
    %68 = arith.subf %64, %67 : vector<8x8x8xf32>
    %69 = math.exp %68 : vector<8x8x8xf32>
    %cst_25 = arith.constant dense<0.000000e+00> : vector<8x8xf32>
    %70 = vector.multi_reduction <add>, %69, %cst_25 [2] : vector<8x8x8xf32> to vector<8x8xf32>
    %71 = vector.shape_cast %70 : vector<8x8xf32> to vector<8x8x1xf32>
    %72 = tpu.reciprocal %71 {approx = true} : vector<8x8x1xf32> -> vector<8x8x1xf32>
    %73 = vector.broadcast %72 : vector<8x8x1xf32> to vector<8x8x8xf32>
    %74 = arith.mulf %69, %73 : vector<8x8x8xf32>
    %75 = arith.truncf %74 : vector<8x8x8xf32> to vector<8x8x8xbf16>
    "tpu.trace_start"() <{level = 10 : i32, message = "bqk,bkd->bqd"}> : () -> ()
    %cst_26 = arith.constant dense<0.000000e+00> : vector<8x8x8xf32>
    %76 = tpu.matmul %75, %59, %cst_26 {dimension_numbers = #tpu.dot_dimension_numbers<[2], [1], [1], [2], [0, 0, 0, 1, 1, 2], [0], [0]>} : vector<8x8x8xbf16>, vector<8x8x8xbf16>, vector<8x8x8xf32> -> vector<8x8x8xf32>
    "tpu.trace_stop"() : () -> ()
    %77 = vector.extract_strided_slice %76 {offsets = [0, 0, 0], sizes = [2, 8, 8], strides = [1, 1, 1]} : vector<8x8x8xf32> to vector<2x8x8xf32>
    %78 = vector.extract_strided_slice %76 {offsets = [2, 0, 0], sizes = [2, 8, 8], strides = [1, 1, 1]} : vector<8x8x8xf32> to vector<2x8x8xf32>
    %79 = vector.extract_strided_slice %76 {offsets = [4, 0, 0], sizes = [2, 8, 8], strides = [1, 1, 1]} : vector<8x8x8xf32> to vector<2x8x8xf32>
    %80 = vector.extract_strided_slice %76 {offsets = [6, 0, 0], sizes = [2, 8, 8], strides = [1, 1, 1]} : vector<8x8x8xf32> to vector<2x8x8xf32>
    %81 = tpu.concatenate %77, %78, %79, %80 in 2 : vector<2x8x8xf32>, vector<2x8x8xf32>, vector<2x8x8xf32>, vector<2x8x8xf32> -> vector<2x8x32xf32>
    %82 = vector.shape_cast %81 : vector<2x8x32xf32> to vector<16x32xf32>
    %83 = arith.truncf %82 : vector<16x32xf32> to vector<16x32xbf16>
    %c0_27 = arith.constant 0 : index
    %c0_28 = arith.constant 0 : index
    %c0_29 = arith.constant 0 : index
    %84 = vector.load %arg7[%c0_27, %c0_28, %c0_29] : memref<1x32x32xbf16, #tpu.memory_space<vmem>>, vector<1x32x32xbf16>
    %85 = vector.shape_cast %84 : vector<1x32x32xbf16> to vector<32x32xbf16>
    %cst_30 = arith.constant dense<0.000000e+00> : vector<16x32xf32>
    %86 = tpu.matmul %83, %85, %cst_30 {dimension_numbers = #tpu.dot_dimension_numbers<[1], [0], [0], [1], [0, 0, 1, 1], [], []>} : vector<16x32xbf16>, vector<32x32xbf16>, vector<16x32xf32> -> vector<16x32xf32>
    %c0_31 = arith.constant 0 : index
    %c0_32 = arith.constant 0 : index
    %c0_33 = arith.constant 0 : index
    %87 = vector.load %arg8[%c0_31, %c0_32, %c0_33] : memref<1x1x32xf32, #tpu.memory_space<vmem>>, vector<1x1x32xf32>
    %88 = vector.shape_cast %87 : vector<1x1x32xf32> to vector<1x32xf32>
    %89 = vector.broadcast %88 : vector<1x32xf32> to vector<16x32xf32>
    %90 = arith.addf %86, %89 : vector<16x32xf32>
    %91 = arith.addf %4, %90 : vector<16x32xf32>
    %c0_34 = arith.constant 0 : index
    %c0_35 = arith.constant 0 : index
    %c0_36 = arith.constant 0 : index
    %92 = vector.load %arg9[%c0_34, %c0_35, %c0_36] : memref<1x1x32xf32, #tpu.memory_space<vmem>>, vector<1x1x32xf32>
    %93 = vector.shape_cast %92 : vector<1x1x32xf32> to vector<1x32xf32>
    %c0_37 = arith.constant 0 : index
    %c0_38 = arith.constant 0 : index
    %c0_39 = arith.constant 0 : index
    %94 = vector.load %arg10[%c0_37, %c0_38, %c0_39] : memref<1x1x32xf32, #tpu.memory_space<vmem>>, vector<1x1x32xf32>
    %95 = vector.shape_cast %94 : vector<1x1x32xf32> to vector<1x32xf32>
    %cst_40 = arith.constant dense<0.000000e+00> : vector<16xf32>
    %96 = vector.multi_reduction <add>, %91, %cst_40 [1] : vector<16x32xf32> to vector<16xf32>
    %97 = vector.shape_cast %96 : vector<16xf32> to vector<16x1xf32>
    %cst_41 = arith.constant 3.200000e+01 : f32
    %98 = vector.broadcast %cst_41 : f32 to vector<16x1xf32>
    %99 = arith.divf %97, %98 : vector<16x1xf32>
    %100 = vector.broadcast %99 : vector<16x1xf32> to vector<16x32xf32>
    %101 = arith.subf %91, %100 : vector<16x32xf32>
    %102 = arith.mulf %101, %101 : vector<16x32xf32>
    %cst_42 = arith.constant dense<0.000000e+00> : vector<16xf32>
    %103 = vector.multi_reduction <add>, %102, %cst_42 [1] : vector<16x32xf32> to vector<16xf32>
    %104 = vector.shape_cast %103 : vector<16xf32> to vector<16x1xf32>
    %cst_43 = arith.constant 3.200000e+01 : f32
    %105 = vector.broadcast %cst_43 : f32 to vector<16x1xf32>
    %106 = arith.divf %104, %105 : vector<16x1xf32>
    %cst_44 = arith.constant 9.99999974E-6 : f32
    %107 = vector.broadcast %cst_44 : f32 to vector<16x1xf32>
    %108 = arith.addf %106, %107 : vector<16x1xf32>
    %109 = math.rsqrt %108 : vector<16x1xf32>
    %110 = vector.broadcast %109 : vector<16x1xf32> to vector<16x32xf32>
    %111 = arith.mulf %101, %110 : vector<16x32xf32>
    %112 = vector.broadcast %93 : vector<1x32xf32> to vector<16x32xf32>
    %113 = arith.mulf %111, %112 : vector<16x32xf32>
    %114 = vector.broadcast %95 : vector<1x32xf32> to vector<16x32xf32>
    %115 = arith.addf %113, %114 : vector<16x32xf32>
    %116 = arith.truncf %115 : vector<16x32xf32> to vector<16x32xbf16>
    %c0_45 = arith.constant 0 : index
    %c0_46 = arith.constant 0 : index
    %c0_47 = arith.constant 0 : index
    %117 = vector.load %arg11[%c0_45, %c0_46, %c0_47] : memref<1x32x128xbf16, #tpu.memory_space<vmem>>, vector<1x32x128xbf16>
    %118 = vector.shape_cast %117 : vector<1x32x128xbf16> to vector<32x128xbf16>
    %cst_48 = arith.constant dense<0.000000e+00> : vector<16x128xf32>
    %119 = tpu.matmul %116, %118, %cst_48 {dimension_numbers = #tpu.dot_dimension_numbers<[1], [0], [0], [1], [0, 0, 1, 1], [], []>} : vector<16x32xbf16>, vector<32x128xbf16>, vector<16x128xf32> -> vector<16x128xf32>
    %c0_49 = arith.constant 0 : index
    %c0_50 = arith.constant 0 : index
    %c0_51 = arith.constant 0 : index
    %120 = vector.load %arg12[%c0_49, %c0_50, %c0_51] : memref<1x1x128xf32, #tpu.memory_space<vmem>>, vector<1x1x128xf32>
    %121 = vector.shape_cast %120 : vector<1x1x128xf32> to vector<1x128xf32>
    %122 = vector.broadcast %121 : vector<1x128xf32> to vector<16x128xf32>
    %123 = arith.addf %119, %122 : vector<16x128xf32>
    %124 = arith.mulf %123, %123 : vector<16x128xf32>
    %125 = arith.mulf %123, %124 : vector<16x128xf32>
    %cst_52 = arith.constant 4.471500e-02 : f32
    %126 = vector.broadcast %cst_52 : f32 to vector<16x128xf32>
    %127 = arith.mulf %126, %125 : vector<16x128xf32>
    %128 = arith.addf %123, %127 : vector<16x128xf32>
    %cst_53 = arith.constant 0.797884583 : f32
    %129 = vector.broadcast %cst_53 : f32 to vector<16x128xf32>
    %130 = arith.mulf %129, %128 : vector<16x128xf32>
    %131 = math.tanh %130 : vector<16x128xf32>
    %cst_54 = arith.constant 1.000000e+00 : f32
    %132 = vector.broadcast %cst_54 : f32 to vector<16x128xf32>
    %133 = arith.addf %132, %131 : vector<16x128xf32>
    %cst_55 = arith.constant 5.000000e-01 : f32
    %134 = vector.broadcast %cst_55 : f32 to vector<16x128xf32>
    %135 = arith.mulf %134, %133 : vector<16x128xf32>
    %136 = arith.mulf %123, %135 : vector<16x128xf32>
    %137 = arith.truncf %136 : vector<16x128xf32> to vector<16x128xbf16>
    %c0_56 = arith.constant 0 : index
    %c0_57 = arith.constant 0 : index
    %c0_58 = arith.constant 0 : index
    %138 = vector.load %arg13[%c0_56, %c0_57, %c0_58] : memref<1x128x32xbf16, #tpu.memory_space<vmem>>, vector<1x128x32xbf16>
    %139 = vector.shape_cast %138 : vector<1x128x32xbf16> to vector<128x32xbf16>
    %cst_59 = arith.constant dense<0.000000e+00> : vector<16x32xf32>
    %140 = tpu.matmul %137, %139, %cst_59 {dimension_numbers = #tpu.dot_dimension_numbers<[1], [0], [0], [1], [0, 0, 1, 1], [], []>} : vector<16x128xbf16>, vector<128x32xbf16>, vector<16x32xf32> -> vector<16x32xf32>
    %c0_60 = arith.constant 0 : index
    %c0_61 = arith.constant 0 : index
    %c0_62 = arith.constant 0 : index
    %141 = vector.load %arg14[%c0_60, %c0_61, %c0_62] : memref<1x1x32xf32, #tpu.memory_space<vmem>>, vector<1x1x32xf32>
    %142 = vector.shape_cast %141 : vector<1x1x32xf32> to vector<1x32xf32>
    %143 = vector.broadcast %142 : vector<1x32xf32> to vector<16x32xf32>
    %144 = arith.addf %140, %143 : vector<16x32xf32>
    %145 = arith.addf %91, %144 : vector<16x32xf32>
    %146 = vector.shape_cast %145 : vector<16x32xf32> to vector<2x8x32xf32>
    %c0_63 = arith.constant 0 : index
    %c0_64 = arith.constant 0 : index
    %c0_65 = arith.constant 0 : index
    %147 = vector.load %arg18[%c0_63, %c0_64, %c0_65] : memref<2x8x32xf32, #tpu.memory_space<vmem>>, vector<2x8x32xf32>
    tpu.vector_store %arg18[%c0_63, %c0_64, %c0_65], %146 {strides = array<i32>} : memref<2x8x32xf32, #tpu.memory_space<vmem>>, vector<2x8x32xf32>,
    %c1_i32 = arith.constant 1 : i32
    %148 = arith.cmpi eq, %arg1, %c1_i32 : i32
    %149 = arith.extui %148 : i1 to i32
    %c0_i32_66 = arith.constant 0 : i32
    %150 = arith.cmpi ne, %149, %c0_i32_66 : i32
    scf.if %150 {
      %c0_67 = arith.constant 0 : index
      %c0_68 = arith.constant 0 : index
      %151 = vector.load %arg15[%c0_67, %c0_68] : memref<1x32xf32, #tpu.memory_space<vmem>>, vector<1x32xf32>
      %c0_69 = arith.constant 0 : index
      %c0_70 = arith.constant 0 : index
      %152 = vector.load %arg16[%c0_69, %c0_70] : memref<1x32xf32, #tpu.memory_space<vmem>>, vector<1x32xf32>
      %cst_71 = arith.constant dense<0.000000e+00> : vector<16xf32>
      %153 = vector.multi_reduction <add>, %145, %cst_71 [1] : vector<16x32xf32> to vector<16xf32>
      %154 = vector.shape_cast %153 : vector<16xf32> to vector<16x1xf32>
      %cst_72 = arith.constant 3.200000e+01 : f32
      %155 = vector.broadcast %cst_72 : f32 to vector<16x1xf32>
      %156 = arith.divf %154, %155 : vector<16x1xf32>
      %157 = vector.broadcast %156 : vector<16x1xf32> to vector<16x32xf32>
      %158 = arith.subf %145, %157 : vector<16x32xf32>
      %159 = arith.mulf %158, %158 : vector<16x32xf32>
      %cst_73 = arith.constant dense<0.000000e+00> : vector<16xf32>
      %160 = vector.multi_reduction <add>, %159, %cst_73 [1] : vector<16x32xf32> to vector<16xf32>
      %161 = vector.shape_cast %160 : vector<16xf32> to vector<16x1xf32>
      %cst_74 = arith.constant 3.200000e+01 : f32
      %162 = vector.broadcast %cst_74 : f32 to vector<16x1xf32>
      %163 = arith.divf %161, %162 : vector<16x1xf32>
      %cst_75 = arith.constant 9.99999974E-6 : f32
      %164 = vector.broadcast %cst_75 : f32 to vector<16x1xf32>
      %165 = arith.addf %163, %164 : vector<16x1xf32>
      %166 = math.rsqrt %165 : vector<16x1xf32>
      %167 = vector.broadcast %166 : vector<16x1xf32> to vector<16x32xf32>
      %168 = arith.mulf %158, %167 : vector<16x32xf32>
      %169 = vector.broadcast %151 : vector<1x32xf32> to vector<16x32xf32>
      %170 = arith.mulf %168, %169 : vector<16x32xf32>
      %171 = vector.broadcast %152 : vector<1x32xf32> to vector<16x32xf32>
      %172 = arith.addf %170, %171 : vector<16x32xf32>
      %173 = vector.shape_cast %172 : vector<16x32xf32> to vector<2x8x32xf32>
      %c0_76 = arith.constant 0 : index
      %c0_77 = arith.constant 0 : index
      %c0_78 = arith.constant 0 : index
      %174 = vector.load %arg17[%c0_76, %c0_77, %c0_78] : memref<2x8x32xf32, #tpu.memory_space<vmem>>, vector<2x8x32xf32>
      tpu.vector_store %arg17[%c0_76, %c0_77, %c0_78], %173 {strides = array<i32>} : memref<2x8x32xf32, #tpu.memory_space<vmem>>, vector<2x8x32xf32>,
    } else {
    }
    return
  }
  func.func @transform_0(%arg0: i32, %arg1: i32) -> (i32, i32, i32) {
    %c0_i32 = arith.constant 0 : i32
    %c0_i32_0 = arith.constant 0 : i32
    %c0_i32_1 = arith.constant 0 : i32
    return %arg0, %c0_i32, %c0_i32_0 : i32, i32, i32
  }
  func.func @transform_1(%arg0: i32, %arg1: i32) -> (i32, i32, i32) {
    %c0_i32 = arith.constant 0 : i32
    %c0_i32_0 = arith.constant 0 : i32
    %c0_i32_1 = arith.constant 0 : i32
    return %arg1, %c0_i32, %c0_i32_0 : i32, i32, i32
  }
  func.func @transform_2(%arg0: i32, %arg1: i32) -> (i32, i32, i32) {
    %c0_i32 = arith.constant 0 : i32
    %c0_i32_0 = arith.constant 0 : i32
    %c0_i32_1 = arith.constant 0 : i32
    return %arg1, %c0_i32, %c0_i32_0 : i32, i32, i32
  }
  func.func @transform_3(%arg0: i32, %arg1: i32) -> (i32, i32, i32) {
    %c0_i32 = arith.constant 0 : i32
    %c0_i32_0 = arith.constant 0 : i32
    %c0_i32_1 = arith.constant 0 : i32
    return %arg1, %c0_i32, %c0_i32_0 : i32, i32, i32
  }
  func.func @transform_4(%arg0: i32, %arg1: i32) -> (i32, i32, i32) {
    %c0_i32 = arith.constant 0 : i32
    %c0_i32_0 = arith.constant 0 : i32
    %c0_i32_1 = arith.constant 0 : i32
    return %arg1, %c0_i32, %c0_i32_0 : i32, i32, i32
  }
  func.func @transform_5(%arg0: i32, %arg1: i32) -> (i32, i32, i32) {
    %c0_i32 = arith.constant 0 : i32
    %c0_i32_0 = arith.constant 0 : i32
    %c0_i32_1 = arith.constant 0 : i32
    return %arg1, %c0_i32, %c0_i32_0 : i32, i32, i32
  }
  func.func @transform_6(%arg0: i32, %arg1: i32) -> (i32, i32, i32) {
    %c0_i32 = arith.constant 0 : i32
    %c0_i32_0 = arith.constant 0 : i32
    %c0_i32_1 = arith.constant 0 : i32
    return %arg1, %c0_i32, %c0_i32_0 : i32, i32, i32
  }
  func.func @transform_7(%arg0: i32, %arg1: i32) -> (i32, i32, i32) {
    %c0_i32 = arith.constant 0 : i32
    %c0_i32_0 = arith.constant 0 : i32
    %c0_i32_1 = arith.constant 0 : i32
    return %arg1, %c0_i32, %c0_i32_0 : i32, i32, i32
  }
  func.func @transform_8(%arg0: i32, %arg1: i32) -> (i32, i32, i32) {
    %c0_i32 = arith.constant 0 : i32
    %c0_i32_0 = arith.constant 0 : i32
    %c0_i32_1 = arith.constant 0 : i32
    return %arg1, %c0_i32, %c0_i32_0 : i32, i32, i32
  }
  func.func @transform_9(%arg0: i32, %arg1: i32) -> (i32, i32, i32) {
    %c0_i32 = arith.constant 0 : i32
    %c0_i32_0 = arith.constant 0 : i32
    %c0_i32_1 = arith.constant 0 : i32
    return %arg1, %c0_i32, %c0_i32_0 : i32, i32, i32
  }
  func.func @transform_10(%arg0: i32, %arg1: i32) -> (i32, i32, i32) {
    %c0_i32 = arith.constant 0 : i32
    %c0_i32_0 = arith.constant 0 : i32
    %c0_i32_1 = arith.constant 0 : i32
    return %arg1, %c0_i32, %c0_i32_0 : i32, i32, i32
  }
  func.func @transform_11(%arg0: i32, %arg1: i32) -> (i32, i32, i32) {
    %c0_i32 = arith.constant 0 : i32
    %c0_i32_0 = arith.constant 0 : i32
    %c0_i32_1 = arith.constant 0 : i32
    return %arg1, %c0_i32, %c0_i32_0 : i32, i32, i32
  }
  func.func @transform_12(%arg0: i32, %arg1: i32) -> (i32, i32, i32) {
    %c0_i32 = arith.constant 0 : i32
    %c0_i32_0 = arith.constant 0 : i32
    %c0_i32_1 = arith.constant 0 : i32
    return %arg1, %c0_i32, %c0_i32_0 : i32, i32, i32
  }
  func.func @transform_13(%arg0: i32, %arg1: i32) -> (i32, i32) {
    %c0_i32 = arith.constant 0 : i32
    %c0_i32_0 = arith.constant 0 : i32
    %c0_i32_1 = arith.constant 0 : i32
    return %c0_i32, %c0_i32_0 : i32, i32
  }
  func.func @transform_14(%arg0: i32, %arg1: i32) -> (i32, i32) {
    %c0_i32 = arith.constant 0 : i32
    %c0_i32_0 = arith.constant 0 : i32
    %c0_i32_1 = arith.constant 0 : i32
    return %c0_i32, %c0_i32_0 : i32, i32
  }
  func.func @transform_15(%arg0: i32, %arg1: i32) -> (i32, i32, i32) {
    %c0_i32 = arith.constant 0 : i32
    %c0_i32_0 = arith.constant 0 : i32
    %c0_i32_1 = arith.constant 0 : i32
    return %arg0, %c0_i32, %c0_i32_0 : i32, i32, i32
  }
}

module attributes {stable_mosaic.version = 11 : i64} {
  func.func @_linear_rows_kernel(%arg0: i32, %arg1: memref<16x32xbf16, #tpu.memory_space<vmem>>, %arg2: memref<32x32xbf16, #tpu.memory_space<vmem>>, %arg3: memref<1x32xf32, #tpu.memory_space<vmem>>, %arg4: memref<16x32xf32, #tpu.memory_space<vmem>>) attributes {dimension_semantics = [#tpu.dimension_semantics<parallel>], iteration_bounds = array<i64: 1>, scalar_prefetch = 0 : i64, scratch_operands = 0 : i64, tpu.core_type = #tpu.core_type<tc>, window_params = [{transform_indices = @transform_0, window_bounds = array<i64: 16, 32>}, {pipeline_mode = #tpu.pipeline_mode<synchronous>, transform_indices = @transform_1, window_bounds = array<i64: 32, 32>}, {pipeline_mode = #tpu.pipeline_mode<synchronous>, transform_indices = @transform_2, window_bounds = array<i64: 1, 32>}, {transform_indices = @transform_3, window_bounds = array<i64: 16, 32>}]} {
    %c0 = arith.constant 0 : index
    %c0_0 = arith.constant 0 : index
    %0 = vector.load %arg1[%c0, %c0_0] : memref<16x32xbf16, #tpu.memory_space<vmem>>, vector<16x32xbf16>
    %c0_1 = arith.constant 0 : index
    %c0_2 = arith.constant 0 : index
    %1 = vector.load %arg2[%c0_1, %c0_2] : memref<32x32xbf16, #tpu.memory_space<vmem>>, vector<32x32xbf16>
    %cst = arith.constant dense<0.000000e+00> : vector<16x32xf32>
    %2 = tpu.matmul %0, %1, %cst {dimension_numbers = #tpu.dot_dimension_numbers<[1], [0], [0], [1], [0, 0, 1, 1], [], []>} : vector<16x32xbf16>, vector<32x32xbf16>, vector<16x32xf32> -> vector<16x32xf32>
    %c0_3 = arith.constant 0 : index
    %c0_4 = arith.constant 0 : index
    %3 = vector.load %arg3[%c0_3, %c0_4] : memref<1x32xf32, #tpu.memory_space<vmem>>, vector<1x32xf32>
    %4 = vector.broadcast %3 : vector<1x32xf32> to vector<16x32xf32>
    %5 = arith.addf %2, %4 : vector<16x32xf32>
    %c0_5 = arith.constant 0 : index
    %c0_6 = arith.constant 0 : index
    %6 = vector.load %arg4[%c0_5, %c0_6] : memref<16x32xf32, #tpu.memory_space<vmem>>, vector<16x32xf32>
    tpu.vector_store %arg4[%c0_5, %c0_6], %5 {strides = array<i32>} : memref<16x32xf32, #tpu.memory_space<vmem>>, vector<16x32xf32>,
    return
  }
  func.func @transform_0(%arg0: i32) -> (i32, i32) {
    %c0_i32 = arith.constant 0 : i32
    %c0_i32_0 = arith.constant 0 : i32
    return %arg0, %c0_i32 : i32, i32
  }
  func.func @transform_1(%arg0: i32) -> (i32, i32) {
    %c0_i32 = arith.constant 0 : i32
    %c0_i32_0 = arith.constant 0 : i32
    %c0_i32_1 = arith.constant 0 : i32
    return %c0_i32, %c0_i32_0 : i32, i32
  }
  func.func @transform_2(%arg0: i32) -> (i32, i32) {
    %c0_i32 = arith.constant 0 : i32
    %c0_i32_0 = arith.constant 0 : i32
    %c0_i32_1 = arith.constant 0 : i32
    return %c0_i32, %c0_i32_0 : i32, i32
  }
  func.func @transform_3(%arg0: i32) -> (i32, i32) {
    %c0_i32 = arith.constant 0 : i32
    %c0_i32_0 = arith.constant 0 : i32
    return %arg0, %c0_i32 : i32, i32
  }
}

module attributes {stable_mosaic.version = 11 : i64} {
  func.func @_block_stack_kernel(%arg0: i32, %arg1: i32, %arg2: memref<2x24x32xf32, #tpu.memory_space<vmem>>, %arg3: memref<1x1x32xf32, #tpu.memory_space<vmem>>, %arg4: memref<1x1x32xf32, #tpu.memory_space<vmem>>, %arg5: memref<1x32x96xbf16, #tpu.memory_space<vmem>>, %arg6: memref<1x1x96xf32, #tpu.memory_space<vmem>>, %arg7: memref<1x32x32xbf16, #tpu.memory_space<vmem>>, %arg8: memref<1x1x32xf32, #tpu.memory_space<vmem>>, %arg9: memref<1x1x32xf32, #tpu.memory_space<vmem>>, %arg10: memref<1x1x32xf32, #tpu.memory_space<vmem>>, %arg11: memref<1x32x128xbf16, #tpu.memory_space<vmem>>, %arg12: memref<1x1x128xf32, #tpu.memory_space<vmem>>, %arg13: memref<1x128x32xbf16, #tpu.memory_space<vmem>>, %arg14: memref<1x1x32xf32, #tpu.memory_space<vmem>>, %arg15: memref<1x32xf32, #tpu.memory_space<vmem>>, %arg16: memref<1x32xf32, #tpu.memory_space<vmem>>, %arg17: memref<2x24x32xf32, #tpu.memory_space<vmem>>, %arg18: memref<2x24x32xf32, #tpu.memory_space<vmem>>) attributes {dimension_semantics = [#tpu.dimension_semantics<parallel>, #tpu.dimension_semantics<arbitrary>], iteration_bounds = array<i64: 1, 2>, scalar_prefetch = 0 : i64, scratch_operands = 1 : i64, tpu.core_type = #tpu.core_type<tc>, window_params = [{transform_indices = @transform_0, window_bounds = array<i64: 2, 24, 32>}, {transform_indices = @transform_1, window_bounds = array<i64: 1, 1, 32>}, {transform_indices = @transform_2, window_bounds = array<i64: 1, 1, 32>}, {transform_indices = @transform_3, window_bounds = array<i64: 1, 32, 96>}, {transform_indices = @transform_4, window_bounds = array<i64: 1, 1, 96>}, {transform_indices = @transform_5, window_bounds = array<i64: 1, 32, 32>}, {transform_indices = @transform_6, window_bounds = array<i64: 1, 1, 32>}, {transform_indices = @transform_7, window_bounds = array<i64: 1, 1, 32>}, {transform_indices = @transform_8, window_bounds = array<i64: 1, 1, 32>}, {transform_indices = @transform_9, window_bounds = array<i64: 1, 32, 128>}, {transform_indices = @transform_10, window_bounds = array<i64: 1, 1, 128>}, {transform_indices = @transform_11, window_bounds = array<i64: 1, 128, 32>}, {transform_indices = @transform_12, window_bounds = array<i64: 1, 1, 32>}, {pipeline_mode = #tpu.pipeline_mode<synchronous>, transform_indices = @transform_13, window_bounds = array<i64: 1, 32>}, {pipeline_mode = #tpu.pipeline_mode<synchronous>, transform_indices = @transform_14, window_bounds = array<i64: 1, 32>}, {transform_indices = @transform_15, window_bounds = array<i64: 2, 24, 32>}]} {
    %c0_i32 = arith.constant 0 : i32
    %0 = arith.cmpi eq, %arg1, %c0_i32 : i32
    %1 = arith.extui %0 : i1 to i32
    %c0_i32_0 = arith.constant 0 : i32
    %2 = arith.cmpi ne, %1, %c0_i32_0 : i32
    scf.if %2 {
      %c0_67 = arith.constant 0 : index
      %c0_68 = arith.constant 0 : index
      %c0_69 = arith.constant 0 : index
      %151 = vector.load %arg2[%c0_67, %c0_68, %c0_69] : memref<2x24x32xf32, #tpu.memory_space<vmem>>, vector<2x24x32xf32>
      %c0_70 = arith.constant 0 : index
      %c0_71 = arith.constant 0 : index
      %c0_72 = arith.constant 0 : index
      %152 = vector.load %arg18[%c0_70, %c0_71, %c0_72] : memref<2x24x32xf32, #tpu.memory_space<vmem>>, vector<2x24x32xf32>
      tpu.vector_store %arg18[%c0_70, %c0_71, %c0_72], %151 {strides = array<i32>} : memref<2x24x32xf32, #tpu.memory_space<vmem>>, vector<2x24x32xf32>,
    } else {
    }
    %c0 = arith.constant 0 : index
    %c0_1 = arith.constant 0 : index
    %c0_2 = arith.constant 0 : index
    %3 = vector.load %arg18[%c0, %c0_1, %c0_2] : memref<2x24x32xf32, #tpu.memory_space<vmem>>, vector<2x24x32xf32>
    %4 = vector.shape_cast %3 : vector<2x24x32xf32> to vector<48x32xf32>
    %5 = tpu.iota {dimensions = array<i32: 2>} : vector<1x1x24xi32>
    %c17_i32 = arith.constant 17 : i32
    %6 = vector.broadcast %c17_i32 : i32 to vector<1x1x24xi32>
    %7 = arith.cmpi slt, %5, %6 : vector<1x1x24xi32>
    %cst = arith.constant 0.000000e+00 : f32
    %cst_3 = arith.constant -1.000000e+30 : f32
    %8 = vector.broadcast %cst : f32 to vector<1x1x24xf32>
    %9 = vector.broadcast %cst_3 : f32 to vector<1x1x24xf32>
    %10 = arith.select %7, %8, %9 : vector<1x1x24xi1>, vector<1x1x24xf32>
    %c0_4 = arith.constant 0 : index
    %c0_5 = arith.constant 0 : index
    %c0_6 = arith.constant 0 : index
    %11 = vector.load %arg3[%c0_4, %c0_5, %c0_6] : memref<1x1x32xf32, #tpu.memory_space<vmem>>, vector<1x1x32xf32>
    %12 = vector.shape_cast %11 : vector<1x1x32xf32> to vector<1x32xf32>
    %c0_7 = arith.constant 0 : index
    %c0_8 = arith.constant 0 : index
    %c0_9 = arith.constant 0 : index
    %13 = vector.load %arg4[%c0_7, %c0_8, %c0_9] : memref<1x1x32xf32, #tpu.memory_space<vmem>>, vector<1x1x32xf32>
    %14 = vector.shape_cast %13 : vector<1x1x32xf32> to vector<1x32xf32>
    %cst_10 = arith.constant dense<0.000000e+00> : vector<48xf32>
    %15 = vector.multi_reduction <add>, %4, %cst_10 [1] : vector<48x32xf32> to vector<48xf32>
    %16 = vector.shape_cast %15 : vector<48xf32> to vector<48x1xf32>
    %cst_11 = arith.constant 3.200000e+01 : f32
    %17 = vector.broadcast %cst_11 : f32 to vector<48x1xf32>
    %18 = arith.divf %16, %17 : vector<48x1xf32>
    %19 = vector.broadcast %18 : vector<48x1xf32> to vector<48x32xf32>
    %20 = arith.subf %4, %19 : vector<48x32xf32>
    %21 = arith.mulf %20, %20 : vector<48x32xf32>
    %cst_12 = arith.constant dense<0.000000e+00> : vector<48xf32>
    %22 = vector.multi_reduction <add>, %21, %cst_12 [1] : vector<48x32xf32> to vector<48xf32>
    %23 = vector.shape_cast %22 : vector<48xf32> to vector<48x1xf32>
    %cst_13 = arith.constant 3.200000e+01 : f32
    %24 = vector.broadcast %cst_13 : f32 to vector<48x1xf32>
    %25 = arith.divf %23, %24 : vector<48x1xf32>
    %cst_14 = arith.constant 9.99999974E-6 : f32
    %26 = vector.broadcast %cst_14 : f32 to vector<48x1xf32>
    %27 = arith.addf %25, %26 : vector<48x1xf32>
    %28 = math.rsqrt %27 : vector<48x1xf32>
    %29 = vector.broadcast %28 : vector<48x1xf32> to vector<48x32xf32>
    %30 = arith.mulf %20, %29 : vector<48x32xf32>
    %31 = vector.broadcast %12 : vector<1x32xf32> to vector<48x32xf32>
    %32 = arith.mulf %30, %31 : vector<48x32xf32>
    %33 = vector.broadcast %14 : vector<1x32xf32> to vector<48x32xf32>
    %34 = arith.addf %32, %33 : vector<48x32xf32>
    %35 = arith.truncf %34 : vector<48x32xf32> to vector<48x32xbf16>
    %c0_15 = arith.constant 0 : index
    %c0_16 = arith.constant 0 : index
    %c0_17 = arith.constant 0 : index
    %36 = vector.load %arg5[%c0_15, %c0_16, %c0_17] : memref<1x32x96xbf16, #tpu.memory_space<vmem>>, vector<1x32x96xbf16>
    %37 = vector.shape_cast %36 : vector<1x32x96xbf16> to vector<32x96xbf16>
    %cst_18 = arith.constant dense<0.000000e+00> : vector<48x96xf32>
    %38 = tpu.matmul %35, %37, %cst_18 {dimension_numbers = #tpu.dot_dimension_numbers<[1], [0], [0], [1], [0, 0, 1, 1], [], []>} : vector<48x32xbf16>, vector<32x96xbf16>, vector<48x96xf32> -> vector<48x96xf32>
    %c0_19 = arith.constant 0 : index
    %c0_20 = arith.constant 0 : index
    %c0_21 = arith.constant 0 : index
    %39 = vector.load %arg6[%c0_19, %c0_20, %c0_21] : memref<1x1x96xf32, #tpu.memory_space<vmem>>, vector<1x1x96xf32>
    %40 = vector.shape_cast %39 : vector<1x1x96xf32> to vector<1x96xf32>
    %41 = vector.broadcast %40 : vector<1x96xf32> to vector<48x96xf32>
    %42 = arith.addf %38, %41 : vector<48x96xf32>
    %43 = arith.truncf %42 : vector<48x96xf32> to vector<48x96xbf16>
    %44 = vector.shape_cast %43 : vector<48x96xbf16> to vector<2x24x96xbf16>
    %45 = vector.extract_strided_slice %44 {offsets = [0, 0, 0], sizes = [2, 24, 8], strides = [1, 1, 1]} : vector<2x24x96xbf16> to vector<2x24x8xbf16>
    %46 = vector.extract_strided_slice %44 {offsets = [0, 0, 8], sizes = [2, 24, 8], strides = [1, 1, 1]} : vector<2x24x96xbf16> to vector<2x24x8xbf16>
    %47 = vector.extract_strided_slice %44 {offsets = [0, 0, 16], sizes = [2, 24, 8], strides = [1, 1, 1]} : vector<2x24x96xbf16> to vector<2x24x8xbf16>
    %48 = vector.extract_strided_slice %44 {offsets = [0, 0, 24], sizes = [2, 24, 8], strides = [1, 1, 1]} : vector<2x24x96xbf16> to vector<2x24x8xbf16>
    %49 = tpu.concatenate %45, %46, %47, %48 in 0 : vector<2x24x8xbf16>, vector<2x24x8xbf16>, vector<2x24x8xbf16>, vector<2x24x8xbf16> -> vector<8x24x8xbf16>
    %50 = vector.extract_strided_slice %44 {offsets = [0, 0, 32], sizes = [2, 24, 8], strides = [1, 1, 1]} : vector<2x24x96xbf16> to vector<2x24x8xbf16>
    %51 = vector.extract_strided_slice %44 {offsets = [0, 0, 40], sizes = [2, 24, 8], strides = [1, 1, 1]} : vector<2x24x96xbf16> to vector<2x24x8xbf16>
    %52 = vector.extract_strided_slice %44 {offsets = [0, 0, 48], sizes = [2, 24, 8], strides = [1, 1, 1]} : vector<2x24x96xbf16> to vector<2x24x8xbf16>
    %53 = vector.extract_strided_slice %44 {offsets = [0, 0, 56], sizes = [2, 24, 8], strides = [1, 1, 1]} : vector<2x24x96xbf16> to vector<2x24x8xbf16>
    %54 = tpu.concatenate %50, %51, %52, %53 in 0 : vector<2x24x8xbf16>, vector<2x24x8xbf16>, vector<2x24x8xbf16>, vector<2x24x8xbf16> -> vector<8x24x8xbf16>
    %55 = vector.extract_strided_slice %44 {offsets = [0, 0, 64], sizes = [2, 24, 8], strides = [1, 1, 1]} : vector<2x24x96xbf16> to vector<2x24x8xbf16>
    %56 = vector.extract_strided_slice %44 {offsets = [0, 0, 72], sizes = [2, 24, 8], strides = [1, 1, 1]} : vector<2x24x96xbf16> to vector<2x24x8xbf16>
    %57 = vector.extract_strided_slice %44 {offsets = [0, 0, 80], sizes = [2, 24, 8], strides = [1, 1, 1]} : vector<2x24x96xbf16> to vector<2x24x8xbf16>
    %58 = vector.extract_strided_slice %44 {offsets = [0, 0, 88], sizes = [2, 24, 8], strides = [1, 1, 1]} : vector<2x24x96xbf16> to vector<2x24x8xbf16>
    %59 = tpu.concatenate %55, %56, %57, %58 in 0 : vector<2x24x8xbf16>, vector<2x24x8xbf16>, vector<2x24x8xbf16>, vector<2x24x8xbf16> -> vector<8x24x8xbf16>
    "tpu.trace_start"() <{level = 10 : i32, message = "bqd,bkd->bqk"}> : () -> ()
    %cst_22 = arith.constant dense<0.000000e+00> : vector<8x24x24xf32>
    %60 = tpu.matmul %49, %54, %cst_22 {dimension_numbers = #tpu.dot_dimension_numbers<[2], [2], [1], [1], [0, 0, 0, 1, 1, 1], [0], [0]>} : vector<8x24x8xbf16>, vector<8x24x8xbf16>, vector<8x24x24xf32> -> vector<8x24x24xf32>
    "tpu.trace_stop"() : () -> ()
    %cst_23 = arith.constant 0.353553385 : f32
    %61 = vector.broadcast %cst_23 : f32 to vector<8x24x24xf32>
    %62 = arith.mulf %60, %61 : vector<8x24x24xf32>
    %63 = vector.broadcast %10 : vector<1x1x24xf32> to vector<8x24x24xf32>
    %64 = arith.addf %62, %63 : vector<8x24x24xf32>
    %cst_24 = arith.constant dense<0xFF800000> : vector<8x24xf32>
    %65 = vector.multi_reduction <maximumf>, %64, %cst_24 [2] : vector<8x24x24xf32> to vector<8x24xf32>
    %66 = vector.shape_cast %65 : vector<8x24xf32> to vector<8x24x1xf32>
    %67 = vector.broadcast %66 : vector<8x24x1xf32> to vector<8x24x24xf32>
    %68 = arith.subf %64, %67 : vector<8x24x24xf32>
    %69 = math.exp %68 : vector<8x24x24xf32>
    %cst_25 = arith.constant dense<0.000000e+00> : vector<8x24xf32>
    %70 = vector.multi_reduction <add>, %69, %cst_25 [2] : vector<8x24x24xf32> to vector<8x24xf32>
    %71 = vector.shape_cast %70 : vector<8x24xf32> to vector<8x24x1xf32>
    %72 = tpu.reciprocal %71 {approx = true} : vector<8x24x1xf32> -> vector<8x24x1xf32>
    %73 = vector.broadcast %72 : vector<8x24x1xf32> to vector<8x24x24xf32>
    %74 = arith.mulf %69, %73 : vector<8x24x24xf32>
    %75 = arith.truncf %74 : vector<8x24x24xf32> to vector<8x24x24xbf16>
    "tpu.trace_start"() <{level = 10 : i32, message = "bqk,bkd->bqd"}> : () -> ()
    %cst_26 = arith.constant dense<0.000000e+00> : vector<8x24x8xf32>
    %76 = tpu.matmul %75, %59, %cst_26 {dimension_numbers = #tpu.dot_dimension_numbers<[2], [1], [1], [2], [0, 0, 0, 1, 1, 2], [0], [0]>} : vector<8x24x24xbf16>, vector<8x24x8xbf16>, vector<8x24x8xf32> -> vector<8x24x8xf32>
    "tpu.trace_stop"() : () -> ()
    %77 = vector.extract_strided_slice %76 {offsets = [0, 0, 0], sizes = [2, 24, 8], strides = [1, 1, 1]} : vector<8x24x8xf32> to vector<2x24x8xf32>
    %78 = vector.extract_strided_slice %76 {offsets = [2, 0, 0], sizes = [2, 24, 8], strides = [1, 1, 1]} : vector<8x24x8xf32> to vector<2x24x8xf32>
    %79 = vector.extract_strided_slice %76 {offsets = [4, 0, 0], sizes = [2, 24, 8], strides = [1, 1, 1]} : vector<8x24x8xf32> to vector<2x24x8xf32>
    %80 = vector.extract_strided_slice %76 {offsets = [6, 0, 0], sizes = [2, 24, 8], strides = [1, 1, 1]} : vector<8x24x8xf32> to vector<2x24x8xf32>
    %81 = tpu.concatenate %77, %78, %79, %80 in 2 : vector<2x24x8xf32>, vector<2x24x8xf32>, vector<2x24x8xf32>, vector<2x24x8xf32> -> vector<2x24x32xf32>
    %82 = vector.shape_cast %81 : vector<2x24x32xf32> to vector<48x32xf32>
    %83 = arith.truncf %82 : vector<48x32xf32> to vector<48x32xbf16>
    %c0_27 = arith.constant 0 : index
    %c0_28 = arith.constant 0 : index
    %c0_29 = arith.constant 0 : index
    %84 = vector.load %arg7[%c0_27, %c0_28, %c0_29] : memref<1x32x32xbf16, #tpu.memory_space<vmem>>, vector<1x32x32xbf16>
    %85 = vector.shape_cast %84 : vector<1x32x32xbf16> to vector<32x32xbf16>
    %cst_30 = arith.constant dense<0.000000e+00> : vector<48x32xf32>
    %86 = tpu.matmul %83, %85, %cst_30 {dimension_numbers = #tpu.dot_dimension_numbers<[1], [0], [0], [1], [0, 0, 1, 1], [], []>} : vector<48x32xbf16>, vector<32x32xbf16>, vector<48x32xf32> -> vector<48x32xf32>
    %c0_31 = arith.constant 0 : index
    %c0_32 = arith.constant 0 : index
    %c0_33 = arith.constant 0 : index
    %87 = vector.load %arg8[%c0_31, %c0_32, %c0_33] : memref<1x1x32xf32, #tpu.memory_space<vmem>>, vector<1x1x32xf32>
    %88 = vector.shape_cast %87 : vector<1x1x32xf32> to vector<1x32xf32>
    %89 = vector.broadcast %88 : vector<1x32xf32> to vector<48x32xf32>
    %90 = arith.addf %86, %89 : vector<48x32xf32>
    %91 = arith.addf %4, %90 : vector<48x32xf32>
    %c0_34 = arith.constant 0 : index
    %c0_35 = arith.constant 0 : index
    %c0_36 = arith.constant 0 : index
    %92 = vector.load %arg9[%c0_34, %c0_35, %c0_36] : memref<1x1x32xf32, #tpu.memory_space<vmem>>, vector<1x1x32xf32>
    %93 = vector.shape_cast %92 : vector<1x1x32xf32> to vector<1x32xf32>
    %c0_37 = arith.constant 0 : index
    %c0_38 = arith.constant 0 : index
    %c0_39 = arith.constant 0 : index
    %94 = vector.load %arg10[%c0_37, %c0_38, %c0_39] : memref<1x1x32xf32, #tpu.memory_space<vmem>>, vector<1x1x32xf32>
    %95 = vector.shape_cast %94 : vector<1x1x32xf32> to vector<1x32xf32>
    %cst_40 = arith.constant dense<0.000000e+00> : vector<48xf32>
    %96 = vector.multi_reduction <add>, %91, %cst_40 [1] : vector<48x32xf32> to vector<48xf32>
    %97 = vector.shape_cast %96 : vector<48xf32> to vector<48x1xf32>
    %cst_41 = arith.constant 3.200000e+01 : f32
    %98 = vector.broadcast %cst_41 : f32 to vector<48x1xf32>
    %99 = arith.divf %97, %98 : vector<48x1xf32>
    %100 = vector.broadcast %99 : vector<48x1xf32> to vector<48x32xf32>
    %101 = arith.subf %91, %100 : vector<48x32xf32>
    %102 = arith.mulf %101, %101 : vector<48x32xf32>
    %cst_42 = arith.constant dense<0.000000e+00> : vector<48xf32>
    %103 = vector.multi_reduction <add>, %102, %cst_42 [1] : vector<48x32xf32> to vector<48xf32>
    %104 = vector.shape_cast %103 : vector<48xf32> to vector<48x1xf32>
    %cst_43 = arith.constant 3.200000e+01 : f32
    %105 = vector.broadcast %cst_43 : f32 to vector<48x1xf32>
    %106 = arith.divf %104, %105 : vector<48x1xf32>
    %cst_44 = arith.constant 9.99999974E-6 : f32
    %107 = vector.broadcast %cst_44 : f32 to vector<48x1xf32>
    %108 = arith.addf %106, %107 : vector<48x1xf32>
    %109 = math.rsqrt %108 : vector<48x1xf32>
    %110 = vector.broadcast %109 : vector<48x1xf32> to vector<48x32xf32>
    %111 = arith.mulf %101, %110 : vector<48x32xf32>
    %112 = vector.broadcast %93 : vector<1x32xf32> to vector<48x32xf32>
    %113 = arith.mulf %111, %112 : vector<48x32xf32>
    %114 = vector.broadcast %95 : vector<1x32xf32> to vector<48x32xf32>
    %115 = arith.addf %113, %114 : vector<48x32xf32>
    %116 = arith.truncf %115 : vector<48x32xf32> to vector<48x32xbf16>
    %c0_45 = arith.constant 0 : index
    %c0_46 = arith.constant 0 : index
    %c0_47 = arith.constant 0 : index
    %117 = vector.load %arg11[%c0_45, %c0_46, %c0_47] : memref<1x32x128xbf16, #tpu.memory_space<vmem>>, vector<1x32x128xbf16>
    %118 = vector.shape_cast %117 : vector<1x32x128xbf16> to vector<32x128xbf16>
    %cst_48 = arith.constant dense<0.000000e+00> : vector<48x128xf32>
    %119 = tpu.matmul %116, %118, %cst_48 {dimension_numbers = #tpu.dot_dimension_numbers<[1], [0], [0], [1], [0, 0, 1, 1], [], []>} : vector<48x32xbf16>, vector<32x128xbf16>, vector<48x128xf32> -> vector<48x128xf32>
    %c0_49 = arith.constant 0 : index
    %c0_50 = arith.constant 0 : index
    %c0_51 = arith.constant 0 : index
    %120 = vector.load %arg12[%c0_49, %c0_50, %c0_51] : memref<1x1x128xf32, #tpu.memory_space<vmem>>, vector<1x1x128xf32>
    %121 = vector.shape_cast %120 : vector<1x1x128xf32> to vector<1x128xf32>
    %122 = vector.broadcast %121 : vector<1x128xf32> to vector<48x128xf32>
    %123 = arith.addf %119, %122 : vector<48x128xf32>
    %124 = arith.mulf %123, %123 : vector<48x128xf32>
    %125 = arith.mulf %123, %124 : vector<48x128xf32>
    %cst_52 = arith.constant 4.471500e-02 : f32
    %126 = vector.broadcast %cst_52 : f32 to vector<48x128xf32>
    %127 = arith.mulf %126, %125 : vector<48x128xf32>
    %128 = arith.addf %123, %127 : vector<48x128xf32>
    %cst_53 = arith.constant 0.797884583 : f32
    %129 = vector.broadcast %cst_53 : f32 to vector<48x128xf32>
    %130 = arith.mulf %129, %128 : vector<48x128xf32>
    %131 = math.tanh %130 : vector<48x128xf32>
    %cst_54 = arith.constant 1.000000e+00 : f32
    %132 = vector.broadcast %cst_54 : f32 to vector<48x128xf32>
    %133 = arith.addf %132, %131 : vector<48x128xf32>
    %cst_55 = arith.constant 5.000000e-01 : f32
    %134 = vector.broadcast %cst_55 : f32 to vector<48x128xf32>
    %135 = arith.mulf %134, %133 : vector<48x128xf32>
    %136 = arith.mulf %123, %135 : vector<48x128xf32>
    %137 = arith.truncf %136 : vector<48x128xf32> to vector<48x128xbf16>
    %c0_56 = arith.constant 0 : index
    %c0_57 = arith.constant 0 : index
    %c0_58 = arith.constant 0 : index
    %138 = vector.load %arg13[%c0_56, %c0_57, %c0_58] : memref<1x128x32xbf16, #tpu.memory_space<vmem>>, vector<1x128x32xbf16>
    %139 = vector.shape_cast %138 : vector<1x128x32xbf16> to vector<128x32xbf16>
    %cst_59 = arith.constant dense<0.000000e+00> : vector<48x32xf32>
    %140 = tpu.matmul %137, %139, %cst_59 {dimension_numbers = #tpu.dot_dimension_numbers<[1], [0], [0], [1], [0, 0, 1, 1], [], []>} : vector<48x128xbf16>, vector<128x32xbf16>, vector<48x32xf32> -> vector<48x32xf32>
    %c0_60 = arith.constant 0 : index
    %c0_61 = arith.constant 0 : index
    %c0_62 = arith.constant 0 : index
    %141 = vector.load %arg14[%c0_60, %c0_61, %c0_62] : memref<1x1x32xf32, #tpu.memory_space<vmem>>, vector<1x1x32xf32>
    %142 = vector.shape_cast %141 : vector<1x1x32xf32> to vector<1x32xf32>
    %143 = vector.broadcast %142 : vector<1x32xf32> to vector<48x32xf32>
    %144 = arith.addf %140, %143 : vector<48x32xf32>
    %145 = arith.addf %91, %144 : vector<48x32xf32>
    %146 = vector.shape_cast %145 : vector<48x32xf32> to vector<2x24x32xf32>
    %c0_63 = arith.constant 0 : index
    %c0_64 = arith.constant 0 : index
    %c0_65 = arith.constant 0 : index
    %147 = vector.load %arg18[%c0_63, %c0_64, %c0_65] : memref<2x24x32xf32, #tpu.memory_space<vmem>>, vector<2x24x32xf32>
    tpu.vector_store %arg18[%c0_63, %c0_64, %c0_65], %146 {strides = array<i32>} : memref<2x24x32xf32, #tpu.memory_space<vmem>>, vector<2x24x32xf32>,
    %c1_i32 = arith.constant 1 : i32
    %148 = arith.cmpi eq, %arg1, %c1_i32 : i32
    %149 = arith.extui %148 : i1 to i32
    %c0_i32_66 = arith.constant 0 : i32
    %150 = arith.cmpi ne, %149, %c0_i32_66 : i32
    scf.if %150 {
      %c0_67 = arith.constant 0 : index
      %c0_68 = arith.constant 0 : index
      %151 = vector.load %arg15[%c0_67, %c0_68] : memref<1x32xf32, #tpu.memory_space<vmem>>, vector<1x32xf32>
      %c0_69 = arith.constant 0 : index
      %c0_70 = arith.constant 0 : index
      %152 = vector.load %arg16[%c0_69, %c0_70] : memref<1x32xf32, #tpu.memory_space<vmem>>, vector<1x32xf32>
      %cst_71 = arith.constant dense<0.000000e+00> : vector<48xf32>
      %153 = vector.multi_reduction <add>, %145, %cst_71 [1] : vector<48x32xf32> to vector<48xf32>
      %154 = vector.shape_cast %153 : vector<48xf32> to vector<48x1xf32>
      %cst_72 = arith.constant 3.200000e+01 : f32
      %155 = vector.broadcast %cst_72 : f32 to vector<48x1xf32>
      %156 = arith.divf %154, %155 : vector<48x1xf32>
      %157 = vector.broadcast %156 : vector<48x1xf32> to vector<48x32xf32>
      %158 = arith.subf %145, %157 : vector<48x32xf32>
      %159 = arith.mulf %158, %158 : vector<48x32xf32>
      %cst_73 = arith.constant dense<0.000000e+00> : vector<48xf32>
      %160 = vector.multi_reduction <add>, %159, %cst_73 [1] : vector<48x32xf32> to vector<48xf32>
      %161 = vector.shape_cast %160 : vector<48xf32> to vector<48x1xf32>
      %cst_74 = arith.constant 3.200000e+01 : f32
      %162 = vector.broadcast %cst_74 : f32 to vector<48x1xf32>
      %163 = arith.divf %161, %162 : vector<48x1xf32>
      %cst_75 = arith.constant 9.99999974E-6 : f32
      %164 = vector.broadcast %cst_75 : f32 to vector<48x1xf32>
      %165 = arith.addf %163, %164 : vector<48x1xf32>
      %166 = math.rsqrt %165 : vector<48x1xf32>
      %167 = vector.broadcast %166 : vector<48x1xf32> to vector<48x32xf32>
      %168 = arith.mulf %158, %167 : vector<48x32xf32>
      %169 = vector.broadcast %151 : vector<1x32xf32> to vector<48x32xf32>
      %170 = arith.mulf %168, %169 : vector<48x32xf32>
      %171 = vector.broadcast %152 : vector<1x32xf32> to vector<48x32xf32>
      %172 = arith.addf %170, %171 : vector<48x32xf32>
      %173 = vector.shape_cast %172 : vector<48x32xf32> to vector<2x24x32xf32>
      %c0_76 = arith.constant 0 : index
      %c0_77 = arith.constant 0 : index
      %c0_78 = arith.constant 0 : index
      %174 = vector.load %arg17[%c0_76, %c0_77, %c0_78] : memref<2x24x32xf32, #tpu.memory_space<vmem>>, vector<2x24x32xf32>
      tpu.vector_store %arg17[%c0_76, %c0_77, %c0_78], %173 {strides = array<i32>} : memref<2x24x32xf32, #tpu.memory_space<vmem>>, vector<2x24x32xf32>,
    } else {
    }
    return
  }
  func.func @transform_0(%arg0: i32, %arg1: i32) -> (i32, i32, i32) {
    %c0_i32 = arith.constant 0 : i32
    %c0_i32_0 = arith.constant 0 : i32
    %c0_i32_1 = arith.constant 0 : i32
    return %arg0, %c0_i32, %c0_i32_0 : i32, i32, i32
  }
  func.func @transform_1(%arg0: i32, %arg1: i32) -> (i32, i32, i32) {
    %c0_i32 = arith.constant 0 : i32
    %c0_i32_0 = arith.constant 0 : i32
    %c0_i32_1 = arith.constant 0 : i32
    return %arg1, %c0_i32, %c0_i32_0 : i32, i32, i32
  }
  func.func @transform_2(%arg0: i32, %arg1: i32) -> (i32, i32, i32) {
    %c0_i32 = arith.constant 0 : i32
    %c0_i32_0 = arith.constant 0 : i32
    %c0_i32_1 = arith.constant 0 : i32
    return %arg1, %c0_i32, %c0_i32_0 : i32, i32, i32
  }
  func.func @transform_3(%arg0: i32, %arg1: i32) -> (i32, i32, i32) {
    %c0_i32 = arith.constant 0 : i32
    %c0_i32_0 = arith.constant 0 : i32
    %c0_i32_1 = arith.constant 0 : i32
    return %arg1, %c0_i32, %c0_i32_0 : i32, i32, i32
  }
  func.func @transform_4(%arg0: i32, %arg1: i32) -> (i32, i32, i32) {
    %c0_i32 = arith.constant 0 : i32
    %c0_i32_0 = arith.constant 0 : i32
    %c0_i32_1 = arith.constant 0 : i32
    return %arg1, %c0_i32, %c0_i32_0 : i32, i32, i32
  }
  func.func @transform_5(%arg0: i32, %arg1: i32) -> (i32, i32, i32) {
    %c0_i32 = arith.constant 0 : i32
    %c0_i32_0 = arith.constant 0 : i32
    %c0_i32_1 = arith.constant 0 : i32
    return %arg1, %c0_i32, %c0_i32_0 : i32, i32, i32
  }
  func.func @transform_6(%arg0: i32, %arg1: i32) -> (i32, i32, i32) {
    %c0_i32 = arith.constant 0 : i32
    %c0_i32_0 = arith.constant 0 : i32
    %c0_i32_1 = arith.constant 0 : i32
    return %arg1, %c0_i32, %c0_i32_0 : i32, i32, i32
  }
  func.func @transform_7(%arg0: i32, %arg1: i32) -> (i32, i32, i32) {
    %c0_i32 = arith.constant 0 : i32
    %c0_i32_0 = arith.constant 0 : i32
    %c0_i32_1 = arith.constant 0 : i32
    return %arg1, %c0_i32, %c0_i32_0 : i32, i32, i32
  }
  func.func @transform_8(%arg0: i32, %arg1: i32) -> (i32, i32, i32) {
    %c0_i32 = arith.constant 0 : i32
    %c0_i32_0 = arith.constant 0 : i32
    %c0_i32_1 = arith.constant 0 : i32
    return %arg1, %c0_i32, %c0_i32_0 : i32, i32, i32
  }
  func.func @transform_9(%arg0: i32, %arg1: i32) -> (i32, i32, i32) {
    %c0_i32 = arith.constant 0 : i32
    %c0_i32_0 = arith.constant 0 : i32
    %c0_i32_1 = arith.constant 0 : i32
    return %arg1, %c0_i32, %c0_i32_0 : i32, i32, i32
  }
  func.func @transform_10(%arg0: i32, %arg1: i32) -> (i32, i32, i32) {
    %c0_i32 = arith.constant 0 : i32
    %c0_i32_0 = arith.constant 0 : i32
    %c0_i32_1 = arith.constant 0 : i32
    return %arg1, %c0_i32, %c0_i32_0 : i32, i32, i32
  }
  func.func @transform_11(%arg0: i32, %arg1: i32) -> (i32, i32, i32) {
    %c0_i32 = arith.constant 0 : i32
    %c0_i32_0 = arith.constant 0 : i32
    %c0_i32_1 = arith.constant 0 : i32
    return %arg1, %c0_i32, %c0_i32_0 : i32, i32, i32
  }
  func.func @transform_12(%arg0: i32, %arg1: i32) -> (i32, i32, i32) {
    %c0_i32 = arith.constant 0 : i32
    %c0_i32_0 = arith.constant 0 : i32
    %c0_i32_1 = arith.constant 0 : i32
    return %arg1, %c0_i32, %c0_i32_0 : i32, i32, i32
  }
  func.func @transform_13(%arg0: i32, %arg1: i32) -> (i32, i32) {
    %c0_i32 = arith.constant 0 : i32
    %c0_i32_0 = arith.constant 0 : i32
    %c0_i32_1 = arith.constant 0 : i32
    return %c0_i32, %c0_i32_0 : i32, i32
  }
  func.func @transform_14(%arg0: i32, %arg1: i32) -> (i32, i32) {
    %c0_i32 = arith.constant 0 : i32
    %c0_i32_0 = arith.constant 0 : i32
    %c0_i32_1 = arith.constant 0 : i32
    return %c0_i32, %c0_i32_0 : i32, i32
  }
  func.func @transform_15(%arg0: i32, %arg1: i32) -> (i32, i32, i32) {
    %c0_i32 = arith.constant 0 : i32
    %c0_i32_0 = arith.constant 0 : i32
    %c0_i32_1 = arith.constant 0 : i32
    return %arg0, %c0_i32, %c0_i32_0 : i32, i32, i32
  }
}

module attributes {stable_mosaic.version = 11 : i64} {
  func.func @_pred_loss_kernel(%arg0: i32, %arg1: memref<1x24x32xbf16, #tpu.memory_space<vmem>>, %arg2: memref<32x48xbf16, #tpu.memory_space<vmem>>, %arg3: memref<1x48xf32, #tpu.memory_space<vmem>>, %arg4: memref<1x24x48xf32, #tpu.memory_space<vmem>>, %arg5: memref<1x24x1xf32, #tpu.memory_space<vmem>>, %arg6: memref<1x1xf32, #tpu.memory_space<vmem>>, %arg7: memref<1x1xf32, #tpu.memory_space<vmem>>, %arg8: memref<1x1xf32, #tpu.memory_space<vmem>>) attributes {dimension_semantics = [#tpu.dimension_semantics<arbitrary>], iteration_bounds = array<i64: 2>, scalar_prefetch = 0 : i64, scratch_operands = 2 : i64, tpu.core_type = #tpu.core_type<tc>, window_params = [{transform_indices = @transform_0, window_bounds = array<i64: 1, 24, 32>}, {pipeline_mode = #tpu.pipeline_mode<synchronous>, transform_indices = @transform_1, window_bounds = array<i64: 32, 48>}, {pipeline_mode = #tpu.pipeline_mode<synchronous>, transform_indices = @transform_2, window_bounds = array<i64: 1, 48>}, {transform_indices = @transform_3, window_bounds = array<i64: 1, 24, 48>}, {transform_indices = @transform_4, window_bounds = array<i64: 1, 24, 1>}, {pipeline_mode = #tpu.pipeline_mode<synchronous>, transform_indices = @transform_5, window_bounds = array<i64: 1, 1>}]} {
    %c0_i32 = arith.constant 0 : i32
    %0 = arith.cmpi eq, %arg0, %c0_i32 : i32
    %1 = arith.extui %0 : i1 to i32
    %c0_i32_0 = arith.constant 0 : i32
    %2 = arith.cmpi ne, %1, %c0_i32_0 : i32
    scf.if %2 {
      %cst_31 = arith.constant 0.000000e+00 : f32
      %41 = vector.broadcast %cst_31 : f32 to vector<1x1xf32>
      %c0_32 = arith.constant 0 : index
      %c0_33 = arith.constant 0 : index
      %42 = vector.load %arg7[%c0_32, %c0_33] : memref<1x1xf32, #tpu.memory_space<vmem>>, vector<1x1xf32>
      tpu.vector_store %arg7[%c0_32, %c0_33], %41 {strides = array<i32>} : memref<1x1xf32, #tpu.memory_space<vmem>>, vector<1x1xf32>,
      %cst_34 = arith.constant 0.000000e+00 : f32
      %43 = vector.broadcast %cst_34 : f32 to vector<1x1xf32>
      %c0_35 = arith.constant 0 : index
      %c0_36 = arith.constant 0 : index
      %44 = vector.load %arg8[%c0_35, %c0_36] : memref<1x1xf32, #tpu.memory_space<vmem>>, vector<1x1xf32>
      tpu.vector_store %arg8[%c0_35, %c0_36], %43 {strides = array<i32>} : memref<1x1xf32, #tpu.memory_space<vmem>>, vector<1x1xf32>,
    } else {
    }
    %c0 = arith.constant 0 : index
    %c0_1 = arith.constant 0 : index
    %c0_2 = arith.constant 0 : index
    %3 = vector.load %arg1[%c0, %c0_1, %c0_2] : memref<1x24x32xbf16, #tpu.memory_space<vmem>>, vector<1x24x32xbf16>
    %4 = vector.shape_cast %3 : vector<1x24x32xbf16> to vector<24x32xbf16>
    %c0_3 = arith.constant 0 : index
    %c0_4 = arith.constant 0 : index
    %5 = vector.load %arg2[%c0_3, %c0_4] : memref<32x48xbf16, #tpu.memory_space<vmem>>, vector<32x48xbf16>
    %cst = arith.constant dense<0.000000e+00> : vector<24x48xf32>
    %6 = tpu.matmul %4, %5, %cst {dimension_numbers = #tpu.dot_dimension_numbers<[1], [0], [0], [1], [0, 0, 1, 1], [], []>} : vector<24x32xbf16>, vector<32x48xbf16>, vector<24x48xf32> -> vector<24x48xf32>
    %c0_5 = arith.constant 0 : index
    %c0_6 = arith.constant 0 : index
    %7 = vector.load %arg3[%c0_5, %c0_6] : memref<1x48xf32, #tpu.memory_space<vmem>>, vector<1x48xf32>
    %8 = vector.broadcast %7 : vector<1x48xf32> to vector<24x48xf32>
    %9 = arith.addf %6, %8 : vector<24x48xf32>
    %c0_7 = arith.constant 0 : index
    %c0_8 = arith.constant 0 : index
    %c0_9 = arith.constant 0 : index
    %10 = vector.load %arg4[%c0_7, %c0_8, %c0_9] : memref<1x24x48xf32, #tpu.memory_space<vmem>>, vector<1x24x48xf32>
    %11 = vector.shape_cast %10 : vector<1x24x48xf32> to vector<24x48xf32>
    %12 = arith.subf %9, %11 : vector<24x48xf32>
    %13 = arith.mulf %12, %12 : vector<24x48xf32>
    %cst_10 = arith.constant dense<0.000000e+00> : vector<24xf32>
    %14 = vector.multi_reduction <add>, %13, %cst_10 [1] : vector<24x48xf32> to vector<24xf32>
    %15 = vector.shape_cast %14 : vector<24xf32> to vector<24x1xf32>
    %cst_11 = arith.constant 4.800000e+01 : f32
    %16 = vector.broadcast %cst_11 : f32 to vector<24x1xf32>
    %17 = arith.divf %15, %16 : vector<24x1xf32>
    %c0_12 = arith.constant 0 : index
    %c0_13 = arith.constant 0 : index
    %c0_14 = arith.constant 0 : index
    %18 = vector.load %arg5[%c0_12, %c0_13, %c0_14] : memref<1x24x1xf32, #tpu.memory_space<vmem>>, vector<1x24x1xf32>
    %19 = vector.shape_cast %18 : vector<1x24x1xf32> to vector<24x1xf32>
    %c0_15 = arith.constant 0 : index
    %c0_16 = arith.constant 0 : index
    %20 = vector.load %arg7[%c0_15, %c0_16] : memref<1x1xf32, #tpu.memory_space<vmem>>, vector<1x1xf32>
    %21 = arith.mulf %17, %19 : vector<24x1xf32>
    %22 = vector.shape_cast %21 : vector<24x1xf32> to vector<1x24x1xf32>
    %cst_17 = arith.constant dense<0.000000e+00> : vector<1xf32>
    %23 = vector.multi_reduction <add>, %22, %cst_17 [1, 2] : vector<1x24x1xf32> to vector<1xf32>
    %24 = vector.shape_cast %23 : vector<1xf32> to vector<1x1x1xf32>
    %25 = vector.extract %24[0, 0, 0] : f32 from vector<1x1x1xf32>
    %26 = vector.broadcast %25 : f32 to vector<1x1xf32>
    %27 = arith.addf %20, %26 : vector<1x1xf32>
    %c0_18 = arith.constant 0 : index
    %c0_19 = arith.constant 0 : index
    %28 = vector.load %arg7[%c0_18, %c0_19] : memref<1x1xf32, #tpu.memory_space<vmem>>, vector<1x1xf32>
    tpu.vector_store %arg7[%c0_18, %c0_19], %27 {strides = array<i32>} : memref<1x1xf32, #tpu.memory_space<vmem>>, vector<1x1xf32>,
    %c0_20 = arith.constant 0 : index
    %c0_21 = arith.constant 0 : index
    %29 = vector.load %arg8[%c0_20, %c0_21] : memref<1x1xf32, #tpu.memory_space<vmem>>, vector<1x1xf32>
    %30 = vector.shape_cast %19 : vector<24x1xf32> to vector<1x24x1xf32>
    %cst_22 = arith.constant dense<0.000000e+00> : vector<1xf32>
    %31 = vector.multi_reduction <add>, %30, %cst_22 [1, 2] : vector<1x24x1xf32> to vector<1xf32>
    %32 = vector.shape_cast %31 : vector<1xf32> to vector<1x1x1xf32>
    %33 = vector.extract %32[0, 0, 0] : f32 from vector<1x1x1xf32>
    %34 = vector.broadcast %33 : f32 to vector<1x1xf32>
    %35 = arith.addf %29, %34 : vector<1x1xf32>
    %c0_23 = arith.constant 0 : index
    %c0_24 = arith.constant 0 : index
    %36 = vector.load %arg8[%c0_23, %c0_24] : memref<1x1xf32, #tpu.memory_space<vmem>>, vector<1x1xf32>
    tpu.vector_store %arg8[%c0_23, %c0_24], %35 {strides = array<i32>} : memref<1x1xf32, #tpu.memory_space<vmem>>, vector<1x1xf32>,
    %c0_25 = arith.constant 0 : index
    %c0_26 = arith.constant 0 : index
    %37 = vector.load %arg7[%c0_25, %c0_26] : memref<1x1xf32, #tpu.memory_space<vmem>>, vector<1x1xf32>
    %c0_27 = arith.constant 0 : index
    %c0_28 = arith.constant 0 : index
    %38 = vector.load %arg8[%c0_27, %c0_28] : memref<1x1xf32, #tpu.memory_space<vmem>>, vector<1x1xf32>
    %39 = arith.divf %37, %38 : vector<1x1xf32>
    %c0_29 = arith.constant 0 : index
    %c0_30 = arith.constant 0 : index
    %40 = vector.load %arg6[%c0_29, %c0_30] : memref<1x1xf32, #tpu.memory_space<vmem>>, vector<1x1xf32>
    tpu.vector_store %arg6[%c0_29, %c0_30], %39 {strides = array<i32>} : memref<1x1xf32, #tpu.memory_space<vmem>>, vector<1x1xf32>,
    return
  }
  func.func @transform_0(%arg0: i32) -> (i32, i32, i32) {
    %c0_i32 = arith.constant 0 : i32
    %c0_i32_0 = arith.constant 0 : i32
    %c0_i32_1 = arith.constant 0 : i32
    return %arg0, %c0_i32, %c0_i32_0 : i32, i32, i32
  }
  func.func @transform_1(%arg0: i32) -> (i32, i32) {
    %c0_i32 = arith.constant 0 : i32
    %c0_i32_0 = arith.constant 0 : i32
    %c0_i32_1 = arith.constant 0 : i32
    return %c0_i32, %c0_i32_0 : i32, i32
  }
  func.func @transform_2(%arg0: i32) -> (i32, i32) {
    %c0_i32 = arith.constant 0 : i32
    %c0_i32_0 = arith.constant 0 : i32
    %c0_i32_1 = arith.constant 0 : i32
    return %c0_i32, %c0_i32_0 : i32, i32
  }
  func.func @transform_3(%arg0: i32) -> (i32, i32, i32) {
    %c0_i32 = arith.constant 0 : i32
    %c0_i32_0 = arith.constant 0 : i32
    %c0_i32_1 = arith.constant 0 : i32
    return %arg0, %c0_i32, %c0_i32_0 : i32, i32, i32
  }
  func.func @transform_4(%arg0: i32) -> (i32, i32, i32) {
    %c0_i32 = arith.constant 0 : i32
    %c0_i32_0 = arith.constant 0 : i32
    %c0_i32_1 = arith.constant 0 : i32
    return %arg0, %c0_i32, %c0_i32_0 : i32, i32, i32
  }
  func.func @transform_5(%arg0: i32) -> (i32, i32) {
    %c0_i32 = arith.constant 0 : i32
    %c0_i32_0 = arith.constant 0 : i32
    %c0_i32_1 = arith.constant 0 : i32
    return %c0_i32, %c0_i32_0 : i32, i32
  }
}

</mosaic_0001>

<bundles_post_ra>
// kernel: mae_forward.5
= control target key start
LH: loop header
LB: loop body
LE: loop exit
PB: predicated region body
PF: predicated region fallthrough
CT: control target
= control target key end

     0   :  { %vm63_vm0 = vcmask 392192   ;;  %vm127_vm1 = vcmask 261120   ;;  %s235_s1 = inlined_call_operand.vmem [shape: bf16[48,32], index: 1, kind: input, shape index: {}]   ;;  %s236_s0 = inlined_call_operand.vmem [shape: bf16[32,48], index: 0, kind: input, shape index: {}]   ;;  %s237_s2 = inlined_call_operand.vmem [shape: f32[1,32], index: 2, kind: input, shape index: {}]   ;;  %s238_s3 = inlined_call_operand.vmem [shape: f32[32,32], index: 3, kind: input, shape index: {}]   ;;  %s239_s4 = inlined_call_operand.vmem [shape: f32[32,32], index: 4, kind: output, shape index: {}]  }
   0x1   :  { %v159_v0 = vld [vmem:[%s235_s1 + $0x10] sm:$0xff]   ;;  %v160_v1 = vld [vmem:[%s235_s1 + $0x8] sm:$0xff]   ;;  %v162_v2 = vld [vmem:[%s236_s0] sm:$0xff]  }
   0x2   :  { %149 = vmatprep.subr.bf16.mxu0 %v159_v0  ;;  %v161_v3 = vld [vmem:[%s235_s1] sm:$0xff]   ;;  %155 = vmatprep.mubr.msk.bf16.mxu0 %vm63_vm0, %v162_v2  ;;  %v163_v4 = vld [vmem:[%s236_s0 + $0x8] sm:$0xff]   ;;  %v121_v7 = vld [vmem:[%s238_s3 + $0x10] sm:$0xff] }
   0x3   :  { %150 = vmatpush3.bf16.msra.mxu0 %v159_v0  ;;  %v136_v5 = vld [vmem:[%s237_s2] ss:$0 sm:$0xff]  ;;  %v122_v14 = vld [vmem:[%s238_s3 + $0x18] sm:$0xff]  ;;  %v120_v18 = vld [vmem:[%s238_s3 + $0x8] sm:$0xff] }
   0x4   :  { %151 = vmatprep.subr.bf16.mxu0 %v160_v1  ;;  %v119_v10 = vld [vmem:[%s238_s3] sm:$0xff] }
   0x7   :  { %152 = vmatpush3.bf16.msra.mxu0 %v160_v1 }
   0x8   :  { %153 = vmatprep.subr.bf16.mxu0 %v161_v3 }
   0xb   :  { %154 = vmatpush3.bf16.msra.mxu0 %v161_v3 }
   0xe   :  { %156 = vmatmul.mubr.msk.bf16.vlgmr.msra.gmra.mxu0 %vm63_vm0, %v163_v4 }
  0xce   :  { %v157_v6 = vpop.f32.mrf.mxu0 }
  0xcf   :  { %v113_v8 = vadd.f32 %v157_v6, %v136_v5 }
  0xd0   :  { %v104_v9 = vpop.f32.mrf.mxu0 }
  0xd1   :  { %v125_v11 = vadd.f32 %v121_v7, %v113_v8  ;;  %v105_v12 = vadd.f32 %v136_v5, %v104_v9 }
  0xd2   :  { %v158_v13 = vpop.f32.mrf.mxu0 }
  0xd3   :  { %130 = vst.msk [vmem:[%s239_s4 + $0x10] sm:$0xff] %vm127_vm1, %v125_v11  ;;  %v123_v15 = vadd.f32 %v119_v10, %v105_v12  ;;  %v116_v16 = vadd.f32 %v158_v13, %v136_v5 }
  0xd4   :  { %v107_v17 = vpop.f32.mrf.mxu0 }
  0xd5   :  { %128 = vst.msk [vmem:[%s239_s4] sm:$0xff] %vm127_vm1, %v123_v15  ;;  %v126_v19 = vadd.f32 %v122_v14, %v116_v16  ;;  %v108_v20 = vadd.f32 %v136_v5, %v107_v17 }
  0xd7   :  { %131 = vst.msk [vmem:[%s239_s4 + $0x18] sm:$0xff] %vm127_vm1, %v126_v19  ;;  %v124_v21 = vadd.f32 %v120_v18, %v108_v20 }
  0xd9   :  { %129 = vst.msk [vmem:[%s239_s4 + $0x8] sm:$0xff] %vm127_vm1, %v124_v21 }

// kernel: mae_forward.7
= control target key start
LH: loop header
LB: loop body
LE: loop exit
PB: predicated region body
PF: predicated region fallthrough
CT: control target
= control target key end

     0   :  { %v117_v0 = vmov 0.0   ;;  %vm118_vm0 = vmmov 0   ;;  %vm45_vm1 = vcmask 261120   ;;  %s157_s1 = inlined_call_operand.vmem [shape: bf16[32,32], index: 1, kind: input, shape index: {}]   ;;  %s158_s0 = inlined_call_operand.vmem [shape: bf16[16,32], index: 0, kind: input, shape index: {}]   ;;  %s159_s2 = inlined_call_operand.vmem [shape: f32[1,32], index: 2, kind: input, shape index: {}]   ;;  %s160_s3 = inlined_call_operand.vmem [shape: f32[16,32], index: 3, kind: output, shape index: {}]  }
   0x1   :  { %104 = vmatprep.subr.bf16.mxu0 %v117_v0  ;;  %v114_v1 = vld [vmem:[%s157_s1 + $0x8] sm:$0xff]   ;;  %108 = vmatprep.mubr.msk.bf16.mxu0 %vm118_vm0, %v117_v0  ;;  %v115_v2 = vld [vmem:[%s157_s1] sm:$0xff]  }
   0x2   :  { %105 = vmatpush3.bf16.msra.mxu0 %v114_v1  ;;  %v116_v3 = vld [vmem:[%s158_s0] sm:$0xff]  }
   0x3   :  { %106 = vmatprep.subr.bf16.mxu0 %v117_v0  ;;  %v96_v4 = vld [vmem:[%s159_s2] ss:$0 sm:$0xff] }
   0x6   :  { %107 = vmatpush3.bf16.msra.mxu0 %v115_v2 }
   0x9   :  { %109 = vmatmul.mubr.msk.bf16.vlgmr.msra.gmra.mxu0 %vm45_vm1, %v116_v3 }
  0xc9   :  { %v83_v5 = vpop.f32.mrf.mxu0 }
  0xca   :  { %v84_v6 = vadd.f32 %v96_v4, %v83_v5 }
  0xcb   :  { %v110_v7 = vpop.f32.mrf.mxu0 }
  0xcc   :  { %90 = vst.msk [vmem:[%s160_s3] sm:$0xff] %vm45_vm1, %v84_v6 }
  0xcd   :  { %v86_v8 = vpop.f32.mrf.mxu0 }
  0xce   :  { %v87_v9 = vadd.f32 %v96_v4, %v86_v8 }
  0xcf   :  { %v111_v10 = vpop.f32.mrf.mxu0 }
  0xd0   :  { %91 = vst.msk [vmem:[%s160_s3 + $0x8] sm:$0xff] %vm45_vm1, %v87_v9 }

// kernel: mae_forward.6
= control target key start
LH: loop header
LB: loop body
LE: loop exit
PB: predicated region body
PF: predicated region fallthrough
CT: control target
= control target key end

     0   :  { %s2821_s18 = smov 0   ;;  %s2823_s19 = smov 0   ;;  %s3263_s0 = inlined_call_operand.vmem [shape: f32[2,8,32], index: 0, kind: input, shape index: {}]   ;;  %s3264_s1 = inlined_call_operand.vmem [shape: f32[2,1,32], index: 1, kind: input, shape index: {}]   ;;  %s3265_s2 = inlined_call_operand.vmem [shape: f32[2,1,32], index: 2, kind: input, shape index: {}]   ;;  %s3266_s3 = inlined_call_operand.vmem [shape: bf16[2,32,96], index: 3, kind: input, shape index: {}]   ;;  %s3267_s4 = inlined_call_operand.vmem [shape: f32[2,1,96], index: 4, kind: input, shape index: {}]   ;;  %s3268_s5 = inlined_call_operand.vmem [shape: bf16[2,32,32], index: 5, kind: input, shape index: {}]   ;;  %s3269_s6 = inlined_call_operand.vmem [shape: f32[2,1,32], index: 6, kind: input, shape index: {}]   ;;  %s3270_s7 = inlined_call_operand.vmem [shape: f32[2,1,32], index: 7, kind: input, shape index: {}]   ;;  %s3271_s8 = inlined_call_operand.vmem [shape: f32[2,1,32], index: 8, kind: input, shape index: {}]   ;;  %s3272_s9 = inlined_call_operand.vmem [shape: bf16[2,32,128], index: 9, kind: input, shape index: {}]   ;;  %s3273_s10 = inlined_call_operand.vmem [shape: f32[2,1,128], index: 10, kind: input, shape index: {}]   ;;  %s3274_s11 = inlined_call_operand.vmem [shape: bf16[2,128,32], index: 11, kind: input, shape index: {}]   ;;  %s3275_s12 = inlined_call_operand.vmem [shape: f32[2,1,32], index: 12, kind: input, shape index: {}]   ;;  %s3276_s13 = inlined_call_operand.vmem [shape: f32[1,32], index: 13, kind: input, shape index: {}]   ;;  %s3277_s14 = inlined_call_operand.vmem [shape: f32[1,32], index: 14, kind: input, shape index: {}]   ;;  %s3278_s15 = inlined_call_operand.vmem [shape: f32[2,8,32], index: 15, kind: output, shape index: {}]  }
   0x1   :  { %3283 = sst [smem:[#allocation7_spill]] %s3266_s3  ;;  %s2825_s20 = smov 0  }
   0x2   :  { %3284 = sst [smem:[#allocation8_spill]] %s3268_s5 }
   0x3   :  { %3285 = sst [smem:[#allocation9_spill]] %s3276_s13 }
   0x4   :  { %3286 = sst [smem:[#allocation10_spill]] %s3277_s14 }
   0x5   :  { %3287 = sst [smem:[#allocation11_spill]] %s3278_s15 }
   0x6 LB: > { %3288 = sst [smem:[#allocation3_spill]] %s2724_s19  ;;  %s34_s21 = sadd.s32 1, %s2724_s19  ;;  %s2728_s20 = sphi %s2825_s20, %s25_s20   ;;  %s2724_s19 = sphi %s2823_s19, %s3304_s19   ;;  %s2720_s18 = sphi %s2821_s18, %s3303_s18  }
   0x7   : > { %3289 = sst [smem:[#allocation4_spill]] %s2728_s20  ;;  %p2332_p0 = scmp.ge.s32.totalorder %s2728_s20, 1 }
   0x8   : > { %p35_p1 = scmp.ge.s32.totalorder %s34_s21, 2  ;;  %p554_p2 = scmp.lt.s32.totalorder %s2728_s20, 3 }
   0xa   : > { %s3306_s21 = smov (%p35_p1, %s34_s21), 0  ;;  %p555_p3 = pnand %p2332_p0, %p554_p2 }
   0xb   : > { %3290 = sst [smem:[#allocation5_spill]] %s3306_s21 }
   0xc   : > { %558 = sbr.rel (%p555_p3) target bundleno = 2943 (0xb7f), region = 80 }
  0x11   : > { %p652_p4 = scmp.lt.s32.totalorder %s2720_s18, 1  ;;  %s3291_s3 = sld [smem:[#allocation7_spill]] }
  0x12   : > { %s3292_s5 = sld [smem:[#allocation8_spill]]  ;;  %p2341_p5 = scmp.ne.s32.totalorder %s2720_s18, 0 }
  0x13   : > { %s2843_s22 = scalar_select %p652_p4, %s2720_s18, 1 }
  0x15   : > { %s2398_s29 = sshll.u32 %s2843_s22, 4  ;;  %s676_s13 = scalar_lea.vmem %s3270_s7, %s2843_s22 }
  0x16   : > { %s679_s17 = scalar_lea.vmem %s3271_s8, %s2843_s22  ;;  %s695_s30 = scalar_lea.vmem %s3275_s12, %s2843_s22 }
  0x17   : > { %s2861_s21 = scalar_lea.vmem %s3291_s3, %s2398_s29  ;;  %s2883_s3 = scalar_lea.vmem %s3272_s9, %s2398_s29 }
  0x18   : > { %s2866_s15 = scalar_lea.vmem %s3292_s5, %s2398_s29  ;;  %s687_s5 = scalar_lea.vmem %s3273_s10, %s2843_s22 }
  0x19   : > { %3293 = sst [smem:[#allocation6_spill]] %s2866_s15  ;;  %s2401_s15 = sshll.u32 %s2843_s22, 6 }
  0x1a   : > { %s2893_s26 = scalar_lea.vmem %s3274_s11, %s2401_s15  ;;  %706 = sbr.rel (%p2341_p5) target bundleno = 33 (0x21), region = 84 }
  0x1f   : > { %v707_v0 = vld [vmem:[%s3263_s0] sm:$0xff]  ;;  %vm709_vm0 = vcmask 261120   ;;  %v708_v1 = vld [vmem:[%s3263_s0 + $0x8] sm:$0xff] }
  0x20   : > { %710 = vst.msk [vmem:[#allocation2] sm:$0xff] %vm709_vm0, %v707_v0  ;;  %711 = vst.msk [vmem:[#allocation2 + $0x8] sm:$0xff] %vm709_vm0, %v708_v1 }
  0x21 PF: > { %vm720_vm1 = vcmask 261120   ;;  %v2644_v16 = vld [vmem:[%s2861_s21 + $0x8] sm:$0xff]   ;;  %v2730_v17 = vmov 0.0   ;;  %vm2731_vm2 = vmmov 0   ;;  %v2645_v18 = vld [vmem:[%s2861_s21] sm:$0xff]   ;;  %s3294_s19 = scalar_lea.vmem %s3264_s1, %s2843_s22  ;;  %s3295_s25 = scalar_lea.vmem %s3265_s2, %s2843_s22  ;;  %vm852_vm3 = vcmask 64512  }
  0x22   : > { %2454 = vmatprep.subr.bf16.mxu0 %v2730_v17  ;;  %2458 = vmatprep.mubr.msk.bf16.mxu0 %vm2731_vm2, %v2730_v17  ;;  %v2342_v27 = vld [vmem:[%s3294_s19] ss:$0 sm:$0xff]  ;;  %s3296_s16 = scalar_lea.vmem %s3267_s4, %s2843_s22  ;;  %s2732_s29 = smov 120   ;;  %vm1364_vm5 = vcmask 1043456   ;;  %vm1770_vm6 = vcmask 130048   ;;  %vm1773_vm7 = vcmask 195584  }
  0x23   : > { %2455 = vmatpush3.bf16.msra.mxu0 %v2644_v16  ;;  %2474 = vmatprep.subr.bf16.mxu1 %v2730_v17  ;;  %v2343_v31 = vld [vmem:[%s3295_s25] ss:$0 sm:$0xff]  ;;  %s2733_s23 = smov 104   ;;  %s2734_s24 = smov 96  }
  0x24   : > { %2456 = vmatprep.subr.bf16.mxu0 %v2730_v17  ;;  %2476 = vmatprep.mubr.msk.bf16.mxu1 %vm2731_vm2, %v2730_v17  ;;  %v2344_v36 = vld [vmem:[%s3296_s16] ss:$0 sm:$0xff]  ;;  %s2735_s15 = smov 112   ;;  %s2737_s21 = smov 64  }
  0x25   : > { %s3297_s19 = sld [smem:[#allocation6_spill]]  ;;  %s2738_s20 = smov 8  }
  0x26   : > { %s2739_s14 = smov 16   ;;  %s2740_s25 = smov 24  }
  0x27   : > { %v2906_v2 = vld [vmem:[#allocation2] sm:$0xff]  ;;  %v2908_v3 = vld [vmem:[#allocation2 + $0x8] sm:$0xff]  ;;  %2457 = vmatpush3.bf16.msra.mxu0 %v2645_v18  ;;  %s3298_s16 = scalar_lea.vmem %s3269_s6, %s2843_s22  ;;  %p2391_p6 = scmp.ne.s32.totalorder %s2720_s18, 1 }
  0x28   : > { %v721_v4 = vsel %vm720_vm1, %v2906_v2, 0.0  ;;  %v724_v5 = vsel %vm720_vm1, %v2908_v3, 0.0  ;;  %2462 = vmatprep.subr.bf16.mxu0 %v2730_v17 }
  0x29   : > { %722 = vadd.xlane.f32.xlu0 %v721_v4 }
  0x2d   : > { %725 = vadd.xlane.f32.xlu0 %v724_v5 }
  0xb2   : > { %v723_v6 = vpop.xlane.xlu0 %722 }
  0xb3   : > { %v728_v7 = vmul.f32 0.03125, %v723_v6 }
  0xb5   : > { %v730_v8 = vsub.f32 %v2906_v2, %v728_v7 }
  0xb6   : > { %v726_v9 = vpop.xlane.xlu0 %725 }
  0xb7   : > { %v729_v10 = vmul.f32 0.03125, %v726_v9  ;;  %v732_v11 = vmul.f32 %v730_v8, %v730_v8 }
  0xb9   : > { %v731_v12 = vsub.f32 %v2908_v3, %v729_v10  ;;  %v734_v13 = vsel %vm720_vm1, %v732_v11, 0.0  ;;  %v714_v11 = vlaneseq }
  0xba   : > { %735 = vadd.xlane.f32.xlu1 %v734_v13 }
  0xbb   : > { %v733_v14 = vmul.f32 %v731_v12, %v731_v12 }
  0xbd   : > { %v737_v15 = vsel %vm720_vm1, %v733_v14, 0.0  ;;  %v2736_v14 = vmov -1e+30  }
  0xbe   : > { %738 = vadd.xlane.f32.xlu1 %v737_v15 }
 0x143   : > { %v736_v19 = vpop.xlane.xlu1 %735 }
 0x144   : > { %v740_v20 = vmul.f32 0.03125, %v736_v19 }
 0x146   : > { %v742_v21 = vadd.f32 1e-05, %v740_v20 }
 0x147   : > { %v739_v22 = vpop.xlane.xlu1 %738 }
 0x148   : > { %2658 = vrsqrt.f32 %v742_v21  ;;  %v741_v23 = vmul.f32 0.03125, %v739_v22 }
 0x14a   : > { %v743_v24 = vadd.f32 1e-05, %v741_v23 }
 0x14c   : > { %2660 = vrsqrt.f32 %v743_v24 }
 0x155   : > { %v2659_v25 = vpop.eup %2658 }
 0x156   : > { %v746_v26 = vmul.f32 %v2659_v25, %v730_v8 }
 0x158   : > { %v754_v30 = vmul.f32 %v2342_v27, %v746_v26 }
 0x159   : > { %v2661_v28 = vpop.eup %2660 }
 0x15a   : > { %v747_v29 = vmul.f32 %v2661_v28, %v731_v12  ;;  %v762_v33 = vadd.f32 %v2343_v31, %v754_v30  ;;  %v715_v12 = vand.u32 127, %v714_v11 }
 0x15c   : > { %v755_v32 = vmul.f32 %v2342_v27, %v747_v29  ;;  %vm716_vm4 = vcmp.lt.s32.totalorder %v715_v12, 5 }
 0x15d   : > { %v3026_v15 = vsel %vm716_vm4, 0.0, %v2736_v14 }
 0x15e   : > { %v763_v34 = vadd.f32 %v2343_v31, %v755_v32 }
 0x160   : > { %v764_v35 = vpack.c.bf16 %v763_v34, %v762_v33 }
 0x162   : > { %2459 = vmatmul.mubr.msk.bf16.vlgmr.msra.gmra.mxu0 %vm720_vm1, %v764_v35 }
 0x163   : > { %2464 = vmatprep.mubr.msk.bf16.mxu0 %vm2731_vm2, %v2730_v17 }
 0x222   : > { %v825_v37 = vpop.f32.mrf.mxu0 }
 0x223   : > { %v826_v38 = vadd.f32 %v2344_v36, %v825_v37 }
 0x224   : > { %v2460_v39 = vpop.f32.mrf.mxu0 }
 0x225   : > { %v2946_v40 = vpack.c.bf16 %v826_v38, %v826_v38 }
 0x226   : > { %v828_v41 = vpop.f32.mrf.mxu0 }
 0x227   : > { %v829_v42 = vadd.f32 %v2344_v36, %v828_v41  ;;  %838 = vrot.lane.b32.xlu0 %v2946_v40, %s2732_s29 }
 0x228   : > { %v2461_v43 = vpop.f32.mrf.mxu0 }
 0x229   : > { %v2949_v44 = vpack.c.bf16 %v829_v42, %v829_v42 }
 0x22b   : > { %846 = vrot.lane.b32.xlu0 %v2946_v40, %s2733_s23  ;;  %840 = vrot.lane.b32.xlu1 %v2949_v44, %s2732_s29 }
 0x22f   : > { %850 = vrot.lane.b32.xlu0 %v2946_v40, %s2734_s24  ;;  %842 = vrot.lane.b32.xlu1 %v2946_v40, %s2735_s15 }
 0x233   : > { %844 = vrot.lane.b32.xlu1 %v2949_v44, %s2735_s15 }
 0x237   : > { %848 = vrot.lane.b32.xlu1 %v2949_v44, %s2733_s23 }
 0x23b   : > { %899 = vrot.lane.b32.xlu1 %v2949_v44, %s2734_s24 }
 0x299   : > { %v839_v45 = vpop.permute.xlu0 %838 }
 0x29a   : > { %v2960_v46 = vcombine.low %v839_v45, %v839_v45 }
 0x29c   : > { %949 = vrot.lane.b32.xlu0 %v2960_v46, %s2734_s24 }
 0x29d   : > { %v847_v47 = vpop.permute.xlu0 %846  ;;  %v841_v48 = vpop.permute.xlu1 %840 }
 0x29e   : > { %v2964_v49 = vcombine.low %v841_v48, %v841_v48  ;;  %v2974_v55 = vcombine.low %v847_v47, %v847_v47 }
 0x2a0   : > { %999 = vrot.lane.b32.xlu1 %v2964_v49, %s2734_s24 }
 0x2a1   : > { %v851_v50 = vpop.permute.xlu0 %850  ;;  %v843_v51 = vpop.permute.xlu1 %842 }
 0x2a2   : > { %v857_v52 = vsel %vm852_vm3, %v851_v50, 0  ;;  %v2969_v53 = vcombine.low %v843_v51, %v843_v51 }
 0x2a3   : > { %2463 = vmatpush3.bf16.xpose.msra.mxu0 %v857_v52 }
 0x2a4   : > { %1049 = vrot.lane.b32.xlu0 %v2969_v53, %s2734_s24  ;;  %2468 = vmatprep.subr.bf16.mxu0 %v2730_v17 }
 0x2a5   : > { %v845_v54 = vpop.permute.xlu1 %844 }
 0x2a6   : > { %v2976_v56 = vcombine.low %v845_v54, %v845_v54 }
 0x2a8   : > { %1149 = vrot.lane.b32.xlu0 %v2974_v55, %s2734_s24  ;;  %1099 = vrot.lane.b32.xlu1 %v2976_v56, %s2734_s24 }
 0x2a9   : > { %v849_v57 = vpop.permute.xlu1 %848 }
 0x2aa   : > { %v2982_v58 = vcombine.low %v849_v57, %v849_v57  ;;  %2465 = vmatmul.mubr.msk.bf16.vlgmr.msra.gmra.mxu0 %vm852_vm3, %v2946_v40 }
 0x2ab   : > { %2470 = vmatprep.mubr.msk.bf16.mxu0 %vm2731_vm2, %v2730_v17 }
 0x2ac   : > { %1199 = vrot.lane.b32.xlu1 %v2982_v58, %s2734_s24 }
 0x2ad   : > { %v900_v59 = vpop.permute.xlu1 %899 }
 0x2ae   : > { %v905_v60 = vsel %vm852_vm3, %v900_v59, 0 }
 0x2af   : > { %2469 = vmatpush3.bf16.xpose.msra.mxu0 %v905_v60 }
 0x2b0   : > { %2480 = vmatprep.subr.bf16.mxu0 %v2730_v17 }
 0x2b6   : > { %2471 = vmatmul.mubr.msk.bf16.vlgmr.msra.gmra.mxu0 %vm852_vm3, %v2949_v44 }
 0x2b7   : > { %2482 = vmatprep.mubr.msk.bf16.mxu0 %vm2731_vm2, %v2730_v17 }
 0x30e   : > { %v950_v61 = vpop.permute.xlu0 %949 }
 0x30f   : > { %v955_v62 = vsel %vm852_vm3, %v950_v61, 0 }
 0x310   : > { %2475 = vmatpush3.bf16.xpose.msra.mxu1 %v955_v62 }
 0x311   : > { %2486 = vmatprep.subr.bf16.mxu1 %v2730_v17 }
 0x312   : > { %v1000_v63 = vpop.permute.xlu1 %999 }
 0x313   : > { %v1005_v0 = vsel %vm852_vm3, %v1000_v63, 0 }
 0x314   : > { %2481 = vmatpush3.bf16.xpose.msra.mxu0 %v1005_v0 }
 0x315   : > { %2492 = vmatprep.subr.bf16.mxu0 %v2730_v17 }
 0x316   : > { %v1050_v1 = vpop.permute.xlu0 %1049 }
 0x317   : > { %v1055_v4 = vsel %vm852_vm3, %v1050_v1, 0  ;;  %2477 = vmatmul.mubr.msk.bf16.vlgmr.msra.gmra.mxu1 %vm852_vm3, %v839_v45 }
 0x318   : > { %2487 = vmatpush3.bf16.xpose.msra.mxu1 %v1055_v4  ;;  %2488 = vmatprep.mubr.msk.bf16.mxu1 %vm2731_vm2, %v2730_v17 }
 0x319   : > { %2498 = vmatprep.subr.bf16.mxu1 %v2730_v17 }
 0x31a   : > { %v1100_v5 = vpop.permute.xlu1 %1099  ;;  %v1150_v7 = vpop.permute.xlu0 %1149 }
 0x31b   : > { %v1105_v6 = vsel %vm852_vm3, %v1100_v5, 0  ;;  %2483 = vmatmul.mubr.msk.bf16.vlgmr.msra.gmra.mxu0 %vm852_vm3, %v841_v48  ;;  %v1155_v8 = vsel %vm852_vm3, %v1150_v7, 0 }
 0x31c   : > { %2493 = vmatpush3.bf16.xpose.msra.mxu0 %v1105_v6  ;;  %2494 = vmatprep.mubr.msk.bf16.mxu0 %vm2731_vm2, %v2730_v17 }
 0x31d   : > { %2504 = vmatprep.subr.bf16.mxu0 %v2730_v17 }
 0x31e   : > { %v1200_v9 = vpop.permute.xlu1 %1199 }
 0x31f   : > { %2489 = vmatmul.mubr.msk.bf16.vlgmr.msra.gmra.mxu1 %vm852_vm3, %v843_v51  ;;  %v1205_v10 = vsel %vm852_vm3, %v1200_v9, 0 }
 0x320   : > { %2499 = vmatpush3.bf16.xpose.msra.mxu1 %v1155_v8  ;;  %2500 = vmatprep.mubr.msk.bf16.mxu1 %vm2731_vm2, %v2730_v17 }
 0x321   : > { %2510 = vmatprep.subr.bf16.mxu1 %v2730_v17 }
 0x323   : > { %2495 = vmatmul.mubr.msk.bf16.vlgmr.msra.gmra.mxu0 %vm852_vm3, %v845_v54 }
 0x324   : > { %2505 = vmatpush3.bf16.xpose.msra.mxu0 %v1205_v10  ;;  %2506 = vmatprep.mubr.msk.bf16.mxu0 %vm2731_vm2, %v2730_v17 }
 0x325   : > { %2516 = vmatprep.subr.bf16.mxu0 %v2730_v17 }
 0x327   : > { %2501 = vmatmul.mubr.msk.bf16.vlgmr.msra.gmra.mxu1 %vm852_vm3, %v847_v47 }
 0x328   : > { %2512 = vmatprep.mubr.msk.bf16.mxu1 %vm2731_vm2, %v2730_v17 }
 0x32b   : > { %2507 = vmatmul.mubr.msk.bf16.vlgmr.msra.gmra.mxu0 %vm852_vm3, %v849_v57 }
 0x32c   : > { %2518 = vmatprep.mubr.msk.bf16.mxu0 %vm2731_vm2, %v2730_v17 }
 0x36a   : > { %v893_v13 = vpop.f32.mrf.mxu0 }
 0x36b   : > { %v1247_v16 = vmul.f32 0.35355338, %v893_v13 }
 0x36c   : > { %v2466_v18 = vpop.f32.mrf.mxu0 }
 0x36d   : > { %v3029_v19 = vadd.f32 %v1247_v16, %v3026_v15 }
 0x36e   : > { %v896_v20 = vpop.f32.mrf.mxu0 }
 0x36f   : > { %v1263_v21 = vsel %vm852_vm3, %v3029_v19, -inf }
 0x370   : > { %1264 = vmax.xlane.f32.xlu0 %v1263_v21  ;;  %v2467_v22 = vpop.f32.mrf.mxu0 }
 0x376   : > { %v941_v23 = vpop.f32.mrf.mxu0 }
 0x377   : > { %v1248_v24 = vmul.f32 0.35355338, %v941_v23 }
 0x378   : > { %v2472_v25 = vpop.f32.mrf.mxu0 }
 0x379   : > { %v3034_v26 = vadd.f32 %v1248_v24, %v3026_v15 }
 0x37a   : > { %v944_v27 = vpop.f32.mrf.mxu0 }
 0x37b   : > { %v1266_v28 = vsel %vm852_vm3, %v3034_v26, -inf }
 0x37c   : > { %1267 = vmax.xlane.f32.xlu1 %v1266_v28  ;;  %v2473_v29 = vpop.f32.mrf.mxu0 }
 0x3d7   : > { %v991_v30 = vpop.f32.mrf.mxu1 }
 0x3d8   : > { %v1249_v31 = vmul.f32 0.35355338, %v991_v30 }
 0x3d9   : > { %v2478_v32 = vpop.f32.mrf.mxu1 }
 0x3da   : > { %v3039_v33 = vadd.f32 %v1249_v31, %v3026_v15 }
 0x3db   : > { %v994_v34 = vpop.f32.mrf.mxu1  ;;  %v1041_v35 = vpop.f32.mrf.mxu0 }
 0x3dc   : > { %v1250_v36 = vmul.f32 0.35355338, %v1041_v35  ;;  %v1269_v37 = vsel %vm852_vm3, %v3039_v33, -inf }
 0x3dd   : > { %v2479_v38 = vpop.f32.mrf.mxu1  ;;  %1270 = vmax.xlane.f32.xlu0 %v1269_v37  ;;  %v2484_v39 = vpop.f32.mrf.mxu0 }
 0x3de   : > { %v3044_v41 = vadd.f32 %v1250_v36, %v3026_v15 }
 0x3df   : > { %v1044_v42 = vpop.f32.mrf.mxu0  ;;  %v1091_v43 = vpop.f32.mrf.mxu1 }
 0x3e0   : > { %v1251_v45 = vmul.f32 0.35355338, %v1091_v43  ;;  %v1272_v47 = vsel %vm852_vm3, %v3044_v41, -inf }
 0x3e1   : > { %v2490_v48 = vpop.f32.mrf.mxu1  ;;  %1273 = vmax.xlane.f32.xlu0 %v1272_v47  ;;  %v2485_v50 = vpop.f32.mrf.mxu0 }
 0x3e2   : > { %v3049_v51 = vadd.f32 %v1251_v45, %v3026_v15 }
 0x3e3   : > { %v1094_v52 = vpop.f32.mrf.mxu1  ;;  %v1141_v54 = vpop.f32.mrf.mxu0 }
 0x3e4   : > { %v1252_v57 = vmul.f32 0.35355338, %v1141_v54  ;;  %v1275_v59 = vsel %vm852_vm3, %v3049_v51, -inf }
 0x3e5   : > { %v2491_v60 = vpop.f32.mrf.mxu1  ;;  %1276 = vmax.xlane.f32.xlu0 %v1275_v59  ;;  %v2496_v61 = vpop.f32.mrf.mxu0 }
 0x3e6   : > { %v1260_v62 = vadd.f32 %v1252_v57, %v3026_v15 }
 0x3e7   : > { %v1144_v63 = vpop.f32.mrf.mxu0  ;;  %v1191_v0 = vpop.f32.mrf.mxu1 }
 0x3e8   : > { %v1253_v1 = vmul.f32 0.35355338, %v1191_v0  ;;  %v1278_v4 = vsel %vm852_vm3, %v1260_v62, -inf }
 0x3e9   : > { %v2502_v5 = vpop.f32.mrf.mxu1  ;;  %1279 = vmax.xlane.f32.xlu1 %v1278_v4  ;;  %v2497_v6 = vpop.f32.mrf.mxu0 }
 0x3ea   : > { %v3056_v7 = vadd.f32 %v1253_v1, %v3026_v15 }
 0x3eb   : > { %v1194_v8 = vpop.f32.mrf.mxu1  ;;  %v1241_v9 = vpop.f32.mrf.mxu0 }
 0x3ec   : > { %v1281_v10 = vsel %vm852_vm3, %v3056_v7, -inf  ;;  %v1254_v21 = vmul.f32 0.35355338, %v1241_v9 }
 0x3ed   : > { %v2503_v11 = vpop.f32.mrf.mxu1  ;;  %1282 = vmax.xlane.f32.xlu0 %v1281_v10  ;;  %v2508_v12 = vpop.f32.mrf.mxu0 }
 0x3ee   : > { %v1262_v22 = vadd.f32 %v1254_v21, %v3026_v15 }
 0x3ef   : > { %v1244_v13 = vpop.f32.mrf.mxu0 }
 0x3f1   : > { %v2509_v14 = vpop.f32.mrf.mxu0 }
 0x3f9   : > { %v1265_v16 = vpop.xlane.xlu0 %1264 }
 0x3fa   : > { %1408 = vrot.lane.b32.xlu1 %v2949_v44, %s2737_s21  ;;  %v1287_v18 = vsub.f32 %v3029_v19, %v1265_v16  ;;  %v1284_v44 = vsel %vm852_vm3, %v1262_v22, -inf }
 0x3fc   : > { %v1295_v20 = vmul.f32 1.442695, %v1287_v18 }
 0x3fe   : > { %1456 = vrot.lane.b32.xlu1 %v2960_v46, %s2737_s21  ;;  %2662 = vpow2.f32 %v1295_v20 }
 0x403   : > { %1359 = vrot.lane.b32.xlu0 %v2946_v40, %s2737_s21 }
 0x405   : > { %v1268_v40 = vpop.xlane.xlu1 %1267 }
 0x406   : > { %v1288_v46 = vsub.f32 %v3034_v26, %v1268_v40 }
 0x408   : > { %v1297_v19 = vmul.f32 1.442695, %v1288_v46 }
 0x40a   : > { %2664 = vpow2.f32 %v1297_v19 }
 0x40b   : > { %v3068_v23 = vpop.eup %2662 }
 0x40c   : > { %v1311_v24 = vsel %vm852_vm3, %v3068_v23, 0.0 }
 0x417   : > { %v3076_v25 = vpop.eup %2664 }
 0x418   : > { %v1314_v15 = vsel %vm852_vm3, %v3076_v25, 0.0 }
 0x422   : > { %1312 = vadd.xlane.f32.xlu0 %v1311_v24  ;;  %1285 = vmax.xlane.f32.xlu1 %v1284_v44 }
 0x433   : > { %1504 = vrot.lane.b32.xlu1 %v2964_v49, %s2737_s21 }
 0x457   : > { %1315 = vadd.xlane.f32.xlu1 %v1314_v15 }
 0x466   : > { %v1271_v27 = vpop.xlane.xlu0 %1270 }
 0x467   : > { %v1289_v28 = vsub.f32 %v3039_v33, %v1271_v27 }
 0x468   : > { %1600 = vrot.lane.b32.xlu1 %v2976_v56, %s2737_s21 }
 0x469   : > { %v1299_v29 = vmul.f32 1.442695, %v1289_v28 }
 0x46a   : > { %v1274_v49 = vpop.xlane.xlu0 %1273 }
 0x46b   : > { %2666 = vpow2.f32 %v1299_v29  ;;  %v1290_v26 = vsub.f32 %v3044_v41, %v1274_v49 }
 0x46d   : > { %v1301_v35 = vmul.f32 1.442695, %v1290_v26 }
 0x46e   : > { %v1277_v30 = vpop.xlane.xlu0 %1276 }
 0x46f   : > { %2668 = vpow2.f32 %v1301_v35  ;;  %v1291_v48 = vsub.f32 %v3049_v51, %v1277_v30 }
 0x471   : > { %v1303_v50 = vmul.f32 1.442695, %v1291_v48 }
 0x472   : > { %v1280_v31 = vpop.xlane.xlu1 %1279 }
 0x473   : > { %v1292_v36 = vsub.f32 %v1260_v62, %v1280_v31 }
 0x475   : > { %v1305_v39 = vmul.f32 1.442695, %v1292_v36 }
 0x476   : > { %v1283_v32 = vpop.xlane.xlu0 %1282  ;;  %v1409_v34 = vpop.permute.xlu1 %1408 }
 0x477   : > { %v1414_v37 = vsel %vm1364_vm5, %v1409_v34, 0  ;;  %2670 = vpow2.f32 %v1305_v39  ;;  %v1293_v52 = vsub.f32 %v3056_v7, %v1283_v32 }
 0x478   : > { %v3085_v38 = vpop.eup %2666  ;;  %2517 = vmatpush3.bf16.msra.mxu0 %v1414_v37  ;;  %2672 = vpow2.f32 %v1303_v50 }
 0x479   : > { %v1317_v56 = vsel %vm852_vm3, %v3085_v38, 0.0  ;;  %2528 = vmatprep.subr.bf16.mxu0 %v2730_v17  ;;  %v1307_v54 = vmul.f32 1.442695, %v1293_v52 }
 0x47a   : > { %1318 = vadd.xlane.f32.xlu0 %v1317_v56  ;;  %v1360_v33 = vpop.permute.xlu0 %1359  ;;  %v1457_v57 = vpop.permute.xlu1 %1456 }
 0x47b   : > { %v1366_v41 = vsel %vm1364_vm5, %v1360_v33, 0  ;;  %2674 = vpow2.f32 %v1307_v54  ;;  %v1462_v7 = vsel %vm1364_vm5, %v1457_v57, 0 }
 0x47c   : > { %2511 = vmatpush3.bf16.msra.mxu1 %v1366_v41  ;;  %v3092_v42 = vpop.eup %2668 }
 0x47d   : > { %2522 = vmatprep.subr.bf16.mxu1 %v2730_v17  ;;  %v1320_v43 = vsel %vm852_vm3, %v3092_v42, 0.0 }
 0x484   : > { %v3096_v45 = vpop.eup %2670 }
 0x485   : > { %v1326_v47 = vsel %vm852_vm3, %v3096_v45, 0.0  ;;  %v3104_v59 = vpop.eup %2672 }
 0x488   : > { %v3108_v0 = vpop.eup %2674 }
 0x489   : > { %v1329_v51 = vsel %vm852_vm3, %v3108_v0, 0.0 }
 0x48c   : > { %1321 = vadd.xlane.f32.xlu1 %v1320_v43 }
 0x490   : > { %1552 = vrot.lane.b32.xlu0 %v2969_v53, %s2737_s21  ;;  %1327 = vadd.xlane.f32.xlu1 %v1326_v47  ;;  %v1323_v53 = vsel %vm852_vm3, %v3104_v59, 0.0 }
 0x4ab   : > { %v1313_v60 = vpop.xlane.xlu0 %1312  ;;  %v1286_v61 = vpop.xlane.xlu1 %1285 }
 0x4ac   : > { %2676 = vrcp.f32 %v1313_v60  ;;  %v1294_v62 = vsub.f32 %v1262_v22, %v1286_v61 }
 0x4ae   : > { %v1309_v63 = vmul.f32 1.442695, %v1294_v62 }
 0x4af   : > { %1324 = vadd.xlane.f32.xlu0 %v1323_v53  ;;  %v1505_v9 = vpop.permute.xlu1 %1504 }
 0x4b0   : > { %2678 = vpow2.f32 %v1309_v63  ;;  %v1510_v14 = vsel %vm1364_vm5, %v1505_v9, 0 }
 0x4b3   : > { %1330 = vadd.xlane.f32.xlu0 %v1329_v51 }
 0x4b9   : > { %v2677_v1 = vpop.eup %2676 }
 0x4ba   : > { %v1343_v4 = vmul.f32 %v2677_v1, %v3068_v23 }
 0x4bc   : > { %v1351_v5 = vpack.c.bf16 %v1343_v4, %v1343_v4 }
 0x4bd   : > { %v3113_v6 = vpop.eup %2678 }
 0x4be   : > { %2513 = vmatmul.mubr.msk.bf16.vlgmr.msra.gmra.mxu1 %vm852_vm3, %v1351_v5  ;;  %v1332_v8 = vsel %vm852_vm3, %v3113_v6, 0.0 }
 0x4bf   : > { %2523 = vmatpush3.bf16.msra.mxu1 %v1462_v7  ;;  %1333 = vadd.xlane.f32.xlu1 %v1332_v8  ;;  %v2646_v7 = vld [vmem:[%s3297_s19 + $0x8] sm:$0xff]  }
 0x4c0   : > { %2524 = vmatprep.mubr.msk.bf16.mxu1 %vm2731_vm2, %v2730_v17  ;;  %2534 = vmatprep.subr.bf16.mxu1 %v2730_v17 }
 0x4c9   : > { %1648 = vrot.lane.b32.xlu0 %v2974_v55, %s2737_s21 }
 0x4d0   : > { %1696 = vrot.lane.b32.xlu1 %v2982_v58, %s2737_s21 }
 0x4e0   : > { %v1316_v10 = vpop.xlane.xlu1 %1315 }
 0x4e1   : > { %2680 = vrcp.f32 %v1316_v10 }
 0x4e4   : > { %v1601_v16 = vpop.permute.xlu1 %1600 }
 0x4ee   : > { %v2681_v11 = vpop.eup %2680 }
 0x4ef   : > { %v1344_v12 = vmul.f32 %v2681_v11, %v3076_v25  ;;  %v1606_v25 = vsel %vm1364_vm5, %v1601_v16, 0 }
 0x4f1   : > { %v1352_v13 = vpack.c.bf16 %v1344_v12, %v1344_v12 }
 0x4f3   : > { %2519 = vmatmul.mubr.msk.bf16.vlgmr.msra.gmra.mxu0 %vm852_vm3, %v1352_v13  ;;  %v2647_v13 = vld [vmem:[%s3297_s19] sm:$0xff]   ;;  %s3300_s19 = sld [smem:[#allocation10_spill]] (!%p2391_p6) }
 0x4f4   : > { %2529 = vmatpush3.bf16.msra.mxu0 %v1510_v14  ;;  %2530 = vmatprep.mubr.msk.bf16.mxu0 %vm2731_vm2, %v2730_v17 }
 0x4f5   : > { %2540 = vmatprep.subr.bf16.mxu0 %v2730_v17 }
 0x503   : > { %v1319_v55 = vpop.xlane.xlu0 %1318 }
 0x504   : > { %2682 = vrcp.f32 %v1319_v55 }
 0x507   : > { %v1553_v20 = vpop.permute.xlu0 %1552 }
 0x508   : > { %v1558_v23 = vsel %vm1364_vm5, %v1553_v20, 0 }
 0x511   : > { %v2683_v58 = vpop.eup %2682 }
 0x512   : > { %v1345_v18 = vmul.f32 %v2683_v58, %v3085_v38 }
 0x514   : > { %v1353_v21 = vpack.c.bf16 %v1345_v18, %v1345_v18 }
 0x515   : > { %v1322_v22 = vpop.xlane.xlu1 %1321 }
 0x516   : > { %2684 = vrcp.f32 %v1322_v22  ;;  %2525 = vmatmul.mubr.msk.bf16.vlgmr.msra.gmra.mxu1 %vm852_vm3, %v1353_v21 }
 0x517   : > { %2535 = vmatpush3.bf16.msra.mxu1 %v1558_v23  ;;  %2536 = vmatprep.mubr.msk.bf16.mxu1 %vm2731_vm2, %v2730_v17 }
 0x518   : > { %2546 = vmatprep.subr.bf16.mxu1 %v2730_v17 }
 0x519   : > { %v1328_v24 = vpop.xlane.xlu1 %1327 }
 0x51a   : > { %2686 = vrcp.f32 %v1328_v24 }
 0x523   : > { %v2685_v44 = vpop.eup %2684 }
 0x524   : > { %v1346_v40 = vmul.f32 %v2685_v44, %v3092_v42 }
 0x526   : > { %v1354_v46 = vpack.c.bf16 %v1346_v40, %v1346_v40 }
 0x527   : > { %v2687_v19 = vpop.eup %2686 }
 0x528   : > { %2531 = vmatmul.mubr.msk.bf16.vlgmr.msra.gmra.mxu0 %vm852_vm3, %v1354_v46  ;;  %v1348_v15 = vmul.f32 %v2687_v19, %v3096_v45 }
 0x529   : > { %2541 = vmatpush3.bf16.msra.mxu0 %v1606_v25  ;;  %2542 = vmatprep.mubr.msk.bf16.mxu0 %vm2731_vm2, %v2730_v17 }
 0x52a   : > { %2552 = vmatprep.subr.bf16.mxu0 %v2730_v17  ;;  %v1356_v27 = vpack.c.bf16 %v1348_v15, %v1348_v15 }
 0x530   : > { %2543 = vmatmul.mubr.msk.bf16.vlgmr.msra.gmra.mxu0 %vm852_vm3, %v1356_v27 }
 0x531   : > { %2554 = vmatprep.mubr.msk.bf16.mxu0 %vm2731_vm2, %v2730_v17 }
 0x538   : > { %v1325_v28 = vpop.xlane.xlu0 %1324 }
 0x539   : > { %2688 = vrcp.f32 %v1325_v28 }
 0x53c   : > { %v1331_v29 = vpop.xlane.xlu0 %1330 }
 0x53d   : > { %2690 = vrcp.f32 %v1331_v29 }
 0x540   : > { %v1649_v31 = vpop.permute.xlu0 %1648 }
 0x541   : > { %v1654_v35 = vsel %vm1364_vm5, %v1649_v31, 0 }
 0x546   : > { %v2689_v49 = vpop.eup %2688 }
 0x547   : > { %v1347_v30 = vmul.f32 %v2689_v49, %v3104_v59 }
 0x548   : > { %v1334_v26 = vpop.xlane.xlu1 %1333 }
 0x549   : > { %2692 = vrcp.f32 %v1334_v26  ;;  %v1355_v32 = vpack.c.bf16 %v1347_v30, %v1347_v30 }
 0x54a   : > { %v2691_v34 = vpop.eup %2690 }
 0x54b   : > { %2537 = vmatmul.mubr.msk.bf16.vlgmr.msra.gmra.mxu1 %vm852_vm3, %v1355_v32  ;;  %v1349_v38 = vmul.f32 %v2691_v34, %v3108_v0 }
 0x54c   : > { %2547 = vmatpush3.bf16.msra.mxu1 %v1654_v35  ;;  %v1697_v36 = vpop.permute.xlu1 %1696  ;;  %2548 = vmatprep.mubr.msk.bf16.mxu1 %vm2731_vm2, %v2730_v17  ;;  %v2372_v35 = vld [vmem:[%s3298_s16] ss:$0 sm:$0xff] }
 0x54d   : > { %v1702_v37 = vsel %vm1364_vm5, %v1697_v36, 0  ;;  %2558 = vmatprep.subr.bf16.mxu1 %v2730_v17  ;;  %v1357_v56 = vpack.c.bf16 %v1349_v38, %v1349_v38 }
 0x54e   : > { %2553 = vmatpush3.bf16.msra.mxu0 %v1702_v37 }
 0x54f   : > { %2566 = vmatprep.subr.bf16.mxu0 %v2730_v17 }
 0x553   : > { %2549 = vmatmul.mubr.msk.bf16.vlgmr.msra.gmra.mxu1 %vm852_vm3, %v1357_v56 }
 0x554   : > { %2562 = vmatprep.mubr.msk.bf16.mxu1 %vm2731_vm2, %v2730_v17  ;;  %2559 = vmatpush3.bf16.msra.mxu1 %v2646_v7  ;;  %v2376_v7 = vld [vmem:[%s676_s13] ss:$0 sm:$0xff] }
 0x555   : > { %2560 = vmatprep.subr.bf16.mxu1 %v2730_v17 }
 0x556   : > { %v2693_v33 = vpop.eup %2692 }
 0x557   : > { %v1350_v39 = vmul.f32 %v2693_v33, %v3113_v6 }
 0x558   : > { %2561 = vmatpush3.bf16.msra.mxu1 %v2647_v13 }
 0x559   : > { %v1358_v41 = vpack.c.bf16 %v1350_v39, %v1350_v39  ;;  %2574 = vmatprep.subr.bf16.mxu1 %v2730_v17 }
 0x55b   : > { %2555 = vmatmul.mubr.msk.bf16.vlgmr.msra.gmra.mxu0 %vm852_vm3, %v1358_v41 }
 0x55c   : > { %2570 = vmatprep.mubr.msk.bf16.mxu0 %vm2731_vm2, %v2730_v17 }
 0x57e   : > { %v1402_v42 = vpop.f32.mrf.mxu1 }
 0x580   : > { %v2514_v43 = vpop.f32.mrf.mxu1 }
 0x582   : > { %v1405_v45 = vpop.f32.mrf.mxu1 }
 0x584   : > { %v2515_v47 = vpop.f32.mrf.mxu1 }
 0x5b3   : > { %v1450_v48 = vpop.f32.mrf.mxu0 }
 0x5b5   : > { %v2520_v50 = vpop.f32.mrf.mxu0 }
 0x5b7   : > { %v1453_v52 = vpop.f32.mrf.mxu0 }
 0x5b9   : > { %v2521_v54 = vpop.f32.mrf.mxu0 }
 0x5d6   : > { %v1498_v57 = vpop.f32.mrf.mxu1 }
 0x5d8   : > { %v2526_v59 = vpop.f32.mrf.mxu1 }
 0x5da   : > { %v1501_v60 = vpop.f32.mrf.mxu1 }
 0x5dc   : > { %v2527_v61 = vpop.f32.mrf.mxu1 }
 0x5dd   : > { %v2648_v61 = vld [vmem:[%s2883_s3 + $0x8] sm:$0xff]  }
 0x5de   : > { %2567 = vmatpush3.bf16.msra.mxu0 %v2648_v61 }
 0x5df   : > { %2568 = vmatprep.subr.bf16.mxu0 %v2730_v17 }
 0x5e8   : > { %v1546_v62 = vpop.f32.mrf.mxu0 }
 0x5e9   : > { %v2629_v63 = vpack.i.bf16 %v1546_v62, %v1498_v57  ;;  %v2649_v62 = vld [vmem:[%s2883_s3] sm:$0xff]  }
 0x5ea   : > { %v2532_v53 = vpop.f32.mrf.mxu0  ;;  %2569 = vmatpush3.bf16.msra.mxu0 %v2649_v62 }
 0x5eb   : > { %2630 = vrot.lane.b32.xlu0 %v2629_v63, %s2738_s20 }
 0x5ec   : > { %v1549_v0 = vpop.f32.mrf.mxu0 }
 0x5ee   : > { %v2533_v51 = vpop.f32.mrf.mxu0 }
 0x5f0   : > { %v1642_v1 = vpop.f32.mrf.mxu0 }
 0x5f2   : > { %v2544_v4 = vpop.f32.mrf.mxu0 }
 0x5f4   : > { %v1645_v5 = vpop.f32.mrf.mxu0 }
 0x5f6   : > { %v2545_v6 = vpop.f32.mrf.mxu0 }
 0x60b   : > { %v1594_v8 = vpop.f32.mrf.mxu1 }
 0x60c   : > { %v2634_v9 = vpack.i.bf16 %v1642_v1, %v1594_v8 }
 0x60d   : > { %v2538_v10 = vpop.f32.mrf.mxu1 }
 0x60e   : > { %2635 = vrot.lane.b32.xlu1 %v2634_v9, %s2739_s14 }
 0x60f   : > { %v1597_v11 = vpop.f32.mrf.mxu1 }
 0x610   : > { %v2377_v11 = vld [vmem:[%s679_s17] ss:$0 sm:$0xff] }
 0x611   : > { %v2539_v12 = vpop.f32.mrf.mxu1 }
 0x613   : > { %v1690_v14 = vpop.f32.mrf.mxu1 }
 0x615   : > { %v2550_v55 = vpop.f32.mrf.mxu1 }
 0x617   : > { %v1693_v58 = vpop.f32.mrf.mxu1 }
 0x618   : > { %v2650_v58 = vld [vmem:[%s2893_s26 + $0x38] sm:$0xff]  }
 0x619   : > { %v2551_v16 = vpop.f32.mrf.mxu1 }
 0x61a   : > { %v2651_v16 = vld [vmem:[%s2893_s26 + $0x30] sm:$0xff]  }
 0x61b   : > { %v1738_v18 = vpop.f32.mrf.mxu0 }
 0x61c   : > { %v2639_v20 = vpack.i.bf16 %v1738_v18, %v1690_v14  ;;  %v2652_v18 = vld [vmem:[%s2893_s26 + $0x28] sm:$0xff]  }
 0x61d   : > { %v2556_v21 = vpop.f32.mrf.mxu0 }
 0x61e   : > { %2640 = vrot.lane.b32.xlu0 %v2639_v20, %s2740_s25  ;;  %v2653_v20 = vld [vmem:[%s2893_s26 + $0x20] sm:$0xff]   ;;  %v2654_v21 = vld [vmem:[%s2893_s26 + $0x18] sm:$0xff]   ;;  %s3301_s25 = sld [smem:[#allocation11_spill]] (!%p2391_p6) }
 0x61f   : > { %v1741_v22 = vpop.f32.mrf.mxu0 }
 0x620   : > { %v2655_v22 = vld [vmem:[%s2893_s26 + $0x10] sm:$0xff]  }
 0x621   : > { %v2557_v23 = vpop.f32.mrf.mxu0 }
 0x622   : > { %v2656_v23 = vld [vmem:[%s2893_s26 + $0x8] sm:$0xff]  }
 0x65d   : > { %v2631_v24 = vpop.permute.xlu0 %2630 }
 0x65e   : > { %v2633_v40 = vunpack.i.h.bf16 %v2631_v24  ;;  %v2632_v46 = vunpack.i.l.bf16 %v2631_v24  ;;  %v2657_v24 = vld [vmem:[%s2893_s26] sm:$0xff]  }
 0x660   : > { %v1769_v27 = vsel %vm852_vm3, %v1450_v48, %v2633_v40  ;;  %v1768_v28 = vsel %vm852_vm3, %v1402_v42, %v2632_v46 }
 0x680   : > { %v2636_v44 = vpop.permute.xlu1 %2635 }
 0x681   : > { %v2638_v19 = vunpack.i.h.bf16 %v2636_v44  ;;  %v2637_v25 = vunpack.i.l.bf16 %v2636_v44  ;;  %v2378_v44 = vld [vmem:[%s687_s5] ss:$0 sm:$0xff] }
 0x683   : > { %v1772_v30 = vsel %vm1770_vm6, %v1769_v27, %v2638_v19  ;;  %v1771_v31 = vsel %vm1770_vm6, %v1768_v28, %v2637_v25 }
 0x690   : > { %v2641_v15 = vpop.permute.xlu0 %2640 }
 0x691   : > { %v2643_v29 = vunpack.i.h.bf16 %v2641_v15  ;;  %v2642_v49 = vunpack.i.l.bf16 %v2641_v15 }
 0x693   : > { %v1775_v26 = vsel %vm1773_vm7, %v1772_v30, %v2643_v29  ;;  %v1774_v32 = vsel %vm1773_vm7, %v1771_v31, %v2642_v49 }
 0x694   : > { %v1776_v34 = vpack.c.bf16 %v1775_v26, %v1774_v32 }
 0x696   : > { %2563 = vmatmul.mubr.msk.bf16.vlgmr.msra.gmra.mxu1 %vm720_vm1, %v1776_v34 }
 0x697   : > { %2590 = vmatprep.mubr.msk.bf16.mxu1 %vm2731_vm2, %v2730_v17  ;;  %2575 = vmatpush3.bf16.msra.mxu1 %v2650_v58 }
 0x698   : > { %2576 = vmatprep.subr.bf16.mxu1 %v2730_v17 }
 0x69b   : > { %2577 = vmatpush3.bf16.msra.mxu1 %v2651_v16 }
 0x69c   : > { %2578 = vmatprep.subr.bf16.mxu1 %v2730_v17 }
 0x69f   : > { %2579 = vmatpush3.bf16.msra.mxu1 %v2652_v18 }
 0x6a0   : > { %2580 = vmatprep.subr.bf16.mxu1 %v2730_v17 }
 0x6a3   : > { %2581 = vmatpush3.bf16.msra.mxu1 %v2653_v20 }
 0x6a4   : > { %2582 = vmatprep.subr.bf16.mxu1 %v2730_v17 }
 0x6a7   : > { %2583 = vmatpush3.bf16.msra.mxu1 %v2654_v21 }
 0x6a8   : > { %2584 = vmatprep.subr.bf16.mxu1 %v2730_v17 }
 0x6ab   : > { %2585 = vmatpush3.bf16.msra.mxu1 %v2655_v22 }
 0x6ac   : > { %2586 = vmatprep.subr.bf16.mxu1 %v2730_v17 }
 0x6af   : > { %2587 = vmatpush3.bf16.msra.mxu1 %v2656_v23 }
 0x6b0   : > { %2588 = vmatprep.subr.bf16.mxu1 %v2730_v17 }
 0x6b3   : > { %2589 = vmatpush3.bf16.msra.mxu1 %v2657_v24 }
 0x756   : > { %v1837_v36 = vpop.f32.mrf.mxu1 }
 0x757   : > { %v1838_v37 = vadd.f32 %v2372_v35, %v1837_v36 }
 0x758   : > { %v2564_v38 = vpop.f32.mrf.mxu1 }
 0x759   : > { %v3179_v56 = vadd.f32 %v1838_v37, %v2906_v2 }
 0x75a   : > { %v1840_v33 = vpop.f32.mrf.mxu1 }
 0x75b   : > { %v1841_v39 = vadd.f32 %v2372_v35, %v1840_v33  ;;  %v1848_v41 = vsel %vm720_vm1, %v3179_v56, 0.0 }
 0x75c   : > { %1849 = vadd.xlane.f32.xlu1 %v1848_v41  ;;  %v2565_v42 = vpop.f32.mrf.mxu1 }
 0x75d   : > { %v3184_v43 = vadd.f32 %v1841_v39, %v2908_v3 }
 0x75f   : > { %v1851_v45 = vsel %vm720_vm1, %v3184_v43, 0.0 }
 0x760   : > { %1852 = vadd.xlane.f32.xlu0 %v1851_v45 }
 0x7e5   : > { %v1850_v47 = vpop.xlane.xlu1 %1849 }
 0x7e6   : > { %v1854_v48 = vmul.f32 0.03125, %v1850_v47 }
 0x7e8   : > { %v1856_v2 = vsub.f32 %v3179_v56, %v1854_v48  ;;  %v2382_v48 = vld [vmem:[%s695_s30] ss:$0 sm:$0xff]  ;;  %s3299_s30 = sld [smem:[#allocation9_spill]] (!%p2391_p6) }
 0x7e9   : > { %v1853_v50 = vpop.xlane.xlu0 %1852 }
 0x7ea   : > { %v1855_v52 = vmul.f32 0.03125, %v1853_v50  ;;  %v1858_v54 = vmul.f32 %v1856_v2, %v1856_v2 }
 0x7ec   : > { %v1857_v57 = vsub.f32 %v3184_v43, %v1855_v52  ;;  %v1860_v59 = vsel %vm720_vm1, %v1858_v54, 0.0 }
 0x7ed   : > { %1861 = vadd.xlane.f32.xlu0 %v1860_v59 }
 0x7ee   : > { %v1859_v60 = vmul.f32 %v1857_v57, %v1857_v57 }
 0x7f0   : > { %v1863_v3 = vsel %vm720_vm1, %v1859_v60, 0.0 }
 0x7f1   : > { %1864 = vadd.xlane.f32.xlu0 %v1863_v3 }
 0x876   : > { %v1862_v63 = vpop.xlane.xlu0 %1861 }
 0x877   : > { %v1866_v53 = vmul.f32 0.03125, %v1862_v63 }
 0x879   : > { %v1868_v0 = vadd.f32 1e-05, %v1866_v53 }
 0x87a   : > { %v1865_v51 = vpop.xlane.xlu0 %1864 }
 0x87b   : > { %2694 = vrsqrt.f32 %v1868_v0  ;;  %v1867_v1 = vmul.f32 0.03125, %v1865_v51 }
 0x87d   : > { %v1869_v4 = vadd.f32 1e-05, %v1867_v1 }
 0x87f   : > { %2696 = vrsqrt.f32 %v1869_v4 }
 0x888   : > { %v2695_v5 = vpop.eup %2694 }
 0x889   : > { %v1872_v6 = vmul.f32 %v2695_v5, %v1856_v2 }
 0x88b   : > { %v1880_v10 = vmul.f32 %v2376_v7, %v1872_v6 }
 0x88c   : > { %v2697_v8 = vpop.eup %2696 }
 0x88d   : > { %v1873_v9 = vmul.f32 %v2697_v8, %v1857_v57  ;;  %v1888_v13 = vadd.f32 %v2377_v11, %v1880_v10 }
 0x88f   : > { %v1881_v12 = vmul.f32 %v2376_v7, %v1873_v9 }
 0x891   : > { %v1889_v14 = vadd.f32 %v2377_v11, %v1881_v12 }
 0x893   : > { %v1890_v55 = vpack.c.bf16 %v1889_v14, %v1888_v13 }
 0x895   : > { %2571 = vmatmul.mubr.msk.bf16.vlgmr.msra.gmra.mxu0 %vm720_vm1, %v1890_v55 }
 0x955   : > { %v1951_v40 = vpop.f32.mrf.mxu0 }
 0x956   : > { %v1952_v46 = vadd.f32 %v2378_v44, %v1951_v40 }
 0x957   : > { %v2572_v19 = vpop.f32.mrf.mxu0 }
 0x958   : > { %v1958_v25 = vmul.f32 %v1952_v46, %v1952_v46 }
 0x959   : > { %v1954_v15 = vpop.f32.mrf.mxu0 }
 0x95a   : > { %v1960_v27 = vmul.f32 %v1958_v25, %v1952_v46  ;;  %v1955_v28 = vadd.f32 %v2378_v44, %v1954_v15 }
 0x95b   : > { %v2573_v29 = vpop.f32.mrf.mxu0 }
 0x95c   : > { %v1962_v49 = vmul.f32 0.044715, %v1960_v27  ;;  %v1959_v30 = vmul.f32 %v1955_v28, %v1955_v28 }
 0x95e   : > { %v1964_v31 = vadd.f32 %v1962_v49, %v1952_v46  ;;  %v1961_v26 = vmul.f32 %v1959_v30, %v1955_v28 }
 0x960   : > { %v1966_v17 = vmul.f32 0.7978846, %v1964_v31  ;;  %v1963_v32 = vmul.f32 0.044715, %v1961_v26 }
 0x962   : > { %2698 = vtanh.f32 %v1966_v17  ;;  %v1965_v34 = vadd.f32 %v1963_v32, %v1955_v28 }
 0x964   : > { %v1967_v35 = vmul.f32 0.7978846, %v1965_v34 }
 0x966   : > { %2700 = vtanh.f32 %v1967_v35 }
 0x96f   : > { %v2699_v36 = vpop.eup %2698 }
 0x970   : > { %v1970_v37 = vadd.f32 1.0, %v2699_v36 }
 0x972   : > { %v1972_v33 = vmul.f32 0.5, %v1970_v37 }
 0x973   : > { %v2701_v38 = vpop.eup %2700 }
 0x974   : > { %v1971_v39 = vadd.f32 1.0, %v2701_v38  ;;  %v1974_v42 = vmul.f32 %v1972_v33, %v1952_v46 }
 0x976   : > { %v1973_v41 = vmul.f32 0.5, %v1971_v39 }
 0x978   : > { %v1975_v45 = vmul.f32 %v1973_v41, %v1955_v28 }
 0x97a   : > { %v1976_v47 = vpack.c.bf16 %v1975_v45, %v1974_v42 }
 0x97c   : > { %2591 = vmatmul.mubr.bf16.vlgmr.msra.gmra.mxu1 %v1976_v47 }
 0xa3c   : > { %v2082_v2 = vpop.f32.mrf.mxu1 }
 0xa3d   : > { %v2083_v50 = vadd.f32 %v2382_v48, %v2082_v2 }
 0xa3e   : > { %v2592_v52 = vpop.f32.mrf.mxu1 }
 0xa3f   : > { %v2089_v54 = vadd.f32 %v2083_v50, %v3179_v56 }
 0xa40   : > { %v2085_v57 = vpop.f32.mrf.mxu1 }
 0xa41   : > { %2091 = vst.msk [vmem:[#allocation2] sm:$0xff] %vm720_vm1, %v2089_v54  ;;  %v2086_v59 = vadd.f32 %v2382_v48, %v2085_v57  ;;  %2096 = sbr.rel (%p2391_p6) target bundleno = 2943 (0xb7f), region = 88 }
 0xa42   : > { %v2593_v60 = vpop.f32.mrf.mxu1 }
 0xa43   : > { %v2090_v3 = vadd.f32 %v2086_v59, %v3184_v43 }
 0xa45   : > { %2092 = vst.msk [vmem:[#allocation2 + $0x8] sm:$0xff] %vm720_vm1, %v2090_v3 }
 0xa46   : > { %v2099_v61 = vsel %vm720_vm1, %v2089_v54, 0.0  ;;  %v2102_v62 = vsel %vm720_vm1, %v2090_v3, 0.0  ;;  %v2392_v14 = vld [vmem:[%s3299_s30] ss:$0 sm:$0xff] }
 0xa47   : > { %2100 = vadd.xlane.f32.xlu0 %v2099_v61  ;;  %v2393_v58 = vld [vmem:[%s3300_s19] ss:$0 sm:$0xff] }
 0xa4b   : > { %2103 = vadd.xlane.f32.xlu0 %v2102_v62 }
 0xad0   : > { %v2101_v63 = vpop.xlane.xlu0 %2100 }
 0xad1   : > { %v2105_v56 = vmul.f32 0.03125, %v2101_v63 }
 0xad3   : > { %v2107_v53 = vsub.f32 %v2089_v54, %v2105_v56 }
 0xad4   : > { %v2104_v0 = vpop.xlane.xlu0 %2103 }
 0xad5   : > { %v2106_v51 = vmul.f32 0.03125, %v2104_v0  ;;  %v2109_v1 = vmul.f32 %v2107_v53, %v2107_v53 }
 0xad7   : > { %v2108_v4 = vsub.f32 %v2090_v3, %v2106_v51  ;;  %v2111_v43 = vsel %vm720_vm1, %v2109_v1, 0.0 }
 0xad8   : > { %2112 = vadd.xlane.f32.xlu1 %v2111_v43 }
 0xad9   : > { %v2110_v5 = vmul.f32 %v2108_v4, %v2108_v4 }
 0xadb   : > { %v2114_v6 = vsel %vm720_vm1, %v2110_v5, 0.0 }
 0xadc   : > { %2115 = vadd.xlane.f32.xlu1 %v2114_v6 }
 0xb61   : > { %v2113_v7 = vpop.xlane.xlu1 %2112 }
 0xb62   : > { %v2117_v8 = vmul.f32 0.03125, %v2113_v7 }
 0xb64   : > { %v2119_v9 = vadd.f32 1e-05, %v2117_v8 }
 0xb65   : > { %v2116_v10 = vpop.xlane.xlu1 %2115 }
 0xb66   : > { %2702 = vrsqrt.f32 %v2119_v9  ;;  %v2118_v11 = vmul.f32 0.03125, %v2116_v10 }
 0xb68   : > { %v2120_v12 = vadd.f32 1e-05, %v2118_v11 }
 0xb6a   : > { %2704 = vrsqrt.f32 %v2120_v12 }
 0xb73   : > { %v2703_v13 = vpop.eup %2702 }
 0xb74   : > { %v2123_v55 = vmul.f32 %v2703_v13, %v2107_v53 }
 0xb76   : > { %v2131_v16 = vmul.f32 %v2392_v14, %v2123_v55 }
 0xb77   : > { %v2705_v18 = vpop.eup %2704 }
 0xb78   : > { %v2139_v20 = vadd.f32 %v2393_v58, %v2131_v16  ;;  %v2124_v21 = vmul.f32 %v2705_v18, %v2108_v4 }
 0xb7a   : > { %2141 = vst.msk [vmem:[%s3301_s25] sm:$0xff] %vm720_vm1, %v2139_v20  ;;  %v2132_v22 = vmul.f32 %v2392_v14, %v2124_v21 }
 0xb7c   : > { %v2140_v23 = vadd.f32 %v2393_v58, %v2132_v22 }
 0xb7e   : > { %2142 = vst.msk [vmem:[%s3301_s25 + $0x8] sm:$0xff] %vm720_vm1, %v2140_v23 }
 0xb7f PF: > { %s3302_s16 = sld [smem:[#allocation4_spill]] }
 0xb80   : > { %s3303_s18 = sld [smem:[#allocation3_spill]] }
 0xb81   : > { %s3304_s19 = sld [smem:[#allocation5_spill]] }
 0xb85   : > { %s25_s20 = sadd.s32 1, %s3302_s16  }
 0xb86   : > { %p22_p7 = scmp.ge.s32.totalorder %s25_s20, 4  }
 0xb88   :  { %24 = sbr.rel (!%p22_p7) target bundleno = 6 (0x6), region = 154 }

// kernel: mae_forward.9
= control target key start
LH: loop header
LB: loop body
LE: loop exit
PB: predicated region body
PF: predicated region fallthrough
CT: control target
= control target key end

     0   :  { %10 = vsyncpa [#allocation5], 0  ;;  %s617_s18 = smov 0   ;;  %s682_s0 = inlined_call_operand.vmem [shape: bf16[2,24,32], index: 0, kind: input, shape index: {}]   ;;  %s683_s1 = inlined_call_operand.vmem [shape: bf16[32,48], index: 1, kind: input, shape index: {}]   ;;  %s684_s2 = inlined_call_operand.vmem [shape: f32[1,48], index: 2, kind: input, shape index: {}]   ;;  %s685_s3 = inlined_call_operand.vmem [shape: f32[2,24,48], index: 3, kind: input, shape index: {}]   ;;  %s686_s4 = inlined_call_operand.vmem [shape: f32[2,24,1], index: 4, kind: input, shape index: {}]   ;;  %s687_s5 = inlined_call_operand.hbm [shape: f32[1,1], index: 5, kind: output, shape index: {}]  }
   0x1 LB: > { %s623_s19 = sadd.s32 4294967295, %s583_s18   ;;  %p493_p0 = scmp.ge.s32.totalorder %s583_s18, 1  ;;  %s583_s18 = sphi %s617_s18, %s16_s18  }
   0x2   : > { %p203_p1 = scmp.lt.s32.totalorder %s583_s18, 3 }
   0x4   : > { %p204_p2 = pnand %p493_p0, %p203_p1 }
   0x5   : > { %p236_p3 = scmp.lt.s32.totalorder (!%p204_p2), %s623_s19, 1  ;;  %p497_p4 = scmp.ne.s32.totalorder (!%p204_p2), %s623_s19, 0 }
   0x6   : > { %207 = sbr.rel (%p204_p2) target bundleno = 614 (0x266), region = 40 }
   0xb   : > { %s237_s20 = scalar_select %p236_p3, %s623_s19, 1 }
   0xc   : > { %255 = sbr.rel (%p497_p4) target bundleno = 19 (0x13), region = 44 }
   0xd   : > { %s521_s21 = smul.u32 12, %s237_s20 }
   0xe   : > { %s522_s22 = smul.u32 24, %s237_s20 }
   0xf   : > { %s240_s25 = scalar_lea.vmem %s682_s0, %s521_s21 }
  0x10   : > { %s635_s28 = scalar_lea.vmem %s685_s3, %s522_s22  ;;  %s640_s6 = scalar_lea.vmem %s686_s4, %s522_s22 }
  0x11   : > { %vm256_vm0 = vcmask 0   ;;  %v585_v0 = vmov 0.0  }
  0x12   : > { %257 = vst.msk [vmem:[#allocation2] sm:$0x1] %vm256_vm0, %v585_v0  ;;  %258 = vst.msk [vmem:[#allocation3] sm:$0x1] %vm256_vm0, %v585_v0 }
  0x13 PF: > { %v543_v1 = vld [vmem:[%s683_s1 + $0x8] sm:$0xff]   ;;  %vm293_vm1 = vcmask 261120   ;;  %v544_v2 = vld [vmem:[%s683_s1] sm:$0xff]   ;;  %v350_v7 = vld [vmem:[%s635_s28 + $0x10] sm:$0xff]  ;;  %vm357_vm2 = vcmask 392192   ;;  %vm378_vm3 = vcmask 7168  }
  0x14   : > { %513 = vmatprep.subr.bf16.mxu0 %v543_v1  ;;  %v545_v3 = vld [vmem:[%s240_s25] sm:$0xff]   ;;  %v546_v4 = vld [vmem:[%s240_s25 + $0x8] ss:$0 sps:$4 sm:$0xff]   ;;  %v373_v29 = vld [vmem:[%s640_s6 + $0x10] sm:$0xff]  ;;  %vm395_vm4 = vcmask 0   ;;  %s586_s15 = smov [#allocation4]  }
  0x15   : > { %514 = vmatpush3.bf16.msra.mxu0 %v543_v1  ;;  %517 = vmatprep.mubr.msk.bf16.mxu0 %vm293_vm1, %v545_v3  ;;  %v498_v5 = vld [vmem:[%s684_s2] ss:$0 sm:$0xff]  ;;  %v349_v17 = vld [vmem:[%s635_s28 + $0x8] sm:$0xff]  ;;  %v401_v31 = vsel %vm378_vm3, %v373_v29, 0.0  ;;  %s427_s16 = sshll.u32 %s586_s15, 4  ;;  %p531_p5 = scmp.eq.s32.totalorder %s623_s19, 1  ;;  %s428_s16 = int_to_ptr.vmem [resolvable:$true] %s427_s16 }
  0x16   : > { %515 = vmatprep.subr.bf16.mxu0 %v544_v2  ;;  %v348_v10 = vld [vmem:[%s635_s28] sm:$0xff]  ;;  %v372_v26 = vld [vmem:[%s640_s6 + $0x8] sm:$0xff]  ;;  %s549_s17 = scalar_lea.vmem %s428_s16, 16  ;;  %s555_s20 = scalar_lea.vmem %s428_s16, 32 }
  0x17   : > { %v371_v25 = vld [vmem:[%s640_s6] sm:$0xff]  ;;  %v399_v28 = vsel %vm378_vm3, %v372_v26, 0.0  ;;  %p550_p6 = scmp.ne.s32.totalorder %s428_s16, %s549_s17  ;;  %p556_p9 = scmp.lt.s32.totalorder %s428_s16, %s428_s16 }
  0x18   : > { %v398_v27 = vsel %vm378_vm3, %v371_v25, 0.0  ;;  %p557_p10 = scmp.lt.s32.totalorder %s555_s20, %s549_s17 }
  0x19   : > { %516 = vmatpush3.bf16.msra.mxu0 %v544_v2  ;;  %v400_v30 = vadd.f32 %v399_v28, %v398_v27  ;;  %v374_v61 = vld [vmem:[#allocation2] sm:$0x1]  ;;  %v397_v62 = vld [vmem:[#allocation3] sm:$0x1]  ;;  %p551_p7 = pnand %p550_p6, %p531_p5 }
  0x1a   : > { %p558_p11 = por %p557_p10, %p556_p9 }
  0x1b   : > { %v402_v32 = vadd.f32 %v401_v31, %v400_v30  ;;  %p552_p8 = pneg %p551_p7 }
  0x1c   : > { %518 = vmatmul.mubr.msk.bf16.vlgmr.msra.gmra.mxu0 %vm293_vm1, %v546_v4 }
  0x1d   : > { %p559_p12 = pnand %p558_p11, %p552_p8 }
  0xdc   : > { %v519_v6 = vpop.f32.mrf.mxu0 }
  0xdd   : > { %v343_v8 = vadd.f32 %v519_v6, %v498_v5 }
  0xde   : > { %v334_v9 = vpop.f32.mrf.mxu0 }
  0xdf   : > { %v335_v11 = vadd.f32 %v498_v5, %v334_v9  ;;  %v353_v12 = vsub.f32 %v343_v8, %v350_v7 }
  0xe0   : > { %v520_v13 = vpop.f32.mrf.mxu0 }
  0xe1   : > { %v356_v14 = vmul.f32 %v353_v12, %v353_v12  ;;  %v351_v15 = vsub.f32 %v335_v11, %v348_v10 }
  0xe2   : > { %v337_v16 = vpop.f32.mrf.mxu0 }
  0xe3   : > { %v338_v18 = vadd.f32 %v498_v5, %v337_v16  ;;  %v364_v19 = vsel %vm357_vm2, %v356_v14, 0.0  ;;  %v354_v20 = vmul.f32 %v351_v15, %v351_v15 }
  0xe4   : > { %365 = vadd.xlane.f32.xlu1 %v364_v19 }
  0xe5   : > { %v352_v21 = vsub.f32 %v338_v18, %v349_v17  ;;  %v358_v22 = vsel %vm357_vm2, %v354_v20, 0.0 }
  0xe6   : > { %359 = vadd.xlane.f32.xlu0 %v358_v22 }
  0xe7   : > { %v355_v23 = vmul.f32 %v352_v21, %v352_v21 }
  0xe9   : > { %v361_v24 = vsel %vm357_vm2, %v355_v23, 0.0 }
  0xea   : > { %362 = vadd.xlane.f32.xlu0 %v361_v24 }
  0xee   : > { %403 = vadd.xlane.f32.xlu0 %v402_v32 }
 0x16d   : > { %v366_v33 = vpop.xlane.xlu1 %365 }
 0x16e   : > { %v370_v36 = vmul.f32 0.020833334, %v366_v33 }
 0x16f   : > { %v360_v34 = vpop.xlane.xlu0 %359 }
 0x170   : > { %v368_v35 = vmul.f32 0.020833334, %v360_v34  ;;  %v377_v40 = vmul.f32 %v373_v29, %v370_v36 }
 0x172   : > { %v375_v38 = vmul.f32 %v371_v25, %v368_v35  ;;  %v382_v45 = vsel %vm378_vm3, %v377_v40, 0.0 }
 0x173   : > { %v363_v37 = vpop.xlane.xlu0 %362 }
 0x174   : > { %v369_v39 = vmul.f32 0.020833334, %v363_v37  ;;  %v379_v42 = vsel %vm378_vm3, %v375_v38, 0.0 }
 0x176   : > { %v376_v41 = vmul.f32 %v372_v26, %v369_v39 }
 0x177   : > { %v404_v47 = vpop.xlane.xlu0 %403 }
 0x178   : > { %v380_v43 = vsel %vm378_vm3, %v376_v41, 0.0  ;;  %v405_v48 = vrot.slane %v404_v47, 4 }
 0x179   : > { %v381_v44 = vadd.f32 %v380_v43, %v379_v42 }
 0x17a   : > { %v406_v49 = vadd.f32 %v405_v48, %v404_v47 }
 0x17b   : > { %v383_v46 = vadd.f32 %v382_v45, %v381_v44 }
 0x17c   : > { %v407_v50 = vrot.slane %v406_v49, 2 }
 0x17d   : > { %384 = vadd.xlane.f32.xlu1 %v383_v46 }
 0x17e   : > { %v408_v54 = vadd.f32 %v407_v50, %v406_v49 }
 0x180   : > { %v409_v57 = vrot.slane %v408_v54, 1 }
 0x182   : > { %v410_v60 = vadd.f32 %v409_v57, %v408_v54 }
 0x206   : > { %v385_v51 = vpop.xlane.xlu1 %384 }
 0x207   : > { %v386_v52 = vrot.slane %v385_v51, 4 }
 0x209   : > { %v387_v53 = vadd.f32 %v386_v52, %v385_v51 }
 0x20b   : > { %v388_v55 = vrot.slane %v387_v53, 2 }
 0x20d   : > { %v389_v56 = vadd.f32 %v388_v55, %v387_v53 }
 0x20f   : > { %v390_v58 = vrot.slane %v389_v56, 1 }
 0x211   : > { %v391_v59 = vadd.f32 %v390_v58, %v389_v56 }
 0x213   : > { %523 = vpush %v391_v59 }
 0x214   : > { %525 = vpush %v410_v60 }
 0x244   : > { %s524_s13 = spop %523 }
 0x245   : > { %v393_v63 = vstv %s524_s13  ;;  %s526_s14 = spop %525 }
 0x246   : > { %v394_v0 = vadd.f32 %v393_v63, %v374_v61  ;;  %v412_v1 = vstv %s526_s14 }
 0x247   : > { %v413_v2 = vadd.f32 %v412_v1, %v397_v62 }
 0x248   : > { %396 = vst.msk [vmem:[#allocation2] sm:$0x1] %vm395_vm4, %v394_v0 }
 0x249   : > { %414 = vst.msk [vmem:[#allocation3] sm:$0x1] %vm395_vm4, %v413_v2 }
 0x24f   : > { %v415_v5 = vld [vmem:[#allocation2] sm:$0x1] }
 0x250   : > { %v416_v3 = vld [vmem:[#allocation3] sm:$0x1] }
 0x251   : > { %547 = vrcp.f32 %v416_v3 }
 0x25e   : > { %v548_v4 = vpop.eup %547 }
 0x25f   : > { %v418_v6 = vmul.f32 %v548_v4, %v415_v5 }
 0x261   : > { %419 = vst.msk [vmem:[#allocation4] sm:$0x1] %vm395_vm4, %v418_v6 }
 0x262   : > { %562 = shalt.err (!%p559_p12)
}
 0x263   : > { %528 = dma.vmem_to_hbm [thread:$0]  (%p531_p5), %s428_s16, 16, %s687_s5, [#allocation5]  }
 0x264   : > { %578 = dma.done.wait (%p531_p5), [#allocation5], 16  }
 0x265   : > { %580 = vsyncadd (%p531_p5), [#allocation5], 4294967280 }
 0x266 PF: > { %s16_s18 = sadd.s32 1, %s583_s18  }
 0x267   : > { %p13_p13 = scmp.ge.s32.totalorder %s16_s18, 4  }
 0x269   :  { %15 = sbr.rel (!%p13_p13) target bundleno = 1 (0x1), region = 77 }
 0x26e   :  { %440 = vsyncpa [#allocation5], 1 }
 0x26f   :  { %442 = vsyncpa [#allocation5 + $0x1], 1 }

// kernel: mae_forward.8
= control target key start
LH: loop header
LB: loop body
LE: loop exit
PB: predicated region body
PF: predicated region fallthrough
CT: control target
= control target key end

     0   :  { %s4030_s18 = smov 0   ;;  %s4032_s19 = smov 0   ;;  %s4922_s0 = inlined_call_operand.vmem [shape: f32[2,24,32], index: 0, kind: input, shape index: {}]   ;;  %s4923_s1 = inlined_call_operand.vmem [shape: f32[2,1,32], index: 1, kind: input, shape index: {}]   ;;  %s4924_s2 = inlined_call_operand.vmem [shape: f32[2,1,32], index: 2, kind: input, shape index: {}]   ;;  %s4925_s3 = inlined_call_operand.vmem [shape: bf16[2,32,96], index: 3, kind: input, shape index: {}]   ;;  %s4926_s4 = inlined_call_operand.vmem [shape: f32[2,1,96], index: 4, kind: input, shape index: {}]   ;;  %s4927_s5 = inlined_call_operand.vmem [shape: bf16[2,32,32], index: 5, kind: input, shape index: {}]   ;;  %s4928_s6 = inlined_call_operand.vmem [shape: f32[2,1,32], index: 6, kind: input, shape index: {}]   ;;  %s4929_s7 = inlined_call_operand.vmem [shape: f32[2,1,32], index: 7, kind: input, shape index: {}]   ;;  %s4930_s8 = inlined_call_operand.vmem [shape: f32[2,1,32], index: 8, kind: input, shape index: {}]   ;;  %s4931_s9 = inlined_call_operand.vmem [shape: bf16[2,32,128], index: 9, kind: input, shape index: {}]   ;;  %s4932_s10 = inlined_call_operand.vmem [shape: f32[2,1,128], index: 10, kind: input, shape index: {}]   ;;  %s4933_s11 = inlined_call_operand.vmem [shape: bf16[2,128,32], index: 11, kind: input, shape index: {}]   ;;  %s4934_s12 = inlined_call_operand.vmem [shape: f32[2,1,32], index: 12, kind: input, shape index: {}]   ;;  %s4935_s13 = inlined_call_operand.vmem [shape: f32[1,32], index: 13, kind: input, shape index: {}]   ;;  %s4936_s14 = inlined_call_operand.vmem [shape: f32[1,32], index: 14, kind: input, shape index: {}]   ;;  %s4937_s15 = inlined_call_operand.vmem [shape: f32[2,24,32], index: 15, kind: output, shape index: {}]  }
   0x1   :  { %4942 = sst [smem:[#allocation7_spill]] %s4925_s3  ;;  %s4034_s20 = smov 0  }
   0x2   :  { %4943 = sst [smem:[#allocation8_spill]] %s4927_s5 }
   0x3   :  { %4944 = sst [smem:[#allocation9_spill]] %s4935_s13 }
   0x4   :  { %4945 = sst [smem:[#allocation10_spill]] %s4936_s14 }
   0x5   :  { %4946 = sst [smem:[#allocation11_spill]] %s4937_s15 }
   0x6 LB: > { %4947 = sst [smem:[#allocation3_spill]] %s3933_s19  ;;  %s34_s21 = sadd.s32 1, %s3933_s19  ;;  %s3937_s20 = sphi %s4034_s20, %s25_s20   ;;  %s3933_s19 = sphi %s4032_s19, %s4964_s19   ;;  %s3929_s18 = sphi %s4030_s18, %s4963_s18  }
   0x7   : > { %4948 = sst [smem:[#allocation4_spill]] %s3937_s20  ;;  %p3245_p0 = scmp.ge.s32.totalorder %s3937_s20, 1 }
   0x8   : > { %p35_p1 = scmp.ge.s32.totalorder %s34_s21, 2  ;;  %p555_p2 = scmp.lt.s32.totalorder %s3937_s20, 3 }
   0xa   : > { %s4966_s21 = smov (%p35_p1, %s34_s21), 0  ;;  %p556_p3 = pnand %p3245_p0, %p555_p2 }
   0xb   : > { %4949 = sst [smem:[#allocation5_spill]] %s4966_s21 }
   0xc   : > { %559 = sbr.rel (%p556_p3) target bundleno = 2993 (0xbb1), region = 80 }
  0x11   : > { %p656_p4 = scmp.lt.s32.totalorder %s3929_s18, 1  ;;  %s4950_s3 = sld [smem:[#allocation7_spill]] }
  0x12   : > { %s4951_s5 = sld [smem:[#allocation8_spill]]  ;;  %p3254_p5 = scmp.ne.s32.totalorder %s3929_s18, 0 }
  0x13   : > { %s4052_s22 = scalar_select %p656_p4, %s3929_s18, 1 }
  0x15   : > { %s3343_s29 = sshll.u32 %s4052_s22, 4  ;;  %s680_s13 = scalar_lea.vmem %s4929_s7, %s4052_s22 }
  0x16   : > { %s683_s17 = scalar_lea.vmem %s4930_s8, %s4052_s22  ;;  %s699_s30 = scalar_lea.vmem %s4934_s12, %s4052_s22 }
  0x17   : > { %s4070_s21 = scalar_lea.vmem %s4950_s3, %s3343_s29  ;;  %s4092_s3 = scalar_lea.vmem %s4931_s9, %s3343_s29 }
  0x18   : > { %s4075_s15 = scalar_lea.vmem %s4951_s5, %s3343_s29  ;;  %s691_s5 = scalar_lea.vmem %s4932_s10, %s4052_s22 }
  0x19   : > { %4952 = sst [smem:[#allocation6_spill]] %s4075_s15  ;;  %s3346_s15 = sshll.u32 %s4052_s22, 6 }
  0x1a   : > { %s4102_s26 = scalar_lea.vmem %s4933_s11, %s3346_s15  ;;  %711 = sbr.rel (%p3254_p5) target bundleno = 35 (0x23), region = 84 }
  0x1f   : > { %v712_v0 = vld [vmem:[%s4922_s0] sm:$0xff]  ;;  %vm718_vm0 = vcmask 261120   ;;  %v713_v1 = vld [vmem:[%s4922_s0 + $0x8] sm:$0xff]  ;;  %v714_v2 = vld [vmem:[%s4922_s0 + $0x10] sm:$0xff] }
  0x20   : > { %719 = vst.msk [vmem:[#allocation2] sm:$0xff] %vm718_vm0, %v712_v0  ;;  %720 = vst.msk [vmem:[#allocation2 + $0x8] sm:$0xff] %vm718_vm0, %v713_v1  ;;  %v715_v3 = vld [vmem:[%s4922_s0 + $0x18] sm:$0xff]  ;;  %v716_v4 = vld [vmem:[%s4922_s0 + $0x20] sm:$0xff] }
  0x21   : > { %721 = vst.msk [vmem:[#allocation2 + $0x10] sm:$0xff] %vm718_vm0, %v714_v2  ;;  %v717_v5 = vld [vmem:[%s4922_s0 + $0x28] sm:$0xff]  ;;  %722 = vst.msk [vmem:[#allocation2 + $0x18] sm:$0xff] %vm718_vm0, %v715_v3 }
  0x22   : > { %723 = vst.msk [vmem:[#allocation2 + $0x20] sm:$0xff] %vm718_vm0, %v716_v4  ;;  %724 = vst.msk [vmem:[#allocation2 + $0x28] sm:$0xff] %vm718_vm0, %v717_v5 }
  0x23 PF: > { %vm737_vm1 = vcmask 261120   ;;  %v3751_v48 = vld [vmem:[%s4070_s21 + $0x8] sm:$0xff]   ;;  %v3939_v49 = vmov 0.0   ;;  %vm3940_vm2 = vmmov 0   ;;  %v3752_v50 = vld [vmem:[%s4070_s21] sm:$0xff]   ;;  %s4953_s23 = scalar_lea.vmem %s4923_s1, %s4052_s22  ;;  %s4954_s20 = scalar_lea.vmem %s4924_s2, %s4052_s22  ;;  %vm992_vm3 = vcmask 64512  }
  0x24   : > { %3443 = vmatprep.subr.bf16.mxu1 %v3939_v49  ;;  %3447 = vmatprep.mubr.msk.bf16.mxu1 %vm3940_vm2, %v3939_v49  ;;  %s4955_s25 = scalar_lea.vmem %s4926_s4, %s4052_s22  ;;  %s3941_s28 = smov 120   ;;  %vm1872_vm4 = vcmask 1043456   ;;  %vm1580_vm6 = vcmask 195584   ;;  %vm2436_vm7 = vcmask 130048  }
  0x25   : > { %3444 = vmatpush3.bf16.msra.mxu1 %v3751_v48  ;;  %s3942_s27 = smov 112   ;;  %s3943_s16 = smov 104  }
  0x26   : > { %3445 = vmatprep.subr.bf16.mxu1 %v3939_v49  ;;  %s3944_s21 = smov 96   ;;  %s3945_s29 = smov 64  }
  0x27   : > { %v725_v6 = vld [vmem:[#allocation2] sm:$0xff]  ;;  %v726_v8 = vld [vmem:[#allocation2 + $0x8] sm:$0xff]  ;;  %s3947_s24 = smov 8   ;;  %s3948_s19 = smov 16  }
  0x28   : > { %v727_v7 = vld [vmem:[#allocation2 + $0x10] sm:$0xff]  ;;  %v738_v9 = vsel %vm737_vm1, %v725_v6, 0.0  ;;  %v728_v11 = vld [vmem:[#allocation2 + $0x18] sm:$0xff]  ;;  %v741_v14 = vsel %vm737_vm1, %v726_v8, 0.0  ;;  %p3336_p6 = scmp.ne.s32.totalorder %s3929_s18, 1 }
  0x29   : > { %v744_v10 = vsel %vm737_vm1, %v727_v7, 0.0  ;;  %v729_v12 = vld [vmem:[#allocation2 + $0x20] sm:$0xff]  ;;  %v730_v13 = vld [vmem:[#allocation2 + $0x28] sm:$0xff]  ;;  %739 = vadd.xlane.f32.xlu0 %v738_v9  ;;  %v747_v15 = vsel %vm737_vm1, %v728_v11, 0.0  ;;  %3446 = vmatpush3.bf16.msra.mxu1 %v3752_v50 }
  0x2a   : > { %745 = vadd.xlane.f32.xlu1 %v744_v10  ;;  %v750_v16 = vsel %vm737_vm1, %v729_v12, 0.0  ;;  %v753_v17 = vsel %vm737_vm1, %v730_v13, 0.0 }
  0x2d   : > { %742 = vadd.xlane.f32.xlu0 %v741_v14 }
  0x2e   : > { %748 = vadd.xlane.f32.xlu1 %v747_v15 }
  0x31   : > { %751 = vadd.xlane.f32.xlu0 %v750_v16 }
  0x32   : > { %754 = vadd.xlane.f32.xlu1 %v753_v17 }
  0xb2   : > { %v740_v18 = vpop.xlane.xlu0 %739 }
  0xb3   : > { %v746_v19 = vpop.xlane.xlu1 %745  ;;  %v757_v20 = vmul.f32 0.03125, %v740_v18 }
  0xb4   : > { %v759_v21 = vmul.f32 0.03125, %v746_v19 }
  0xb5   : > { %v4133_v22 = vsub.f32 %v725_v6, %v757_v20 }
  0xb6   : > { %v4135_v23 = vsub.f32 %v727_v7, %v759_v21  ;;  %v743_v24 = vpop.xlane.xlu0 %742  ;;  %v3255_v7 = vld [vmem:[%s4953_s23] ss:$0 sm:$0xff]  ;;  %s4956_s23 = sld [smem:[#allocation6_spill]] }
  0xb7   : > { %v749_v25 = vpop.xlane.xlu1 %748  ;;  %v758_v26 = vmul.f32 0.03125, %v743_v24  ;;  %v769_v28 = vmul.f32 %v4133_v22, %v4133_v22 }
  0xb8   : > { %v760_v27 = vmul.f32 0.03125, %v749_v25  ;;  %v771_v29 = vmul.f32 %v4135_v23, %v4135_v23 }
  0xb9   : > { %v764_v30 = vsub.f32 %v726_v8, %v758_v26  ;;  %v775_v32 = vsel %vm737_vm1, %v769_v28, 0.0 }
  0xba   : > { %v4141_v31 = vsub.f32 %v728_v11, %v760_v27  ;;  %776 = vadd.xlane.f32.xlu0 %v775_v32  ;;  %v752_v33 = vpop.xlane.xlu0 %751  ;;  %v781_v35 = vsel %vm737_vm1, %v771_v29, 0.0 }
  0xbb   : > { %v755_v34 = vpop.xlane.xlu1 %754  ;;  %v761_v36 = vmul.f32 0.03125, %v752_v33  ;;  %v770_v38 = vmul.f32 %v764_v30, %v764_v30 }
  0xbc   : > { %v762_v37 = vmul.f32 0.03125, %v755_v34  ;;  %v772_v39 = vmul.f32 %v4141_v31, %v4141_v31  ;;  %v3257_v34 = vld [vmem:[%s4955_s25] ss:$0 sm:$0xff]  ;;  %s4957_s25 = scalar_lea.vmem %s4928_s6, %s4052_s22 }
  0xbd   : > { %v4147_v40 = vsub.f32 %v729_v12, %v761_v36  ;;  %v778_v42 = vsel %vm737_vm1, %v770_v38, 0.0  ;;  %v3256_v12 = vld [vmem:[%s4954_s20] ss:$0 sm:$0xff]  ;;  %s3949_s20 = smov 24  }
  0xbe   : > { %v4149_v41 = vsub.f32 %v730_v13, %v762_v37  ;;  %782 = vadd.xlane.f32.xlu0 %v781_v35  ;;  %779 = vadd.xlane.f32.xlu1 %v778_v42  ;;  %v784_v43 = vsel %vm737_vm1, %v772_v39, 0.0 }
  0xbf   : > { %v773_v44 = vmul.f32 %v4147_v40, %v4147_v40 }
  0xc0   : > { %v774_v45 = vmul.f32 %v4149_v41, %v4149_v41 }
  0xc1   : > { %v787_v46 = vsel %vm737_vm1, %v773_v44, 0.0 }
  0xc2   : > { %785 = vadd.xlane.f32.xlu1 %v784_v43  ;;  %788 = vadd.xlane.f32.xlu0 %v787_v46  ;;  %v790_v47 = vsel %vm737_vm1, %v774_v45, 0.0 }
  0xc6   : > { %791 = vadd.xlane.f32.xlu1 %v790_v47 }
 0x143   : > { %v777_v51 = vpop.xlane.xlu0 %776 }
 0x144   : > { %v793_v52 = vmul.f32 0.03125, %v777_v51 }
 0x146   : > { %v799_v53 = vadd.f32 1e-05, %v793_v52 }
 0x147   : > { %v780_v54 = vpop.xlane.xlu1 %779  ;;  %v783_v55 = vpop.xlane.xlu0 %782 }
 0x148   : > { %3765 = vrsqrt.f32 %v799_v53  ;;  %v794_v56 = vmul.f32 0.03125, %v780_v54  ;;  %v795_v57 = vmul.f32 0.03125, %v783_v55 }
 0x14a   : > { %v800_v58 = vadd.f32 1e-05, %v794_v56  ;;  %v801_v59 = vadd.f32 1e-05, %v795_v57 }
 0x14b   : > { %v786_v60 = vpop.xlane.xlu1 %785  ;;  %v789_v61 = vpop.xlane.xlu0 %788 }
 0x14c   : > { %3767 = vrsqrt.f32 %v800_v58  ;;  %v796_v62 = vmul.f32 0.03125, %v786_v60  ;;  %v797_v0 = vmul.f32 0.03125, %v789_v61 }
 0x14d   : > { %3769 = vrsqrt.f32 %v801_v59 }
 0x14e   : > { %v802_v63 = vadd.f32 1e-05, %v796_v62  ;;  %v803_v3 = vadd.f32 1e-05, %v797_v0 }
 0x14f   : > { %v792_v1 = vpop.xlane.xlu1 %791 }
 0x150   : > { %3771 = vrsqrt.f32 %v802_v63  ;;  %v798_v2 = vmul.f32 0.03125, %v792_v1 }
 0x152   : > { %v804_v4 = vadd.f32 1e-05, %v798_v2 }
 0x154   : > { %3773 = vrsqrt.f32 %v804_v4 }
 0x155   : > { %v3766_v5 = vpop.eup %3765  ;;  %3775 = vrsqrt.f32 %v803_v3 }
 0x156   : > { %v811_v6 = vmul.f32 %v3766_v5, %v4133_v22 }
 0x158   : > { %v823_v10 = vmul.f32 %v3255_v7, %v811_v6 }
 0x159   : > { %v3768_v8 = vpop.eup %3767 }
 0x15a   : > { %v812_v9 = vmul.f32 %v3768_v8, %v764_v30  ;;  %v3770_v11 = vpop.eup %3769  ;;  %v835_v15 = vadd.f32 %v3256_v12, %v823_v10 }
 0x15b   : > { %v813_v17 = vmul.f32 %v3770_v11, %v4135_v23 }
 0x15c   : > { %v824_v13 = vmul.f32 %v3255_v7, %v812_v9 }
 0x15d   : > { %v3772_v14 = vpop.eup %3771  ;;  %v825_v22 = vmul.f32 %v3255_v7, %v813_v17 }
 0x15e   : > { %v836_v16 = vadd.f32 %v3256_v12, %v824_v13  ;;  %v814_v18 = vmul.f32 %v3772_v14, %v4141_v31 }
 0x15f   : > { %v837_v27 = vadd.f32 %v3256_v12, %v825_v22 }
 0x160   : > { %v841_v19 = vpack.c.bf16 %v836_v16, %v835_v15  ;;  %v826_v20 = vmul.f32 %v3255_v7, %v814_v18 }
 0x161   : > { %v3774_v21 = vpop.eup %3773 }
 0x162   : > { %3448 = vmatmul.mubr.msk.bf16.vlgmr.msra.gmra.mxu1 %vm737_vm1, %v841_v19  ;;  %v3776_v24 = vpop.eup %3775  ;;  %v838_v25 = vadd.f32 %v3256_v12, %v826_v20  ;;  %v816_v26 = vmul.f32 %v3774_v21, %v4149_v41 }
 0x163   : > { %3451 = vmatprep.mubr.msk.bf16.mxu1 %vm3940_vm2, %v3939_v49  ;;  %v815_v28 = vmul.f32 %v3776_v24, %v4147_v40 }
 0x164   : > { %v842_v23 = vpack.c.bf16 %v838_v25, %v837_v27  ;;  %v828_v29 = vmul.f32 %v3255_v7, %v816_v26 }
 0x165   : > { %v827_v30 = vmul.f32 %v3255_v7, %v815_v28 }
 0x166   : > { %v840_v31 = vadd.f32 %v3256_v12, %v828_v29 }
 0x167   : > { %v839_v32 = vadd.f32 %v3256_v12, %v827_v30 }
 0x169   : > { %v843_v33 = vpack.c.bf16 %v840_v31, %v839_v32 }
 0x16a   : > { %3452 = vmatmul.mubr.msk.bf16.gmra.mxu1 %vm737_vm1, %v842_v23 }
 0x16b   : > { %3455 = vmatprep.mubr.msk.bf16.mxu1 %vm3940_vm2, %v3939_v49 }
 0x172   : > { %3456 = vmatmul.mubr.msk.bf16.gmra.mxu1 %vm737_vm1, %v843_v33 }
 0x222   : > { %v910_v35 = vpop.f32.mrf.mxu1 }
 0x223   : > { %v911_v36 = vadd.f32 %v3257_v34, %v910_v35 }
 0x224   : > { %v3449_v37 = vpop.f32.mrf.mxu1 }
 0x225   : > { %v3347_v38 = vpack.c.bf16 %v911_v36, %v911_v36 }
 0x226   : > { %v913_v39 = vpop.f32.mrf.mxu1 }
 0x227   : > { %v914_v40 = vadd.f32 %v3257_v34, %v913_v39  ;;  %951 = vrot.lane.b32.xlu1 %v3347_v38, %s3941_s28 }
 0x228   : > { %v3450_v41 = vpop.f32.mrf.mxu1 }
 0x229   : > { %v4193_v42 = vpack.c.bf16 %v914_v40, %v911_v36  ;;  %v3348_v43 = vpack.c.bf16 %v914_v40, %v914_v40 }
 0x22a   : > { %v918_v44 = vpop.f32.mrf.mxu1 }
 0x22b   : > { %v919_v45 = vadd.f32 %v3257_v34, %v918_v44  ;;  %953 = vrot.lane.b32.xlu1 %v3348_v43, %s3941_s28  ;;  %3463 = vmatprep.mubr.msk.bf16.mxu1 %vm992_vm3, %v4193_v42 }
 0x22c   : > { %v3453_v46 = vpop.f32.mrf.mxu1 }
 0x22d   : > { %v4198_v47 = vpack.c.bf16 %v919_v45, %v919_v45 }
 0x22e   : > { %v921_v48 = vpop.f32.mrf.mxu1 }
 0x22f   : > { %955 = vrot.lane.b32.xlu0 %v4198_v47, %s3941_s28  ;;  %v922_v52 = vadd.f32 %v3257_v34, %v921_v48 }
 0x230   : > { %v3454_v50 = vpop.f32.mrf.mxu1 }
 0x231   : > { %v934_v57 = vpack.c.bf16 %v922_v52, %v919_v45  ;;  %v3350_v0 = vpack.c.bf16 %v922_v52, %v922_v52 }
 0x232   : > { %v926_v51 = vpop.f32.mrf.mxu1 }
 0x233   : > { %v927_v53 = vadd.f32 %v3257_v34, %v926_v51  ;;  %967 = vrot.lane.b32.xlu0 %v4198_v47, %s3942_s27  ;;  %v942_v62 = vunpack.c.h.b16 %v934_v57 }
 0x234   : > { %v3457_v54 = vpop.f32.mrf.mxu1 }
 0x235   : > { %v3351_v55 = vpack.c.bf16 %v927_v53, %v927_v53 }
 0x236   : > { %v929_v56 = vpop.f32.mrf.mxu1 }
 0x237   : > { %v930_v58 = vadd.f32 %v3257_v34, %v929_v56  ;;  %959 = vrot.lane.b32.xlu0 %v3351_v55, %s3941_s28 }
 0x238   : > { %v3458_v59 = vpop.f32.mrf.mxu1 }
 0x239   : > { %v935_v60 = vpack.c.bf16 %v930_v58, %v927_v53  ;;  %v4204_v61 = vpack.c.bf16 %v930_v58, %v930_v58 }
 0x23b   : > { %v943_v63 = vunpack.c.l.b16 %v935_v60  ;;  %965 = vrot.lane.b32.xlu0 %v3348_v43, %s3942_s27  ;;  %961 = vrot.lane.b32.xlu1 %v4204_v61, %s3941_s28 }
 0x23d   : > { %v4208_v1 = vpack.c.b16 %v943_v63, %v942_v62 }
 0x23f   : > { %979 = vrot.lane.b32.xlu0 %v4198_v47, %s3943_s16  ;;  %957 = vrot.lane.b32.xlu1 %v3350_v0, %s3941_s28 }
 0x240   : > { %3471 = vmatprep.mubr.msk.bf16.mxu0 %vm992_vm3, %v4208_v1 }
 0x243   : > { %971 = vrot.lane.b32.xlu0 %v3351_v55, %s3942_s27  ;;  %963 = vrot.lane.b32.xlu1 %v3347_v38, %s3942_s27 }
 0x247   : > { %977 = vrot.lane.b32.xlu0 %v3348_v43, %s3943_s16  ;;  %973 = vrot.lane.b32.xlu1 %v4204_v61, %s3942_s27 }
 0x24b   : > { %990 = vrot.lane.b32.xlu0 %v4198_v47, %s3944_s21  ;;  %969 = vrot.lane.b32.xlu1 %v3350_v0, %s3942_s27 }
 0x24f   : > { %983 = vrot.lane.b32.xlu0 %v3351_v55, %s3943_s16  ;;  %975 = vrot.lane.b32.xlu1 %v3347_v38, %s3943_s16 }
 0x253   : > { %1056 = vrot.lane.b32.xlu0 %v4204_v61, %s3944_s21  ;;  %985 = vrot.lane.b32.xlu1 %v4204_v61, %s3943_s16 }
 0x257   : > { %981 = vrot.lane.b32.xlu1 %v3350_v0, %s3943_s16  ;;  %1054 = vrot.lane.b32.xlu0 %v4208_v1, %s3944_s21 }
 0x25b   : > { %988 = vrot.lane.b32.xlu1 %v4193_v42, %s3944_s21 }
 0x299   : > { %v952_v2 = vpop.permute.xlu1 %951 }
 0x29d   : > { %v954_v5 = vpop.permute.xlu1 %953 }
 0x29e   : > { %v3273_v7 = vcombine.low %v952_v2, %v954_v5 }
 0x2a1   : > { %v956_v3 = vpop.permute.xlu0 %955 }
 0x2a2   : > { %v4224_v4 = vcombine.low %v956_v3, %v956_v3 }
 0x2a4   : > { %1125 = vrot.lane.b32.xlu1 %v4224_v4, %s3944_s21 }
 0x2a5   : > { %v968_v6 = vpop.permute.xlu0 %967 }
 0x2a6   : > { %v4229_v9 = vcombine.low %v968_v6, %v968_v6 }
 0x2a8   : > { %1123 = vrot.lane.b32.xlu1 %v3273_v7, %s3944_s21 }
 0x2a9   : > { %v960_v8 = vpop.permute.xlu0 %959 }
 0x2ac   : > { %1263 = vrot.lane.b32.xlu1 %v4229_v9, %s3944_s21 }
 0x2ad   : > { %v962_v10 = vpop.permute.xlu1 %961  ;;  %v966_v11 = vpop.permute.xlu0 %965 }
 0x2ae   : > { %v4233_v12 = vcombine.low %v962_v10, %v962_v10 }
 0x2b0   : > { %1194 = vrot.lane.b32.xlu0 %v4233_v12, %s3944_s21 }
 0x2b1   : > { %v958_v13 = vpop.permute.xlu1 %957  ;;  %v980_v14 = vpop.permute.xlu0 %979 }
 0x2b2   : > { %v3277_v15 = vcombine.low %v958_v13, %v960_v8  ;;  %v4242_v21 = vcombine.low %v980_v14, %v980_v14  ;;  %v3946_v13 = vmov -1e+30  }
 0x2b4   : > { %1192 = vrot.lane.b32.xlu0 %v3277_v15, %s3944_s21 }
 0x2b5   : > { %v964_v16 = vpop.permute.xlu1 %963  ;;  %v972_v17 = vpop.permute.xlu0 %971 }
 0x2b6   : > { %v4238_v18 = vcombine.low %v964_v16, %v966_v11 }
 0x2b8   : > { %1261 = vrot.lane.b32.xlu1 %v4238_v18, %s3944_s21 }
 0x2b9   : > { %v974_v19 = vpop.permute.xlu1 %973  ;;  %v978_v20 = vpop.permute.xlu0 %977 }
 0x2ba   : > { %v4244_v22 = vcombine.low %v974_v19, %v974_v19 }
 0x2bc   : > { %1332 = vrot.lane.b32.xlu0 %v4244_v22, %s3944_s21  ;;  %1401 = vrot.lane.b32.xlu1 %v4242_v21, %s3944_s21 }
 0x2bd   : > { %v970_v24 = vpop.permute.xlu1 %969  ;;  %v991_v25 = vpop.permute.xlu0 %990 }
 0x2be   : > { %v4250_v26 = vcombine.low %v970_v24, %v972_v17  ;;  %3647 = vmatprep.subr.msk.bf16.mxu1 %vm992_vm3, %v991_v25  ;;  %v1003_v27 = vsel %vm992_vm3, %v991_v25, 0 }
 0x2bf   : > { %3460 = vmatpush3.bf16.xpose.msra.mxu1 %v1003_v27 }
 0x2c0   : > { %1330 = vrot.lane.b32.xlu0 %v4250_v26, %s3944_s21 }
 0x2c1   : > { %v976_v28 = vpop.permute.xlu1 %975  ;;  %v984_v23 = vpop.permute.xlu0 %983 }
 0x2c2   : > { %v4256_v29 = vcombine.low %v976_v28, %v978_v20 }
 0x2c4   : > { %1399 = vrot.lane.b32.xlu1 %v4256_v29, %s3944_s21 }
 0x2c5   : > { %v986_v30 = vpop.permute.xlu1 %985  ;;  %v1057_v31 = vpop.permute.xlu0 %1056 }
 0x2c6   : > { %v4260_v32 = vcombine.low %v986_v30, %v986_v30  ;;  %3649 = vmatprep.subr.msk.bf16.mxu0 %vm992_vm3, %v1057_v31  ;;  %v1068_v33 = vsel %vm992_vm3, %v1057_v31, 0 }
 0x2c7   : > { %3468 = vmatpush3.bf16.xpose.msra.mxu0 %v1068_v33 }
 0x2c8   : > { %1470 = vrot.lane.b32.xlu0 %v4260_v32, %s3944_s21 }
 0x2c9   : > { %v982_v34 = vpop.permute.xlu1 %981  ;;  %v1055_v35 = vpop.permute.xlu0 %1054 }
 0x2ca   : > { %v4266_v36 = vcombine.low %v982_v34, %v984_v23  ;;  %3650 = vmatprep.subr.msk.bf16.mxu0 %vm992_vm3, %v1055_v35  ;;  %v1065_v39 = vsel %vm992_vm3, %v1055_v35, 0 }
 0x2cc   : > { %1863 = vrot.lane.b32.xlu0 %v4198_v47, %s3945_s29  ;;  %1468 = vrot.lane.b32.xlu1 %v4266_v36, %s3944_s21 }
 0x2cd   : > { %v989_v37 = vpop.permute.xlu1 %988 }
 0x2ce   : > { %v1000_v38 = vsel %vm992_vm3, %v989_v37, 0  ;;  %3648 = vmatprep.subr.msk.bf16.mxu1 %vm992_vm3, %v989_v37 }
 0x2cf   : > { %3462 = vmatpush3.bf16.xpose.msra.mxu1 %v1000_v38  ;;  %3470 = vmatpush3.bf16.xpose.msra.mxu0 %v1065_v39 }
 0x2d0   : > { %1988 = vrot.lane.b32.xlu0 %v4224_v4, %s3945_s29  ;;  %1861 = vrot.lane.b32.xlu1 %v4193_v42, %s3945_s29 }
 0x2d4   : > { %1926 = vrot.lane.b32.xlu0 %v4204_v61, %s3945_s29  ;;  %1986 = vrot.lane.b32.xlu1 %v3273_v7, %s3945_s29 }
 0x2d6   : > { %3464 = vmatmul.mubr.msk.bf16.vlgmr.msra.gmra.mxu1 %vm992_vm3, %v4198_v47  ;;  %3472 = vmatmul.mubr.msk.bf16.vlgmr.msra.gmra.mxu0 %vm992_vm3, %v4204_v61 }
 0x2d7   : > { %3479 = vmatprep.mubr.msk.bf16.mxu1 %vm992_vm3, %v3273_v7  ;;  %3487 = vmatprep.mubr.msk.bf16.mxu0 %vm992_vm3, %v3277_v15 }
 0x2d8   : > { %1924 = vrot.lane.b32.xlu0 %v4208_v1, %s3945_s29  ;;  %2112 = vrot.lane.b32.xlu1 %v4229_v9, %s3945_s29 }
 0x2dc   : > { %2110 = vrot.lane.b32.xlu0 %v4238_v18, %s3945_s29  ;;  %2048 = vrot.lane.b32.xlu1 %v3277_v15, %s3945_s29 }
 0x2e0   : > { %2236 = vrot.lane.b32.xlu0 %v4242_v21, %s3945_s29  ;;  %2050 = vrot.lane.b32.xlu1 %v4233_v12, %s3945_s29 }
 0x2e4   : > { %2174 = vrot.lane.b32.xlu1 %v4244_v22, %s3945_s29 }
 0x316   : > { %v1126_v40 = vpop.permute.xlu1 %1125 }
 0x317   : > { %v1137_v41 = vsel %vm992_vm3, %v1126_v40, 0  ;;  %3651 = vmatprep.subr.msk.bf16.mxu1 %vm992_vm3, %v1126_v40 }
 0x318   : > { %3476 = vmatpush3.bf16.xpose.msra.mxu1 %v1137_v41 }
 0x31a   : > { %v1124_v42 = vpop.permute.xlu1 %1123 }
 0x31b   : > { %3652 = vmatprep.subr.msk.bf16.mxu1 %vm992_vm3, %v1124_v42  ;;  %v1134_v43 = vsel %vm992_vm3, %v1124_v42, 0 }
 0x31e   : > { %v1264_v44 = vpop.permute.xlu1 %1263 }
 0x31f   : > { %v1275_v48 = vsel %vm992_vm3, %v1264_v44, 0 }
 0x320   : > { %3478 = vmatpush3.bf16.xpose.msra.mxu1 %v1134_v43 }
 0x321   : > { %3655 = vmatprep.subr.msk.bf16.mxu1 %vm992_vm3, %v1264_v44 }
 0x322   : > { %v1195_v45 = vpop.permute.xlu0 %1194 }
 0x323   : > { %v1206_v46 = vsel %vm992_vm3, %v1195_v45, 0  ;;  %3653 = vmatprep.subr.msk.bf16.mxu0 %vm992_vm3, %v1195_v45 }
 0x324   : > { %3484 = vmatpush3.bf16.xpose.msra.mxu0 %v1206_v46 }
 0x326   : > { %v1193_v47 = vpop.permute.xlu0 %1192 }
 0x327   : > { %3480 = vmatmul.mubr.msk.bf16.vlgmr.msra.gmra.mxu1 %vm992_vm3, %v4224_v4  ;;  %3654 = vmatprep.subr.msk.bf16.mxu0 %vm992_vm3, %v1193_v47  ;;  %v1203_v51 = vsel %vm992_vm3, %v1193_v47, 0 }
 0x328   : > { %3492 = vmatpush3.bf16.xpose.msra.mxu1 %v1275_v48  ;;  %3495 = vmatprep.mubr.msk.bf16.mxu1 %vm992_vm3, %v4238_v18 }
 0x32a   : > { %v1262_v50 = vpop.permute.xlu1 %1261 }
 0x32b   : > { %3656 = vmatprep.subr.msk.bf16.mxu1 %vm992_vm3, %v1262_v50  ;;  %v1272_v53 = vsel %vm992_vm3, %v1262_v50, 0 }
 0x32c   : > { %3486 = vmatpush3.bf16.xpose.msra.mxu0 %v1203_v51 }
 0x32e   : > { %v1333_v52 = vpop.permute.xlu0 %1332  ;;  %v1402_v54 = vpop.permute.xlu1 %1401 }
 0x32f   : > { %3657 = vmatprep.subr.msk.bf16.mxu0 %vm992_vm3, %v1333_v52  ;;  %v1344_v55 = vsel %vm992_vm3, %v1333_v52, 0  ;;  %v1413_v57 = vsel %vm992_vm3, %v1402_v54, 0 }
 0x330   : > { %3494 = vmatpush3.bf16.xpose.msra.mxu1 %v1272_v53 }
 0x331   : > { %3659 = vmatprep.subr.msk.bf16.mxu1 %vm992_vm3, %v1402_v54 }
 0x332   : > { %v1331_v56 = vpop.permute.xlu0 %1330 }
 0x333   : > { %3488 = vmatmul.mubr.msk.bf16.vlgmr.msra.gmra.mxu0 %vm992_vm3, %v4233_v12  ;;  %v1341_v60 = vsel %vm992_vm3, %v1331_v56, 0 }
 0x334   : > { %3500 = vmatpush3.bf16.xpose.msra.mxu0 %v1344_v55  ;;  %3503 = vmatprep.mubr.msk.bf16.mxu0 %vm992_vm3, %v4250_v26 }
 0x335   : > { %3658 = vmatprep.subr.msk.bf16.mxu0 %vm992_vm3, %v1331_v56 }
 0x336   : > { %v1400_v58 = vpop.permute.xlu1 %1399 }
 0x337   : > { %3496 = vmatmul.mubr.msk.bf16.vlgmr.msra.gmra.mxu1 %vm992_vm3, %v4229_v9  ;;  %v1410_v61 = vsel %vm992_vm3, %v1400_v58, 0  ;;  %v731_v9 = vlaneseq }
 0x338   : > { %3508 = vmatpush3.bf16.xpose.msra.mxu1 %v1413_v57  ;;  %3511 = vmatprep.mubr.msk.bf16.mxu1 %vm992_vm3, %v4256_v29 }
 0x339   : > { %3660 = vmatprep.subr.msk.bf16.mxu1 %vm992_vm3, %v1400_v58  ;;  %v732_v10 = vand.u32 127, %v731_v9 }
 0x33a   : > { %v1471_v59 = vpop.permute.xlu0 %1470 }
 0x33b   : > { %v1482_v0 = vsel %vm992_vm3, %v1471_v59, 0  ;;  %vm733_vm5 = vcmp.lt.s32.totalorder %v732_v10, 17 }
 0x33c   : > { %3502 = vmatpush3.bf16.xpose.msra.mxu0 %v1341_v60  ;;  %v4358_v14 = vsel %vm733_vm5, 0.0, %v3946_v13 }
 0x33d   : > { %3661 = vmatprep.subr.msk.bf16.mxu0 %vm992_vm3, %v1471_v59 }
 0x33e   : > { %v1864_v62 = vpop.permute.xlu0 %1863  ;;  %v1469_v63 = vpop.permute.xlu1 %1468 }
 0x33f   : > { %v1874_v2 = vsel %vm1872_vm4, %v1864_v62, 0  ;;  %v1479_v4 = vsel %vm992_vm3, %v1469_v63, 0 }
 0x340   : > { %3510 = vmatpush3.bf16.xpose.msra.mxu1 %v1410_v61 }
 0x341   : > { %3663 = vmatprep.subr.msk.bf16.mxu1 %vm1872_vm4, %v1864_v62 }
 0x342   : > { %v1989_v1 = vpop.permute.xlu0 %1988  ;;  %v1862_v3 = vpop.permute.xlu1 %1861 }
 0x343   : > { %3504 = vmatmul.mubr.msk.bf16.vlgmr.msra.gmra.mxu0 %vm992_vm3, %v4244_v22  ;;  %v1998_v7 = vsel %vm1872_vm4, %v1989_v1, 0 }
 0x344   : > { %3516 = vmatpush3.bf16.xpose.msra.mxu0 %v1482_v0  ;;  %3519 = vmatprep.mubr.msk.bf16.mxu0 %vm992_vm3, %v4266_v36 }
 0x345   : > { %3662 = vmatprep.subr.msk.bf16.mxu0 %vm992_vm3, %v1469_v63 }
 0x346   : > { %v4346_v5 = vpop.permute.xlu0 %1926  ;;  %v1987_v6 = vpop.permute.xlu1 %1986 }
 0x347   : > { %3512 = vmatmul.mubr.msk.bf16.vlgmr.msra.gmra.mxu1 %vm992_vm3, %v4242_v21 }
 0x348   : > { %3524 = vmatpush3.bf16.msra.mxu1 %v1874_v2 }
 0x349   : > { %3525 = vmatprep.subr.bf16.mxu1 %v1862_v3 }
 0x34a   : > { %v4354_v8 = vpop.permute.xlu1 %2112 }
 0x34c   : > { %3518 = vmatpush3.bf16.xpose.msra.mxu0 %v1479_v4  ;;  %3526 = vmatpush3.bf16.msra.mxu1 %v1862_v3 }
 0x34d   : > { %3664 = vmatprep.subr.msk.bf16.mxu1 %vm1872_vm4, %v4346_v5  ;;  %3665 = vmatprep.subr.msk.bf16.mxu0 %vm1872_vm4, %v1989_v1 }
 0x353   : > { %3520 = vmatmul.mubr.msk.bf16.vlgmr.msra.gmra.mxu0 %vm992_vm3, %v4260_v32 }
 0x354   : > { %3540 = vmatpush3.bf16.msra.mxu0 %v1998_v7 }
 0x355   : > { %3541 = vmatprep.subr.bf16.mxu0 %v1987_v6 }
 0x358   : > { %3542 = vmatpush3.bf16.msra.mxu0 %v1987_v6 }
 0x359   : > { %3667 = vmatprep.subr.msk.bf16.mxu0 %vm1872_vm4, %v4354_v8 }
 0x396   : > { %v3465_v11 = vpop.f32.mrf.mxu1  ;;  %v3473_v12 = vpop.f32.mrf.mxu0 }
 0x397   : > { %v1534_v15 = vmul.f32 0.35355338, %v3465_v11  ;;  %v1537_v22 = vmul.f32 0.35355338, %v3473_v12 }
 0x398   : > { %v1039_v16 = vpop.f32.mrf.mxu1  ;;  %v1104_v17 = vpop.f32.mrf.mxu0 }
 0x399   : > { %v1532_v18 = vmul.f32 0.35355338, %v1039_v16  ;;  %v4361_v19 = vadd.f32 %v1534_v15, %v4358_v14  ;;  %v1535_v31 = vmul.f32 0.35355338, %v1104_v17  ;;  %v4374_v35 = vadd.f32 %v1537_v22, %v4358_v14 }
 0x39a   : > { %v3466_v20 = vpop.f32.mrf.mxu1  ;;  %v3474_v21 = vpop.f32.mrf.mxu0 }
 0x39b   : > { %v1587_v24 = vsel %vm1580_vm6, %v4361_v19, -inf  ;;  %v4366_v25 = vadd.f32 %v1532_v18, %v4358_v14  ;;  %v1596_v39 = vsel %vm1580_vm6, %v4374_v35, -inf  ;;  %v4384_v40 = vadd.f32 %v1535_v31, %v4358_v14 }
 0x39c   : > { %1588 = vmax.xlane.f32.xlu0 %v1587_v24  ;;  %v1042_v27 = vpop.f32.mrf.mxu1  ;;  %v1107_v28 = vpop.f32.mrf.mxu0 }
 0x39d   : > { %v1533_v23 = vmul.f32 0.35355338, %v1042_v27  ;;  %v1536_v30 = vmul.f32 0.35355338, %v1107_v28  ;;  %v1581_v33 = vsel %vm1580_vm6, %v4366_v25, -inf  ;;  %v1590_v42 = vsel %vm1580_vm6, %v4384_v40, -inf }
 0x39f   : > { %v4371_v34 = vadd.f32 %v1533_v23, %v4358_v14  ;;  %v4379_v38 = vadd.f32 %v1536_v30, %v4358_v14 }
 0x3a0   : > { %1582 = vmax.xlane.f32.xlu0 %v1581_v33 }
 0x3a1   : > { %v1584_v37 = vsel %vm1580_vm6, %v4371_v34, -inf  ;;  %v1593_v41 = vsel %vm1580_vm6, %v4379_v38, -inf }
 0x3a2   : > { %1585 = vmax.xlane.f32.xlu1 %v1584_v37 }
 0x3a4   : > { %1597 = vmax.xlane.f32.xlu0 %v1596_v39 }
 0x3a6   : > { %1594 = vmax.xlane.f32.xlu1 %v1593_v41 }
 0x3a8   : > { %1591 = vmax.xlane.f32.xlu0 %v1590_v42 }
 0x3e7   : > { %v3481_v43 = vpop.f32.mrf.mxu1 }
 0x3e8   : > { %v1540_v44 = vmul.f32 0.35355338, %v3481_v43 }
 0x3e9   : > { %v1173_v45 = vpop.f32.mrf.mxu1 }
 0x3ea   : > { %v1538_v46 = vmul.f32 0.35355338, %v1173_v45  ;;  %v4391_v47 = vadd.f32 %v1540_v44, %v4358_v14 }
 0x3eb   : > { %v3482_v48 = vpop.f32.mrf.mxu1 }
 0x3ec   : > { %v1605_v50 = vsel %vm1580_vm6, %v4391_v47, -inf  ;;  %v4396_v51 = vadd.f32 %v1538_v46, %v4358_v14 }
 0x3ed   : > { %v1176_v52 = vpop.f32.mrf.mxu1  ;;  %1606 = vmax.xlane.f32.xlu1 %v1605_v50 }
 0x3ee   : > { %v1539_v53 = vmul.f32 0.35355338, %v1176_v52  ;;  %v1599_v54 = vsel %vm1580_vm6, %v4396_v51, -inf }
 0x3ef   : > { %1600 = vmax.xlane.f32.xlu0 %v1599_v54 }
 0x3f0   : > { %v4401_v55 = vadd.f32 %v1539_v53, %v4358_v14 }
 0x3f2   : > { %v1602_v56 = vsel %vm1580_vm6, %v4401_v55, -inf }
 0x3f3   : > { %1603 = vmax.xlane.f32.xlu0 %v1602_v56  ;;  %v3489_v57 = vpop.f32.mrf.mxu0 }
 0x3f4   : > { %v1543_v58 = vmul.f32 0.35355338, %v3489_v57 }
 0x3f5   : > { %v1242_v59 = vpop.f32.mrf.mxu0 }
 0x3f6   : > { %v1541_v60 = vmul.f32 0.35355338, %v1242_v59  ;;  %v4406_v61 = vadd.f32 %v1543_v58, %v4358_v14 }
 0x3f7   : > { %v3490_v62 = vpop.f32.mrf.mxu0  ;;  %v3497_v63 = vpop.f32.mrf.mxu1 }
 0x3f8   : > { %v1546_v0 = vmul.f32 0.35355338, %v3497_v63  ;;  %v1614_v1 = vsel %vm1580_vm6, %v4406_v61, -inf  ;;  %v4411_v2 = vadd.f32 %v1541_v60, %v4358_v14 }
 0x3f9   : > { %v1311_v3 = vpop.f32.mrf.mxu1  ;;  %1615 = vmax.xlane.f32.xlu0 %v1614_v1  ;;  %v1245_v4 = vpop.f32.mrf.mxu0 }
 0x3fa   : > { %v1544_v6 = vmul.f32 0.35355338, %v1311_v3  ;;  %v4414_v7 = vadd.f32 %v1546_v0, %v4358_v14  ;;  %v1542_v10 = vmul.f32 0.35355338, %v1245_v4  ;;  %v1608_v12 = vsel %vm1580_vm6, %v4411_v2, -inf  ;;  %v4465_v1 = vpop.permute.xlu0 %1924 }
 0x3fb   : > { %v3498_v9 = vpop.f32.mrf.mxu1 }
 0x3fc   : > { %v1623_v11 = vsel %vm1580_vm6, %v4414_v7, -inf  ;;  %v4421_v13 = vadd.f32 %v1544_v6, %v4358_v14  ;;  %v4429_v20 = vadd.f32 %v1542_v10, %v4358_v14 }
 0x3fd   : > { %v1314_v15 = vpop.f32.mrf.mxu1  ;;  %1624 = vmax.xlane.f32.xlu1 %v1623_v11  ;;  %1609 = vmax.xlane.f32.xlu0 %v1608_v12  ;;  %v4475_v12 = vpop.permute.xlu1 %2048 }
 0x3fe   : > { %v1545_v16 = vmul.f32 0.35355338, %v1314_v15  ;;  %v1617_v17 = vsel %vm1580_vm6, %v4421_v13, -inf  ;;  %v1611_v27 = vsel %vm1580_vm6, %v4429_v20, -inf  ;;  %v4477_v15 = vpop.permute.xlu0 %2110 }
 0x400   : > { %v4426_v18 = vadd.f32 %v1545_v16, %v4358_v14 }
 0x401   : > { %1618 = vmax.xlane.f32.xlu1 %v1617_v17  ;;  %v4481_v17 = vpop.permute.xlu1 %2050 }
 0x402   : > { %v1620_v21 = vsel %vm1580_vm6, %v4426_v18, -inf }
 0x403   : > { %1621 = vmax.xlane.f32.xlu0 %v1620_v21  ;;  %v3505_v22 = vpop.f32.mrf.mxu0  ;;  %v4483_v21 = vpop.permute.xlu0 %2236 }
 0x404   : > { %v1549_v24 = vmul.f32 0.35355338, %v3505_v22 }
 0x405   : > { %1612 = vmax.xlane.f32.xlu1 %v1611_v27  ;;  %v1380_v28 = vpop.f32.mrf.mxu0  ;;  %v4486_v27 = vpop.permute.xlu1 %2174 }
 0x406   : > { %v1547_v23 = vmul.f32 0.35355338, %v1380_v28  ;;  %v4436_v30 = vadd.f32 %v1549_v24, %v4358_v14 }
 0x407   : > { %v3506_v31 = vpop.f32.mrf.mxu0  ;;  %v3513_v33 = vpop.f32.mrf.mxu1 }
 0x408   : > { %v1552_v37 = vmul.f32 0.35355338, %v3513_v33  ;;  %v1632_v39 = vsel %vm1580_vm6, %v4436_v30, -inf  ;;  %v4441_v41 = vadd.f32 %v1547_v23, %v4358_v14 }
 0x409   : > { %v1449_v42 = vpop.f32.mrf.mxu1  ;;  %1633 = vmax.xlane.f32.xlu0 %v1632_v39  ;;  %v1383_v43 = vpop.f32.mrf.mxu0 }
 0x40a   : > { %v1550_v44 = vmul.f32 0.35355338, %v1449_v42  ;;  %v4444_v45 = vadd.f32 %v1552_v37, %v4358_v14  ;;  %v1548_v48 = vmul.f32 0.35355338, %v1383_v43  ;;  %v1626_v52 = vsel %vm1580_vm6, %v4441_v41, -inf }
 0x40b   : > { %v3514_v46 = vpop.f32.mrf.mxu1 }
 0x40c   : > { %v1641_v50 = vsel %vm1580_vm6, %v4444_v45, -inf  ;;  %v4451_v53 = vadd.f32 %v1550_v44, %v4358_v14  ;;  %v4459_v59 = vadd.f32 %v1548_v48, %v4358_v14 }
 0x40d   : > { %v1452_v54 = vpop.f32.mrf.mxu1  ;;  %1642 = vmax.xlane.f32.xlu1 %v1641_v50  ;;  %1627 = vmax.xlane.f32.xlu0 %v1626_v52 }
 0x40e   : > { %v1551_v56 = vmul.f32 0.35355338, %v1452_v54  ;;  %v1635_v57 = vsel %vm1580_vm6, %v4451_v53, -inf  ;;  %v1629_v0 = vsel %vm1580_vm6, %v4459_v59, -inf }
 0x410   : > { %v4456_v58 = vadd.f32 %v1551_v56, %v4358_v14 }
 0x411   : > { %1636 = vmax.xlane.f32.xlu1 %v1635_v57 }
 0x412   : > { %v1638_v60 = vsel %vm1580_vm6, %v4456_v58, -inf }
 0x413   : > { %1639 = vmax.xlane.f32.xlu0 %v1638_v60  ;;  %v3521_v62 = vpop.f32.mrf.mxu0 }
 0x414   : > { %v1555_v63 = vmul.f32 0.35355338, %v3521_v62 }
 0x415   : > { %1630 = vmax.xlane.f32.xlu1 %v1629_v0  ;;  %v1518_v3 = vpop.f32.mrf.mxu0 }
 0x416   : > { %v1553_v4 = vmul.f32 0.35355338, %v1518_v3  ;;  %v4468_v6 = vadd.f32 %v1555_v63, %v4358_v14 }
 0x417   : > { %v3522_v9 = vpop.f32.mrf.mxu0 }
 0x418   : > { %v1650_v10 = vsel %vm1580_vm6, %v4468_v6, -inf  ;;  %v4473_v11 = vadd.f32 %v1553_v4, %v4358_v14 }
 0x419   : > { %1651 = vmax.xlane.f32.xlu1 %v1650_v10  ;;  %v1521_v43 = vpop.f32.mrf.mxu0 }
 0x41a   : > { %v1644_v16 = vsel %vm1580_vm6, %v4473_v11, -inf  ;;  %v1554_v46 = vmul.f32 0.35355338, %v1521_v43 }
 0x41c   : > { %v4499_v50 = vadd.f32 %v1554_v46, %v4358_v14 }
 0x41d   : > { %1645 = vmax.xlane.f32.xlu1 %v1644_v16 }
 0x41e   : > { %v1647_v54 = vsel %vm1580_vm6, %v4499_v50, -inf }
 0x425   : > { %v1589_v22 = vpop.xlane.xlu0 %1588 }
 0x426   : > { %v1655_v24 = vsub.f32 %v4361_v19, %v1589_v22 }
 0x428   : > { %v1681_v28 = vmul.f32 1.442695, %v1655_v24 }
 0x429   : > { %v1583_v23 = vpop.xlane.xlu0 %1582 }
 0x42a   : > { %3777 = vpow2.f32 %v1681_v28  ;;  %v1653_v31 = vsub.f32 %v4366_v25, %v1583_v23 }
 0x42b   : > { %v1586_v33 = vpop.xlane.xlu1 %1585 }
 0x42c   : > { %v1677_v37 = vmul.f32 1.442695, %v1653_v31  ;;  %v1654_v39 = vsub.f32 %v4371_v34, %v1586_v33 }
 0x42d   : > { %v1598_v56 = vpop.xlane.xlu0 %1597 }
 0x42e   : > { %3779 = vpow2.f32 %v1677_v37  ;;  %v1679_v42 = vmul.f32 1.442695, %v1654_v39  ;;  %v1658_v60 = vsub.f32 %v4374_v35, %v1598_v56 }
 0x42f   : > { %v1595_v14 = vpop.xlane.xlu1 %1594 }
 0x430   : > { %3781 = vpow2.f32 %v1679_v42  ;;  %v1657_v57 = vsub.f32 %v4379_v38, %v1595_v14  ;;  %v1687_v0 = vmul.f32 1.442695, %v1658_v60 }
 0x431   : > { %v1592_v62 = vpop.xlane.xlu0 %1591 }
 0x432   : > { %v1685_v63 = vmul.f32 1.442695, %v1657_v57  ;;  %v1656_v3 = vsub.f32 %v4384_v40, %v1592_v62 }
 0x434   : > { %3783 = vpow2.f32 %v1685_v63  ;;  %v1683_v4 = vmul.f32 1.442695, %v1656_v3 }
 0x435   : > { %3785 = vpow2.f32 %v1687_v0 }
 0x436   : > { %3787 = vpow2.f32 %v1683_v4 }
 0x437   : > { %v4490_v44 = vpop.eup %3777 }
 0x438   : > { %v1731_v19 = vsel %vm1580_vm6, %v4490_v44, 0.0 }
 0x439   : > { %1732 = vadd.xlane.f32.xlu0 %v1731_v19 }
 0x43b   : > { %v4494_v48 = vpop.eup %3779 }
 0x43c   : > { %v1725_v25 = vsel %vm1580_vm6, %v4494_v48, 0.0 }
 0x43d   : > { %v4501_v34 = vpop.eup %3781  ;;  %1726 = vadd.xlane.f32.xlu0 %v1725_v25 }
 0x43e   : > { %v1728_v52 = vsel %vm1580_vm6, %v4501_v34, 0.0 }
 0x43f   : > { %1729 = vadd.xlane.f32.xlu1 %v1728_v52 }
 0x441   : > { %1648 = vmax.xlane.f32.xlu0 %v1647_v54  ;;  %v4514_v9 = vpop.eup %3783 }
 0x450   : > { %2172 = vrot.lane.b32.xlu1 %v4250_v26, %s3945_s29  ;;  %v4516_v26 = vpop.eup %3785 }
 0x451   : > { %v1740_v35 = vsel %vm1580_vm6, %v4516_v26, 0.0  ;;  %v4522_v38 = vpop.eup %3787 }
 0x452   : > { %v1734_v28 = vsel %vm1580_vm6, %v4522_v38, 0.0 }
 0x457   : > { %2234 = vrot.lane.b32.xlu0 %v4256_v29, %s3945_s29  ;;  %v1737_v29 = vsel %vm1580_vm6, %v4514_v9, 0.0 }
 0x474   : > { %1738 = vadd.xlane.f32.xlu1 %v1737_v29 }
 0x476   : > { %v1607_v10 = vpop.xlane.xlu1 %1606  ;;  %1741 = vadd.xlane.f32.xlu0 %v1740_v35 }
 0x477   : > { %v1661_v40 = vsub.f32 %v4391_v47, %v1607_v10 }
 0x478   : > { %v1601_v16 = vpop.xlane.xlu0 %1600 }
 0x479   : > { %v1693_v22 = vmul.f32 1.442695, %v1661_v40  ;;  %v1659_v24 = vsub.f32 %v4396_v51, %v1601_v16 }
 0x47a   : > { %1735 = vadd.xlane.f32.xlu0 %v1734_v28 }
 0x47b   : > { %3789 = vpow2.f32 %v1693_v22  ;;  %v1689_v23 = vmul.f32 1.442695, %v1659_v24 }
 0x47c   : > { %v1604_v31 = vpop.xlane.xlu0 %1603 }
 0x47d   : > { %3791 = vpow2.f32 %v1689_v23  ;;  %v1660_v33 = vsub.f32 %v4401_v55, %v1604_v31 }
 0x47f   : > { %v1691_v37 = vmul.f32 1.442695, %v1660_v33 }
 0x481   : > { %3793 = vpow2.f32 %v1691_v37 }
 0x482   : > { %v1616_v39 = vpop.xlane.xlu0 %1615 }
 0x483   : > { %v1664_v42 = vsub.f32 %v4406_v61, %v1616_v39 }
 0x485   : > { %v1699_v47 = vmul.f32 1.442695, %v1664_v42 }
 0x486   : > { %v1625_v43 = vpop.xlane.xlu1 %1624  ;;  %v1610_v46 = vpop.xlane.xlu0 %1609 }
 0x487   : > { %3795 = vpow2.f32 %v1699_v47  ;;  %v1667_v51 = vsub.f32 %v4414_v7, %v1625_v43  ;;  %v1662_v19 = vsub.f32 %v4411_v2, %v1610_v46 }
 0x488   : > { %v4532_v25 = vpop.eup %3789 }
 0x489   : > { %v1705_v52 = vmul.f32 1.442695, %v1667_v51  ;;  %v1695_v54 = vmul.f32 1.442695, %v1662_v19  ;;  %v1749_v55 = vsel %vm1580_vm6, %v4532_v25, 0.0 }
 0x48a   : > { %v4536_v56 = vpop.eup %3791  ;;  %v1619_v14 = vpop.xlane.xlu1 %1618  ;;  %1750 = vadd.xlane.f32.xlu1 %v1749_v55 }
 0x48b   : > { %3797 = vpow2.f32 %v1705_v52  ;;  %v1665_v61 = vsub.f32 %v4421_v13, %v1619_v14  ;;  %v1743_v2 = vsel %vm1580_vm6, %v4536_v56, 0.0 }
 0x48c   : > { %3799 = vpow2.f32 %v1695_v54  ;;  %v1622_v57 = vpop.xlane.xlu0 %1621 }
 0x48d   : > { %v1701_v60 = vmul.f32 1.442695, %v1665_v61  ;;  %v1666_v7 = vsub.f32 %v4426_v18, %v1622_v57 }
 0x48e   : > { %v4542_v62 = vpop.eup %3793  ;;  %v1613_v63 = vpop.xlane.xlu1 %1612  ;;  %1744 = vadd.xlane.f32.xlu1 %v1743_v2 }
 0x48f   : > { %3801 = vpow2.f32 %v1701_v60  ;;  %v1703_v0 = vmul.f32 1.442695, %v1666_v7  ;;  %v1663_v3 = vsub.f32 %v4429_v20, %v1613_v63  ;;  %v1746_v4 = vsel %vm1580_vm6, %v4542_v62, 0.0 }
 0x490   : > { %1747 = vadd.xlane.f32.xlu0 %v1746_v4 }
 0x491   : > { %3803 = vpow2.f32 %v1703_v0  ;;  %v1697_v13 = vmul.f32 1.442695, %v1663_v3 }
 0x492   : > { %v1634_v29 = vpop.xlane.xlu0 %1633 }
 0x493   : > { %3805 = vpow2.f32 %v1697_v13  ;;  %v1670_v18 = vsub.f32 %v4436_v30, %v1634_v29 }
 0x494   : > { %v4548_v35 = vpop.eup %3795 }
 0x495   : > { %v1711_v10 = vmul.f32 1.442695, %v1670_v18  ;;  %v1758_v40 = vsel %vm1580_vm6, %v4548_v35, 0.0 }
 0x496   : > { %v1643_v16 = vpop.xlane.xlu1 %1642  ;;  %1759 = vadd.xlane.f32.xlu0 %v1758_v40  ;;  %v1628_v22 = vpop.xlane.xlu0 %1627 }
 0x497   : > { %3807 = vpow2.f32 %v1711_v10  ;;  %v1673_v20 = vsub.f32 %v4444_v45, %v1643_v16  ;;  %v1668_v24 = vsub.f32 %v4441_v41, %v1628_v22 }
 0x498   : > { %v4554_v28 = vpop.eup %3797 }
 0x499   : > { %v4556_v23 = vpop.eup %3799  ;;  %v1707_v31 = vmul.f32 1.442695, %v1668_v24  ;;  %v1767_v30 = vsel %vm1580_vm6, %v4554_v28, 0.0  ;;  %v1717_v33 = vmul.f32 1.442695, %v1673_v20 }
 0x49a   : > { %v1637_v37 = vpop.xlane.xlu1 %1636  ;;  %1768 = vadd.xlane.f32.xlu1 %v1767_v30  ;;  %v1752_v39 = vsel %vm1580_vm6, %v4556_v23, 0.0 }
 0x49b   : > { %v1671_v42 = vsub.f32 %v4451_v53, %v1637_v37  ;;  %1753 = vadd.xlane.f32.xlu0 %v1752_v39  ;;  %3809 = vpow2.f32 %v1707_v31 }
 0x49c   : > { %v4563_v45 = vpop.eup %3801  ;;  %v1640_v41 = vpop.xlane.xlu0 %1639  ;;  %3811 = vpow2.f32 %v1717_v33 }
 0x49d   : > { %v1672_v47 = vsub.f32 %v4456_v58, %v1640_v41  ;;  %v1761_v43 = vsel %vm1580_vm6, %v4563_v45, 0.0  ;;  %v1713_v51 = vmul.f32 1.442695, %v1671_v42 }
 0x49e   : > { %v4568_v46 = vpop.eup %3803  ;;  %v1631_v19 = vpop.xlane.xlu1 %1630  ;;  %1762 = vadd.xlane.f32.xlu1 %v1761_v43 }
 0x49f   : > { %v1715_v52 = vmul.f32 1.442695, %v1672_v47  ;;  %v1669_v54 = vsub.f32 %v4459_v59, %v1631_v19  ;;  %v1764_v53 = vsel %vm1580_vm6, %v4568_v46, 0.0 }
 0x4a0   : > { %v4573_v55 = vpop.eup %3805  ;;  %1765 = vadd.xlane.f32.xlu0 %v1764_v53 }
 0x4a1   : > { %3813 = vpow2.f32 %v1715_v52  ;;  %v1755_v58 = vsel %vm1580_vm6, %v4573_v55, 0.0  ;;  %v1709_v14 = vmul.f32 1.442695, %v1669_v54 }
 0x4a2   : > { %3815 = vpow2.f32 %v1713_v51  ;;  %v1652_v61 = vpop.xlane.xlu1 %1651  ;;  %1756 = vadd.xlane.f32.xlu1 %v1755_v58 }
 0x4a3   : > { %v1676_v57 = vsub.f32 %v4468_v6, %v1652_v61  ;;  %3817 = vpow2.f32 %v1709_v14 }
 0x4a4   : > { %v4578_v60 = vpop.eup %3807 }
 0x4a5   : > { %v1723_v7 = vmul.f32 1.442695, %v1676_v57  ;;  %v1776_v59 = vsel %vm1580_vm6, %v4578_v60, 0.0 }
 0x4a6   : > { %v1646_v2 = vpop.xlane.xlu1 %1645  ;;  %1777 = vadd.xlane.f32.xlu1 %v1776_v59 }
 0x4a7   : > { %3819 = vpow2.f32 %v1723_v7  ;;  %v1674_v63 = vsub.f32 %v4473_v11, %v1646_v2 }
 0x4a8   : > { %v4583_v0 = vpop.eup %3809 }
 0x4a9   : > { %v1719_v3 = vmul.f32 1.442695, %v1674_v63  ;;  %v1770_v4 = vsel %vm1580_vm6, %v4583_v0, 0.0  ;;  %v4587_v13 = vpop.eup %3811 }
 0x4aa   : > { %1771 = vadd.xlane.f32.xlu1 %v1770_v4  ;;  %v1785_v29 = vsel %vm1580_vm6, %v4587_v13, 0.0 }
 0x4ab   : > { %3821 = vpow2.f32 %v1719_v3 }
 0x4ae   : > { %v4589_v6 = vpop.eup %3813  ;;  %1786 = vadd.xlane.f32.xlu1 %v1785_v29  ;;  %v2060_v29 = vsel %vm1872_vm4, %v4481_v17, 0 }
 0x4af   : > { %v4593_v18 = vpop.eup %3815  ;;  %v1782_v11 = vsel %vm1580_vm6, %v4589_v6, 0.0 }
 0x4b0   : > { %1783 = vadd.xlane.f32.xlu0 %v1782_v11  ;;  %v1779_v10 = vsel %vm1580_vm6, %v4593_v18, 0.0  ;;  %v4599_v40 = vpop.eup %3817 }
 0x4b1   : > { %v1773_v20 = vsel %vm1580_vm6, %v4599_v40, 0.0 }
 0x4b2   : > { %1780 = vadd.xlane.f32.xlu1 %v1779_v10 }
 0x4b4   : > { %v4601_v16 = vpop.eup %3819 }
 0x4b5   : > { %v1794_v22 = vsel %vm1580_vm6, %v4601_v16, 0.0 }
 0x4b6   : > { %1795 = vadd.xlane.f32.xlu0 %v1794_v22  ;;  %1774 = vadd.xlane.f32.xlu1 %v1773_v20 }
 0x4b8   : > { %v4607_v24 = vpop.eup %3821 }
 0x4b9   : > { %v1788_v31 = vsel %vm1580_vm6, %v4607_v24, 0.0 }
 0x4ba   : > { %1789 = vadd.xlane.f32.xlu0 %v1788_v31 }
 0x4c2   : > { %v1733_v30 = vpop.xlane.xlu0 %1732 }
 0x4c3   : > { %3823 = vrcp.f32 %v1733_v30 }
 0x4c6   : > { %v1727_v33 = vpop.xlane.xlu0 %1726 }
 0x4c7   : > { %3825 = vrcp.f32 %v1727_v33 }
 0x4c8   : > { %v1730_v37 = vpop.xlane.xlu1 %1729 }
 0x4c9   : > { %3827 = vrcp.f32 %v1730_v37 }
 0x4ca   : > { %v1649_v39 = vpop.xlane.xlu0 %1648 }
 0x4cb   : > { %v1675_v42 = vsub.f32 %v4499_v50, %v1649_v39  ;;  %v1936_v50 = vsel %vm1872_vm4, %v4346_v5, 0 }
 0x4cd   : > { %v1721_v41 = vmul.f32 1.442695, %v1675_v42 }
 0x4ce   : > { %v4633_v5 = vpop.permute.xlu0 %2234 }
 0x4cf   : > { %3829 = vpow2.f32 %v1721_v41 }
 0x4d0   : > { %2298 = vrot.lane.b32.xlu0 %v4260_v32, %s3945_s29  ;;  %v3824_v47 = vpop.eup %3823 }
 0x4d1   : > { %v1823_v19 = vmul.f32 %v3824_v47, %v4490_v44  ;;  %v4631_v44 = vpop.permute.xlu1 %2172  ;;  %v2122_v47 = vsel %vm1872_vm4, %v4354_v8, 0 }
 0x4d3   : > { %v1846_v58 = vpack.c.bf16 %v1823_v19, %v1823_v19 }
 0x4d4   : > { %v3826_v43 = vpop.eup %3825 }
 0x4d5   : > { %v1821_v52 = vmul.f32 %v3826_v43, %v4494_v48 }
 0x4d6   : > { %v3828_v51 = vpop.eup %3827 }
 0x4d7   : > { %v1822_v54 = vmul.f32 %v3828_v51, %v4501_v34 }
 0x4d9   : > { %v1845_v53 = vpack.c.bf16 %v1822_v54, %v1821_v52 }
 0x4db   : > { %3527 = vmatprep.mubr.msk.bf16.mxu1 %vm1580_vm6, %v1845_v53 }
 0x4dc   : > { %v4618_v14 = vpop.eup %3829  ;;  %3528 = vmatmul.mubr.msk.bf16.vlgmr.msra.gmra.mxu1 %vm1580_vm6, %v1846_v58 }
 0x4dd   : > { %3532 = vmatpush3.bf16.msra.mxu1 %v1936_v50  ;;  %v1791_v32 = vsel %vm1580_vm6, %v4618_v14, 0.0 }
 0x4de   : > { %3533 = vmatprep.subr.bf16.mxu1 %v4465_v1  ;;  %1792 = vadd.xlane.f32.xlu1 %v1791_v32 }
 0x4e1   : > { %3534 = vmatpush3.bf16.msra.mxu1 %v4465_v1 }
 0x4e2   : > { %3666 = vmatprep.subr.msk.bf16.mxu1 %vm1872_vm4, %v4481_v17 }
 0x4ef   : > { %2296 = vrot.lane.b32.xlu1 %v4266_v36, %s3945_s29 }
 0x4fd   : > { %v1739_v48 = vpop.xlane.xlu1 %1738 }
 0x4ff   : > { %v1742_v34 = vpop.xlane.xlu0 %1741 }
 0x500   : > { %3831 = vrcp.f32 %v1742_v34 }
 0x501   : > { %3833 = vrcp.f32 %v1739_v48 }
 0x503   : > { %v1736_v61 = vpop.xlane.xlu0 %1735 }
 0x504   : > { %3835 = vrcp.f32 %v1736_v61 }
 0x50d   : > { %v3832_v57 = vpop.eup %3831 }
 0x50e   : > { %v3834_v7 = vpop.eup %3833  ;;  %v1826_v1 = vmul.f32 %v3832_v57, %v4516_v26 }
 0x50f   : > { %v1825_v63 = vmul.f32 %v3834_v7, %v4514_v9 }
 0x510   : > { %v1848_v4 = vpack.c.bf16 %v1826_v1, %v1826_v1 }
 0x511   : > { %v3836_v59 = vpop.eup %3835 }
 0x512   : > { %v1824_v2 = vmul.f32 %v3836_v59, %v4522_v38 }
 0x513   : > { %v1751_v36 = vpop.xlane.xlu1 %1750 }
 0x514   : > { %v1847_v3 = vpack.c.bf16 %v1825_v63, %v1824_v2  ;;  %3837 = vrcp.f32 %v1751_v36 }
 0x516   : > { %3535 = vmatprep.mubr.msk.bf16.mxu1 %vm1580_vm6, %v1847_v3 }
 0x517   : > { %v1745_v11 = vpop.xlane.xlu1 %1744  ;;  %3536 = vmatmul.mubr.msk.bf16.vlgmr.msra.gmra.mxu1 %vm1580_vm6, %v1848_v4 }
 0x518   : > { %3839 = vrcp.f32 %v1745_v11  ;;  %3548 = vmatpush3.bf16.msra.mxu1 %v2060_v29 }
 0x519   : > { %3549 = vmatprep.subr.bf16.mxu1 %v4475_v12  ;;  %v1748_v26 = vpop.xlane.xlu0 %1747 }
 0x51a   : > { %3841 = vrcp.f32 %v1748_v26 }
 0x51c   : > { %3550 = vmatpush3.bf16.msra.mxu1 %v4475_v12 }
 0x51d   : > { %3668 = vmatprep.subr.msk.bf16.mxu1 %vm1872_vm4, %v4486_v27 }
 0x51f   : > { %v1760_v9 = vpop.xlane.xlu0 %1759 }
 0x520   : > { %3843 = vrcp.f32 %v1760_v9 }
 0x521   : > { %v3838_v10 = vpop.eup %3837 }
 0x522   : > { %v1829_v30 = vmul.f32 %v3838_v10, %v4532_v25 }
 0x523   : > { %v1769_v38 = vpop.xlane.xlu1 %1768 }
 0x524   : > { %v1754_v17 = vpop.xlane.xlu0 %1753  ;;  %3845 = vrcp.f32 %v1769_v38  ;;  %v1850_v41 = vpack.c.bf16 %v1829_v30, %v1829_v30 }
 0x525   : > { %v3840_v22 = vpop.eup %3839 }
 0x526   : > { %v1827_v33 = vmul.f32 %v3840_v22, %v4536_v56 }
 0x527   : > { %v3842_v20 = vpop.eup %3841  ;;  %v1763_v31 = vpop.xlane.xlu1 %1762 }
 0x528   : > { %3847 = vrcp.f32 %v1763_v31  ;;  %v1828_v37 = vmul.f32 %v3842_v20, %v4542_v62 }
 0x529   : > { %3849 = vrcp.f32 %v1754_v17  ;;  %v1766_v12 = vpop.xlane.xlu0 %1765 }
 0x52a   : > { %3851 = vrcp.f32 %v1766_v12  ;;  %v1849_v39 = vpack.c.bf16 %v1828_v37, %v1827_v33 }
 0x52b   : > { %v1757_v42 = vpop.xlane.xlu1 %1756 }
 0x52c   : > { %3853 = vrcp.f32 %v1757_v42  ;;  %3543 = vmatprep.mubr.msk.bf16.mxu0 %vm1580_vm6, %v1849_v39 }
 0x52d   : > { %3544 = vmatmul.mubr.msk.bf16.vlgmr.msra.gmra.mxu0 %vm1580_vm6, %v1850_v41  ;;  %v3844_v56 = vpop.eup %3843 }
 0x52e   : > { %3556 = vmatpush3.bf16.msra.mxu0 %v2122_v47 }
 0x52f   : > { %3557 = vmatprep.subr.bf16.mxu0 %v4477_v15  ;;  %v1778_v25 = vpop.xlane.xlu1 %1777 }
 0x531   : > { %v3846_v62 = vpop.eup %3845 }
 0x532   : > { %3558 = vmatpush3.bf16.msra.mxu0 %v4477_v15  ;;  %v1835_v54 = vmul.f32 %v3846_v62, %v4554_v28  ;;  %v1832_v15 = vmul.f32 %v3844_v56, %v4548_v35  ;;  %v2184_v35 = vsel %vm1872_vm4, %v4486_v27, 0 }
 0x533   : > { %3669 = vmatprep.subr.msk.bf16.mxu0 %vm1872_vm4, %v4483_v21  ;;  %v1772_v43 = vpop.xlane.xlu1 %1771 }
 0x534   : > { %v1854_v57 = vpack.c.bf16 %v1835_v54, %v1835_v54  ;;  %v3753_v54 = vld [vmem:[%s4956_s23 + $0x8] sm:$0xff]  }
 0x535   : > { %v3848_v51 = vpop.eup %3847 }
 0x536   : > { %v3850_v19 = vpop.eup %3849  ;;  %v1833_v53 = vmul.f32 %v3848_v51, %v4563_v45  ;;  %v2246_v45 = vsel %vm1872_vm4, %v4483_v21, 0 }
 0x537   : > { %v3852_v52 = vpop.eup %3851  ;;  %v1787_v8 = vpop.xlane.xlu1 %1786  ;;  %v1830_v34 = vmul.f32 %v3850_v19, %v4556_v23 }
 0x538   : > { %v1834_v58 = vmul.f32 %v3852_v52, %v4568_v46  ;;  %3855 = vrcp.f32 %v1787_v8  ;;  %v1852_v46 = vpack.c.bf16 %v1832_v15, %v1832_v15 }
 0x539   : > { %v3854_v50 = vpop.eup %3853  ;;  %v1784_v32 = vpop.xlane.xlu0 %1783 }
 0x53a   : > { %v1853_v48 = vpack.c.bf16 %v1834_v58, %v1833_v53  ;;  %v1831_v61 = vmul.f32 %v3854_v50, %v4573_v55  ;;  %3857 = vrcp.f32 %v1784_v32 }
 0x53b   : > { %v1781_v7 = vpop.xlane.xlu1 %1780 }
 0x53c   : > { %3559 = vmatprep.mubr.msk.bf16.mxu0 %vm1580_vm6, %v1853_v48  ;;  %v1851_v28 = vpack.c.bf16 %v1831_v61, %v1830_v34  ;;  %3859 = vrcp.f32 %v1781_v7  ;;  %v3754_v48 = vld [vmem:[%s4956_s23] sm:$0xff]   ;;  %s4959_s23 = sld [smem:[#allocation10_spill]] (!%p3336_p6) }
 0x53d   : > { %3560 = vmatmul.mubr.msk.bf16.vlgmr.msra.gmra.mxu0 %vm1580_vm6, %v1854_v57  ;;  %3861 = vrcp.f32 %v1778_v25 }
 0x53e   : > { %3572 = vmatpush3.bf16.msra.mxu0 %v2246_v45  ;;  %3551 = vmatprep.mubr.msk.bf16.mxu1 %vm1580_vm6, %v1851_v28  ;;  %3863 = vrcp.f32 %v1772_v43 }
 0x53f   : > { %3573 = vmatprep.subr.bf16.mxu0 %v4633_v5  ;;  %3552 = vmatmul.mubr.msk.bf16.vlgmr.msra.gmra.mxu1 %vm1580_vm6, %v1852_v46  ;;  %v1796_v23 = vpop.xlane.xlu0 %1795  ;;  %v1775_v55 = vpop.xlane.xlu1 %1774 }
 0x540   : > { %3564 = vmatpush3.bf16.msra.mxu1 %v2184_v35  ;;  %3865 = vrcp.f32 %v1775_v55 }
 0x541   : > { %3565 = vmatprep.subr.bf16.mxu1 %v4631_v44  ;;  %3867 = vrcp.f32 %v1796_v23 }
 0x542   : > { %3574 = vmatpush3.bf16.msra.mxu0 %v4633_v5 }
 0x543   : > { %v1790_v21 = vpop.xlane.xlu0 %1789  ;;  %3587 = vmatprep.subr.bf16.mxu0 %v3939_v49 }
 0x544   : > { %3566 = vmatpush3.bf16.msra.mxu1 %v4631_v44  ;;  %3869 = vrcp.f32 %v1790_v21 }
 0x545   : > { %v3856_v59 = vpop.eup %3855 }
 0x546   : > { %v1841_v63 = vmul.f32 %v3856_v59, %v4587_v13 }
 0x547   : > { %v2299_v27 = vpop.permute.xlu0 %2298  ;;  %v3858_v1 = vpop.eup %3857 }
 0x548   : > { %3670 = vmatprep.subr.msk.bf16.mxu1 %vm1872_vm4, %v2299_v27  ;;  %v1840_v4 = vmul.f32 %v3858_v1, %v4589_v6  ;;  %v1858_v26 = vpack.c.bf16 %v1841_v63, %v1841_v63  ;;  %v2308_v6 = vsel %vm1872_vm4, %v2299_v27, 0 }
 0x549   : > { %v3860_v2 = vpop.eup %3859 }
 0x54a   : > { %v3862_v36 = vpop.eup %3861  ;;  %v1839_v3 = vmul.f32 %v3860_v2, %v4593_v18 }
 0x54b   : > { %v3864_v29 = vpop.eup %3863  ;;  %v1838_v9 = vmul.f32 %v3862_v36, %v4578_v60 }
 0x54c   : > { %v1857_v5 = vpack.c.bf16 %v1840_v4, %v1839_v3  ;;  %v1836_v44 = vmul.f32 %v3864_v29, %v4583_v0 }
 0x54d   : > { %v3866_v11 = vpop.eup %3865  ;;  %v1856_v18 = vpack.c.bf16 %v1838_v9, %v1838_v9 }
 0x54e   : > { %3575 = vmatprep.mubr.msk.bf16.mxu0 %vm1580_vm6, %v1857_v5  ;;  %v1837_v38 = vmul.f32 %v3866_v11, %v4599_v40  ;;  %v3868_v40 = vpop.eup %3867 }
 0x54f   : > { %3576 = vmatmul.mubr.msk.bf16.vlgmr.msra.gmra.mxu0 %vm1580_vm6, %v1858_v26  ;;  %v1844_v17 = vmul.f32 %v3868_v40, %v4601_v16 }
 0x550   : > { %v1855_v13 = vpack.c.bf16 %v1837_v38, %v1836_v44  ;;  %3591 = vmatprep.mubr.msk.bf16.mxu0 %vm3940_vm2, %v3939_v49  ;;  %3588 = vmatpush3.bf16.msra.mxu0 %v3753_v54 }
 0x551   : > { %v3870_v10 = vpop.eup %3869  ;;  %v1860_v33 = vpack.c.bf16 %v1844_v17, %v1844_v17  ;;  %3589 = vmatprep.subr.bf16.mxu0 %v3939_v49 }
 0x552   : > { %3567 = vmatprep.mubr.msk.bf16.mxu1 %vm1580_vm6, %v1855_v13  ;;  %v1842_v20 = vmul.f32 %v3870_v10, %v4607_v24 }
 0x553   : > { %3568 = vmatmul.mubr.msk.bf16.vlgmr.msra.gmra.mxu1 %vm1580_vm6, %v1856_v18 }
 0x554   : > { %3580 = vmatpush3.bf16.msra.mxu1 %v2308_v6  ;;  %3590 = vmatpush3.bf16.msra.mxu0 %v3754_v48 }
 0x555   : > { %3619 = vmatprep.subr.bf16.mxu0 %v3939_v49 }
 0x567   : > { %v1793_v60 = vpop.xlane.xlu1 %1792 }
 0x568   : > { %3871 = vrcp.f32 %v1793_v60 }
 0x56b   : > { %v2297_v0 = vpop.permute.xlu1 %2296 }
 0x56c   : > { %3581 = vmatprep.subr.bf16.mxu1 %v2297_v0 }
 0x56d   : > { %3582 = vmatpush3.bf16.msra.mxu1 %v2297_v0 }
 0x56e   : > { %3603 = vmatprep.subr.bf16.mxu1 %v3939_v49 }
 0x575   : > { %v3872_v22 = vpop.eup %3871 }
 0x576   : > { %v1843_v31 = vmul.f32 %v3872_v22, %v4618_v14 }
 0x578   : > { %v1859_v30 = vpack.c.bf16 %v1843_v31, %v1842_v20 }
 0x57a   : > { %3583 = vmatprep.mubr.msk.bf16.mxu1 %vm1580_vm6, %v1859_v30 }
 0x57b   : > { %3584 = vmatmul.mubr.msk.bf16.vlgmr.msra.gmra.mxu1 %vm1580_vm6, %v1860_v33 }
 0x57c   : > { %3607 = vmatprep.mubr.msk.bf16.mxu1 %vm3940_vm2, %v3939_v49 }
 0x59c   : > { %v4698_v37 = vpop.f32.mrf.mxu1 }
 0x59e   : > { %v4700_v12 = vpop.f32.mrf.mxu1 }
 0x5a0   : > { %v3530_v39 = vpop.f32.mrf.mxu1 }
 0x5a2   : > { %v4702_v16 = vpop.f32.mrf.mxu1 }
 0x5d7   : > { %v4704_v24 = vpop.f32.mrf.mxu1 }
 0x5d9   : > { %v4706_v14 = vpop.f32.mrf.mxu1 }
 0x5db   : > { %v3538_v42 = vpop.f32.mrf.mxu1 }
 0x5dd   : > { %v4709_v43 = vpop.f32.mrf.mxu1 }
 0x5ed   : > { %v3545_v41 = vpop.f32.mrf.mxu0 }
 0x5ef   : > { %v2034_v47 = vpop.f32.mrf.mxu0 }
 0x5f1   : > { %v3546_v25 = vpop.f32.mrf.mxu0 }
 0x5f3   : > { %v2037_v56 = vpop.f32.mrf.mxu0 }
 0x5f4   : > { %v3706_v62 = vpack.i.bf16 %v2037_v56, %v2034_v47 }
 0x5f6   : > { %3707 = vrot.lane.b32.xlu0 %v3706_v62, %s3947_s24 }
 0x5fd   : > { %v3561_v51 = vpop.f32.mrf.mxu0 }
 0x5ff   : > { %v3553_v19 = vpop.f32.mrf.mxu1  ;;  %v2158_v52 = vpop.f32.mrf.mxu0 }
 0x601   : > { %v2096_v8 = vpop.f32.mrf.mxu1  ;;  %v3562_v53 = vpop.f32.mrf.mxu0 }
 0x602   : > { %v3721_v15 = vpack.i.bf16 %v2096_v8, %v3545_v41 }
 0x603   : > { %v3554_v58 = vpop.f32.mrf.mxu1  ;;  %v2161_v50 = vpop.f32.mrf.mxu0 }
 0x604   : > { %v3711_v32 = vpack.i.bf16 %v2161_v50, %v2158_v52 }
 0x605   : > { %v2099_v61 = vpop.f32.mrf.mxu1 }
 0x606   : > { %3712 = vrot.lane.b32.xlu1 %v3711_v32, %s3948_s19  ;;  %v3736_v21 = vpack.i.bf16 %v3553_v19, %v2099_v61 }
 0x60a   : > { %3722 = vrot.lane.b32.xlu1 %v3721_v15, %s3947_s24 }
 0x60f   : > { %v3577_v34 = vpop.f32.mrf.mxu0 }
 0x611   : > { %v2282_v57 = vpop.f32.mrf.mxu0 }
 0x613   : > { %v3569_v7 = vpop.f32.mrf.mxu1  ;;  %v3578_v28 = vpop.f32.mrf.mxu0 }
 0x615   : > { %v2220_v45 = vpop.f32.mrf.mxu1  ;;  %v2285_v46 = vpop.f32.mrf.mxu0 }
 0x616   : > { %v3716_v35 = vpack.i.bf16 %v2285_v46, %v2282_v57  ;;  %v3726_v55 = vpack.i.bf16 %v2220_v45, %v3561_v51 }
 0x617   : > { %v3570_v23 = vpop.f32.mrf.mxu1 }
 0x618   : > { %3717 = vrot.lane.b32.xlu0 %v3716_v35, %s3949_s20  ;;  %v3897_v23 = vld [vmem:[#allocation2] sm:$0xff] }
 0x619   : > { %v2223_v59 = vpop.f32.mrf.mxu1 }
 0x61a   : > { %v3741_v3 = vpack.i.bf16 %v3569_v7, %v2223_v59 }
 0x61c   : > { %3727 = vrot.lane.b32.xlu0 %v3726_v55, %s3948_s19 }
 0x620   : > { %3737 = vrot.lane.b32.xlu0 %v3736_v21, %s3947_s24 }
 0x63b   : > { %v3585_v27 = vpop.f32.mrf.mxu1 }
 0x63d   : > { %v2344_v1 = vpop.f32.mrf.mxu1 }
 0x63e   : > { %v3731_v2 = vpack.i.bf16 %v2344_v1, %v3577_v34 }
 0x63f   : > { %v3586_v63 = vpop.f32.mrf.mxu1 }
 0x640   : > { %3732 = vrot.lane.b32.xlu1 %v3731_v2, %s3949_s20  ;;  %v3898_v2 = vld [vmem:[#allocation2 + $0x8] sm:$0xff] }
 0x641   : > { %v2347_v36 = vpop.f32.mrf.mxu1 }
 0x642   : > { %v3746_v4 = vpack.i.bf16 %v3585_v27, %v2347_v36 }
 0x644   : > { %3742 = vrot.lane.b32.xlu1 %v3741_v3, %s3948_s19  ;;  %3747 = vrot.lane.b32.xlu0 %v3746_v4, %s3949_s20  ;;  %s4960_s20 = sld [smem:[#allocation11_spill]] (!%p3336_p6) }
 0x64a   : > { %s4961_s15 = smov (!%p3336_p6), %s4960_s20 }
 0x668   : > { %v3708_v29 = vpop.permute.xlu0 %3707 }
 0x669   : > { %v3710_v11 = vunpack.i.h.bf16 %v3708_v29  ;;  %v3709_v26 = vunpack.i.l.bf16 %v3708_v29 }
 0x66b   : > { %v2431_v13 = vsel %vm992_vm3, %v4702_v16, %v3710_v11  ;;  %v2430_v18 = vsel %vm992_vm3, %v4700_v12, %v3709_v26 }
 0x678   : > { %v3713_v5 = vpop.permute.xlu1 %3712 }
 0x679   : > { %v3715_v9 = vunpack.i.h.bf16 %v3713_v5  ;;  %v3714_v44 = vunpack.i.l.bf16 %v3713_v5  ;;  %v3899_v5 = vld [vmem:[#allocation2 + $0x10] sm:$0xff] }
 0x67b   : > { %v2437_v0 = vsel %vm2436_vm7, %v2430_v18, %v3714_v44  ;;  %v2438_v40 = vsel %vm2436_vm7, %v2431_v13, %v3715_v9  ;;  %v3900_v13 = vld [vmem:[#allocation2 + $0x18] sm:$0xff] }
 0x67c   : > { %v3723_v31 = vpop.permute.xlu1 %3722 }
 0x67d   : > { %v3725_v30 = vunpack.i.h.bf16 %v3723_v31  ;;  %v3724_v33 = vunpack.i.l.bf16 %v3723_v31 }
 0x67f   : > { %v2433_v41 = vsel %vm992_vm3, %v4706_v14, %v3725_v30  ;;  %v2432_v47 = vsel %vm992_vm3, %v4698_v37, %v3724_v33  ;;  %v3902_v33 = vld [vmem:[#allocation2 + $0x28] sm:$0xff] }
 0x68a   : > { %v3718_v38 = vpop.permute.xlu0 %3717 }
 0x68b   : > { %v3720_v6 = vunpack.i.h.bf16 %v3718_v38  ;;  %v3719_v60 = vunpack.i.l.bf16 %v3718_v38 }
 0x68d   : > { %v2443_v10 = vsel %vm1580_vm6, %v2437_v0, %v3719_v60  ;;  %v2444_v22 = vsel %vm1580_vm6, %v2438_v40, %v3720_v6 }
 0x68e   : > { %v2449_v17 = vpack.c.bf16 %v2444_v22, %v2443_v10  ;;  %v3728_v20 = vpop.permute.xlu0 %3727  ;;  %v3901_v10 = vld [vmem:[#allocation2 + $0x20] sm:$0xff] }
 0x68f   : > { %v3730_v12 = vunpack.i.h.bf16 %v3728_v20  ;;  %v3729_v39 = vunpack.i.l.bf16 %v3728_v20 }
 0x690   : > { %3592 = vmatmul.mubr.msk.bf16.vlgmr.msra.gmra.mxu0 %vm737_vm1, %v2449_v17 }
 0x691   : > { %3595 = vmatprep.mubr.msk.bf16.mxu0 %vm3940_vm2, %v3939_v49  ;;  %v2440_v62 = vsel %vm2436_vm7, %v2433_v41, %v3730_v12  ;;  %v2439_v51 = vsel %vm2436_vm7, %v2432_v47, %v3729_v39 }
 0x692   : > { %v3738_v16 = vpop.permute.xlu0 %3737 }
 0x693   : > { %v3740_v19 = vunpack.i.h.bf16 %v3738_v16  ;;  %v3739_v52 = vunpack.i.l.bf16 %v3738_v16 }
 0x695   : > { %v2435_v48 = vsel %vm992_vm3, %v4704_v24, %v3740_v19  ;;  %v2434_v34 = vsel %vm992_vm3, %v4709_v43, %v3739_v52  ;;  %v3313_v24 = vld [vmem:[%s4957_s25] ss:$0 sm:$0xff] }
 0x6b2   : > { %v3733_v42 = vpop.permute.xlu1 %3732 }
 0x6b3   : > { %v3735_v25 = vunpack.i.h.bf16 %v3733_v42  ;;  %v3734_v56 = vunpack.i.l.bf16 %v3733_v42 }
 0x6b5   : > { %v2445_v54 = vsel %vm1580_vm6, %v2439_v51, %v3734_v56  ;;  %v2446_v8 = vsel %vm1580_vm6, %v2440_v62, %v3735_v25 }
 0x6b6   : > { %v2450_v53 = vpack.c.bf16 %v2446_v8, %v2445_v54  ;;  %v3743_v58 = vpop.permute.xlu1 %3742  ;;  %v3748_v50 = vpop.permute.xlu0 %3747 }
 0x6b7   : > { %v3745_v14 = vunpack.i.h.bf16 %v3743_v58  ;;  %v3744_v32 = vunpack.i.l.bf16 %v3743_v58  ;;  %v3750_v15 = vunpack.i.h.bf16 %v3748_v50  ;;  %v3749_v37 = vunpack.i.l.bf16 %v3748_v50  ;;  %v3756_v50 = vld [vmem:[%s4092_s3] sm:$0xff]  }
 0x6b8   : > { %3596 = vmatmul.mubr.msk.bf16.gmra.mxu0 %vm737_vm1, %v2450_v53  ;;  %v3755_v53 = vld [vmem:[%s4092_s3 + $0x8] sm:$0xff]  }
 0x6b9   : > { %v2441_v61 = vsel %vm2436_vm7, %v2434_v34, %v3744_v32  ;;  %v2442_v57 = vsel %vm2436_vm7, %v2435_v48, %v3745_v14  ;;  %3599 = vmatprep.mubr.msk.bf16.mxu0 %vm3940_vm2, %v3939_v49  ;;  %3604 = vmatpush3.bf16.msra.mxu1 %v3755_v53 }
 0x6ba   : > { %v2447_v7 = vsel %vm1580_vm6, %v2441_v61, %v3749_v37  ;;  %v2448_v28 = vsel %vm1580_vm6, %v2442_v57, %v3750_v15  ;;  %3605 = vmatprep.subr.bf16.mxu1 %v3939_v49 }
 0x6bb   : > { %v2451_v45 = vpack.c.bf16 %v2448_v28, %v2447_v7 }
 0x6bd   : > { %3606 = vmatpush3.bf16.msra.mxu1 %v3756_v50 }
 0x6c0   : > { %3600 = vmatmul.mubr.msk.bf16.gmra.mxu0 %vm737_vm1, %v2451_v45 }
 0x6c1   : > { %3635 = vmatprep.mubr.msk.bf16.mxu0 %vm3940_vm2, %v3939_v49 }
 0x750   : > { %v2518_v43 = vpop.f32.mrf.mxu0 }
 0x751   : > { %v2519_v46 = vadd.f32 %v3313_v24, %v2518_v43 }
 0x752   : > { %v3593_v35 = vpop.f32.mrf.mxu0 }
 0x753   : > { %v4758_v55 = vadd.f32 %v3897_v23, %v2519_v46 }
 0x754   : > { %v2521_v21 = vpop.f32.mrf.mxu0 }
 0x755   : > { %v2522_v59 = vadd.f32 %v3313_v24, %v2521_v21  ;;  %v2549_v27 = vsel %vm737_vm1, %v4758_v55, 0.0 }
 0x756   : > { %2550 = vadd.xlane.f32.xlu1 %v2549_v27  ;;  %v3594_v1 = vpop.f32.mrf.mxu0 }
 0x757   : > { %v4762_v63 = vadd.f32 %v3898_v2, %v2522_v59 }
 0x759   : > { %v2552_v36 = vsel %vm737_vm1, %v4762_v63, 0.0 }
 0x75a   : > { %2553 = vadd.xlane.f32.xlu0 %v2552_v36 }
 0x778   : > { %v2526_v3 = vpop.f32.mrf.mxu0 }
 0x779   : > { %v2527_v4 = vadd.f32 %v3313_v24, %v2526_v3 }
 0x77a   : > { %v3597_v29 = vpop.f32.mrf.mxu0 }
 0x77b   : > { %v4766_v11 = vadd.f32 %v3899_v5, %v2527_v4  ;;  %v3319_v5 = vld [vmem:[%s680_s13] ss:$0 sm:$0xff] }
 0x77c   : > { %v2529_v26 = vpop.f32.mrf.mxu0 }
 0x77d   : > { %v2530_v9 = vadd.f32 %v3313_v24, %v2529_v26  ;;  %v2555_v44 = vsel %vm737_vm1, %v4766_v11, 0.0 }
 0x77e   : > { %2556 = vadd.xlane.f32.xlu0 %v2555_v44  ;;  %v3598_v38 = vpop.f32.mrf.mxu0 }
 0x77f   : > { %v4770_v18 = vadd.f32 %v3900_v13, %v2530_v9  ;;  %v3320_v38 = vld [vmem:[%s683_s17] ss:$0 sm:$0xff] }
 0x780   : > { %v2534_v6 = vpop.f32.mrf.mxu0 }
 0x781   : > { %v2535_v60 = vadd.f32 %v3313_v24, %v2534_v6  ;;  %v2558_v0 = vsel %vm737_vm1, %v4770_v18, 0.0 }
 0x782   : > { %2559 = vadd.xlane.f32.xlu0 %v2558_v0  ;;  %v3601_v40 = vpop.f32.mrf.mxu0 }
 0x783   : > { %v4774_v22 = vadd.f32 %v3901_v10, %v2535_v60 }
 0x784   : > { %v2537_v17 = vpop.f32.mrf.mxu0 }
 0x785   : > { %v2538_v20 = vadd.f32 %v3313_v24, %v2537_v17  ;;  %v2561_v31 = vsel %vm737_vm1, %v4774_v22, 0.0 }
 0x786   : > { %2562 = vadd.xlane.f32.xlu1 %v2561_v31  ;;  %v3602_v30 = vpop.f32.mrf.mxu0 }
 0x787   : > { %v4778_v12 = vadd.f32 %v3902_v33, %v2538_v20 }
 0x789   : > { %v2564_v39 = vsel %vm737_vm1, %v4778_v12, 0.0 }
 0x78a   : > { %2565 = vadd.xlane.f32.xlu0 %v2564_v39 }
 0x7df   : > { %v2551_v16 = vpop.xlane.xlu1 %2550 }
 0x7e0   : > { %v2567_v42 = vmul.f32 0.03125, %v2551_v16 }
 0x7e2   : > { %v2573_v41 = vsub.f32 %v4758_v55, %v2567_v42 }
 0x7e3   : > { %v2554_v47 = vpop.xlane.xlu0 %2553 }
 0x7e4   : > { %v2568_v25 = vmul.f32 0.03125, %v2554_v47  ;;  %v2579_v56 = vmul.f32 %v2573_v41, %v2573_v41 }
 0x7e6   : > { %v2574_v62 = vsub.f32 %v4762_v63, %v2568_v25  ;;  %v2585_v51 = vsel %vm737_vm1, %v2579_v56, 0.0 }
 0x7e7   : > { %2586 = vadd.xlane.f32.xlu1 %v2585_v51 }
 0x7e8   : > { %v2580_v19 = vmul.f32 %v2574_v62, %v2574_v62 }
 0x7ea   : > { %v2588_v52 = vsel %vm737_vm1, %v2580_v19, 0.0 }
 0x7eb   : > { %2589 = vadd.xlane.f32.xlu0 %v2588_v52 }
 0x807   : > { %v2557_v54 = vpop.xlane.xlu0 %2556 }
 0x808   : > { %v2569_v8 = vmul.f32 0.03125, %v2557_v54 }
 0x80a   : > { %v4788_v58 = vsub.f32 %v4766_v11, %v2569_v8 }
 0x80b   : > { %v2560_v14 = vpop.xlane.xlu0 %2559 }
 0x80c   : > { %v2570_v32 = vmul.f32 0.03125, %v2560_v14  ;;  %v2581_v15 = vmul.f32 %v4788_v58, %v4788_v58 }
 0x80e   : > { %v2576_v37 = vsub.f32 %v4770_v18, %v2570_v32  ;;  %v2591_v48 = vsel %vm737_vm1, %v2581_v15, 0.0 }
 0x80f   : > { %2592 = vadd.xlane.f32.xlu1 %v2591_v48  ;;  %v2563_v34 = vpop.xlane.xlu1 %2562 }
 0x810   : > { %v2571_v61 = vmul.f32 0.03125, %v2563_v34  ;;  %v2582_v57 = vmul.f32 %v2576_v37, %v2576_v37 }
 0x812   : > { %v2577_v7 = vsub.f32 %v4774_v22, %v2571_v61  ;;  %v2594_v28 = vsel %vm737_vm1, %v2582_v57, 0.0  ;;  %v3757_v57 = vld [vmem:[%s4102_s26 + $0x38] sm:$0xff]  }
 0x813   : > { %2595 = vadd.xlane.f32.xlu0 %v2594_v28  ;;  %v2566_v45 = vpop.xlane.xlu0 %2565  ;;  %3620 = vmatpush3.bf16.msra.mxu0 %v3757_v57  ;;  %v3759_v28 = vld [vmem:[%s4102_s26 + $0x28] sm:$0xff]  }
 0x814   : > { %v2572_v24 = vmul.f32 0.03125, %v2566_v45  ;;  %v2583_v43 = vmul.f32 %v2577_v7, %v2577_v7  ;;  %3621 = vmatprep.subr.bf16.mxu0 %v3939_v49  ;;  %v3760_v45 = vld [vmem:[%s4102_s26 + $0x20] sm:$0xff]  }
 0x816   : > { %v2578_v46 = vsub.f32 %v4778_v12, %v2572_v24  ;;  %v2597_v35 = vsel %vm737_vm1, %v2583_v43, 0.0  ;;  %v3761_v24 = vld [vmem:[%s4102_s26 + $0x18] sm:$0xff]   ;;  %v3762_v43 = vld [vmem:[%s4102_s26 + $0x10] sm:$0xff]  }
 0x817   : > { %2598 = vadd.xlane.f32.xlu1 %v2597_v35  ;;  %v3764_v35 = vld [vmem:[%s4102_s26] sm:$0xff]  }
 0x818   : > { %v2584_v23 = vmul.f32 %v2578_v46, %v2578_v46 }
 0x81a   : > { %v2600_v21 = vsel %vm737_vm1, %v2584_v23, 0.0  ;;  %v3321_v23 = vld [vmem:[%s691_s5] ss:$0 sm:$0xff] }
 0x81b   : > { %2601 = vadd.xlane.f32.xlu0 %v2600_v21 }
 0x870   : > { %v2587_v59 = vpop.xlane.xlu1 %2586 }
 0x871   : > { %v2603_v27 = vmul.f32 0.03125, %v2587_v59 }
 0x873   : > { %v2609_v1 = vadd.f32 1e-05, %v2603_v27 }
 0x874   : > { %v2590_v2 = vpop.xlane.xlu0 %2589 }
 0x875   : > { %3873 = vrsqrt.f32 %v2609_v1  ;;  %v2604_v36 = vmul.f32 0.03125, %v2590_v2 }
 0x877   : > { %v2610_v3 = vadd.f32 1e-05, %v2604_v36 }
 0x879   : > { %3875 = vrsqrt.f32 %v2610_v3 }
 0x882   : > { %v3874_v4 = vpop.eup %3873 }
 0x883   : > { %v2621_v29 = vmul.f32 %v3874_v4, %v2573_v41 }
 0x885   : > { %v2633_v44 = vmul.f32 %v3319_v5, %v2621_v29 }
 0x886   : > { %v3876_v26 = vpop.eup %3875 }
 0x887   : > { %v2622_v9 = vmul.f32 %v3876_v26, %v2574_v62  ;;  %v2645_v6 = vadd.f32 %v3320_v38, %v2633_v44 }
 0x889   : > { %v2634_v13 = vmul.f32 %v3319_v5, %v2622_v9 }
 0x88b   : > { %v2646_v60 = vadd.f32 %v3320_v38, %v2634_v13 }
 0x88d   : > { %v2651_v0 = vpack.c.bf16 %v2646_v60, %v2645_v6 }
 0x88f   : > { %3608 = vmatmul.mubr.msk.bf16.vlgmr.msra.gmra.mxu1 %vm737_vm1, %v2651_v0 }
 0x890   : > { %3611 = vmatprep.mubr.msk.bf16.mxu1 %vm3940_vm2, %v3939_v49 }
 0x898   : > { %v2593_v40 = vpop.xlane.xlu1 %2592 }
 0x899   : > { %v2605_v10 = vmul.f32 0.03125, %v2593_v40 }
 0x89b   : > { %v2611_v17 = vadd.f32 1e-05, %v2605_v10 }
 0x89c   : > { %v2596_v20 = vpop.xlane.xlu0 %2595 }
 0x89d   : > { %3877 = vrsqrt.f32 %v2611_v17  ;;  %v2606_v31 = vmul.f32 0.03125, %v2596_v20 }
 0x89f   : > { %v2612_v30 = vadd.f32 1e-05, %v2606_v31 }
 0x8a0   : > { %v2599_v33 = vpop.xlane.xlu1 %2598 }
 0x8a1   : > { %3879 = vrsqrt.f32 %v2612_v30  ;;  %v2607_v39 = vmul.f32 0.03125, %v2599_v33 }
 0x8a3   : > { %v2613_v16 = vadd.f32 1e-05, %v2607_v39 }
 0x8a4   : > { %v2602_v42 = vpop.xlane.xlu0 %2601 }
 0x8a5   : > { %3881 = vrsqrt.f32 %v2613_v16  ;;  %v2608_v41 = vmul.f32 0.03125, %v2602_v42 }
 0x8a7   : > { %v2614_v47 = vadd.f32 1e-05, %v2608_v41 }
 0x8a9   : > { %3883 = vrsqrt.f32 %v2614_v47 }
 0x8aa   : > { %v3878_v25 = vpop.eup %3877 }
 0x8ab   : > { %v2623_v56 = vmul.f32 %v3878_v25, %v4788_v58 }
 0x8ad   : > { %v2635_v19 = vmul.f32 %v3319_v5, %v2623_v56 }
 0x8ae   : > { %v3880_v62 = vpop.eup %3879 }
 0x8af   : > { %v2624_v51 = vmul.f32 %v3880_v62, %v2576_v37  ;;  %v2647_v8 = vadd.f32 %v3320_v38, %v2635_v19 }
 0x8b1   : > { %v2636_v52 = vmul.f32 %v3319_v5, %v2624_v51 }
 0x8b2   : > { %v3882_v54 = vpop.eup %3881 }
 0x8b3   : > { %v2648_v53 = vadd.f32 %v3320_v38, %v2636_v52  ;;  %v2625_v50 = vmul.f32 %v3882_v54, %v2577_v7  ;;  %v3758_v7 = vld [vmem:[%s4102_s26 + $0x30] sm:$0xff]  }
 0x8b4   : > { %3622 = vmatpush3.bf16.msra.mxu0 %v3758_v7 }
 0x8b5   : > { %v2652_v14 = vpack.c.bf16 %v2648_v53, %v2647_v8  ;;  %v2637_v48 = vmul.f32 %v3319_v5, %v2625_v50  ;;  %3623 = vmatprep.subr.bf16.mxu0 %v3939_v49 }
 0x8b6   : > { %v3884_v32 = vpop.eup %3883 }
 0x8b7   : > { %3612 = vmatmul.mubr.msk.bf16.gmra.mxu1 %vm737_vm1, %v2652_v14  ;;  %v2626_v15 = vmul.f32 %v3884_v32, %v2578_v46  ;;  %v2649_v37 = vadd.f32 %v3320_v38, %v2637_v48  ;;  %v3763_v46 = vld [vmem:[%s4102_s26 + $0x8] sm:$0xff]  }
 0x8b8   : > { %3615 = vmatprep.mubr.msk.bf16.mxu1 %vm3940_vm2, %v3939_v49  ;;  %3624 = vmatpush3.bf16.msra.mxu0 %v3759_v28 }
 0x8b9   : > { %v2638_v58 = vmul.f32 %v3319_v5, %v2626_v15  ;;  %3625 = vmatprep.subr.bf16.mxu0 %v3939_v49 }
 0x8bb   : > { %v2650_v34 = vadd.f32 %v3320_v38, %v2638_v58 }
 0x8bc   : > { %3626 = vmatpush3.bf16.msra.mxu0 %v3760_v45 }
 0x8bd   : > { %v2653_v61 = vpack.c.bf16 %v2650_v34, %v2649_v37  ;;  %3627 = vmatprep.subr.bf16.mxu0 %v3939_v49 }
 0x8bf   : > { %3616 = vmatmul.mubr.msk.bf16.gmra.mxu1 %vm737_vm1, %v2653_v61 }
 0x8c0   : > { %3628 = vmatpush3.bf16.msra.mxu0 %v3761_v24 }
 0x8c1   : > { %3629 = vmatprep.subr.bf16.mxu0 %v3939_v49 }
 0x8c4   : > { %3630 = vmatpush3.bf16.msra.mxu0 %v3762_v43 }
 0x8c5   : > { %3631 = vmatprep.subr.bf16.mxu0 %v3939_v49 }
 0x8c8   : > { %3632 = vmatpush3.bf16.msra.mxu0 %v3763_v46 }
 0x8c9   : > { %3633 = vmatprep.subr.bf16.mxu0 %v3939_v49 }
 0x8cc   : > { %3634 = vmatpush3.bf16.msra.mxu0 %v3764_v35 }
 0x94f   : > { %v2720_v21 = vpop.f32.mrf.mxu1 }
 0x950   : > { %v2721_v59 = vadd.f32 %v3321_v23, %v2720_v21 }
 0x951   : > { %v3609_v27 = vpop.f32.mrf.mxu1 }
 0x952   : > { %v2743_v1 = vmul.f32 %v2721_v59, %v2721_v59 }
 0x953   : > { %v2723_v2 = vpop.f32.mrf.mxu1 }
 0x954   : > { %v2749_v36 = vmul.f32 %v2743_v1, %v2721_v59  ;;  %v2724_v3 = vadd.f32 %v3321_v23, %v2723_v2 }
 0x955   : > { %v3610_v4 = vpop.f32.mrf.mxu1 }
 0x956   : > { %v2755_v29 = vmul.f32 0.044715, %v2749_v36  ;;  %v2744_v5 = vmul.f32 %v2724_v3, %v2724_v3 }
 0x958   : > { %v2761_v26 = vadd.f32 %v2755_v29, %v2721_v59  ;;  %v2750_v9 = vmul.f32 %v2744_v5, %v2724_v3 }
 0x95a   : > { %v2767_v44 = vmul.f32 0.7978846, %v2761_v26  ;;  %v2756_v38 = vmul.f32 0.044715, %v2750_v9 }
 0x95c   : > { %3885 = vtanh.f32 %v2767_v44  ;;  %v2762_v13 = vadd.f32 %v2756_v38, %v2724_v3 }
 0x95e   : > { %v2768_v6 = vmul.f32 0.7978846, %v2762_v13 }
 0x960   : > { %3887 = vtanh.f32 %v2768_v6 }
 0x969   : > { %v3886_v60 = vpop.eup %3885 }
 0x96a   : > { %v2779_v0 = vadd.f32 1.0, %v3886_v60 }
 0x96c   : > { %v2785_v10 = vmul.f32 0.5, %v2779_v0 }
 0x96d   : > { %v3888_v40 = vpop.eup %3887 }
 0x96e   : > { %v2780_v17 = vadd.f32 1.0, %v3888_v40  ;;  %v2791_v31 = vmul.f32 %v2785_v10, %v2721_v59  ;;  %v3327_v40 = vld [vmem:[%s699_s30] ss:$0 sm:$0xff]  ;;  %s4958_s30 = sld [smem:[#allocation9_spill]] (!%p3336_p6) }
 0x970   : > { %v2786_v20 = vmul.f32 0.5, %v2780_v17 }
 0x972   : > { %v2792_v30 = vmul.f32 %v2786_v20, %v2724_v3 }
 0x974   : > { %v2797_v33 = vpack.c.bf16 %v2792_v30, %v2791_v31 }
 0x976   : > { %3636 = vmatmul.mubr.bf16.vlgmr.msra.gmra.mxu0 %v2797_v33 }
 0x977   : > { %v2728_v39 = vpop.f32.mrf.mxu1  ;;  %3639 = vmatprep.mubr.msk.bf16.mxu0 %vm3940_vm2, %v3939_v49 }
 0x978   : > { %v2729_v16 = vadd.f32 %v3321_v23, %v2728_v39 }
 0x979   : > { %v3613_v42 = vpop.f32.mrf.mxu1 }
 0x97a   : > { %v2745_v41 = vmul.f32 %v2729_v16, %v2729_v16 }
 0x97b   : > { %v2731_v47 = vpop.f32.mrf.mxu1 }
 0x97c   : > { %v2751_v25 = vmul.f32 %v2745_v41, %v2729_v16  ;;  %v2732_v56 = vadd.f32 %v3321_v23, %v2731_v47 }
 0x97d   : > { %v3614_v62 = vpop.f32.mrf.mxu1 }
 0x97e   : > { %v2757_v51 = vmul.f32 0.044715, %v2751_v25  ;;  %v2746_v19 = vmul.f32 %v2732_v56, %v2732_v56 }
 0x97f   : > { %v2736_v52 = vpop.f32.mrf.mxu1 }
 0x980   : > { %v2763_v54 = vadd.f32 %v2757_v51, %v2729_v16  ;;  %v2752_v8 = vmul.f32 %v2746_v19, %v2732_v56  ;;  %v2737_v53 = vadd.f32 %v3321_v23, %v2736_v52 }
 0x981   : > { %v3617_v50 = vpop.f32.mrf.mxu1 }
 0x982   : > { %v2769_v14 = vmul.f32 0.7978846, %v2763_v54  ;;  %v2758_v32 = vmul.f32 0.044715, %v2752_v8  ;;  %v2747_v15 = vmul.f32 %v2737_v53, %v2737_v53 }
 0x983   : > { %v2739_v48 = vpop.f32.mrf.mxu1 }
 0x984   : > { %3889 = vtanh.f32 %v2769_v14  ;;  %v2764_v58 = vadd.f32 %v2758_v32, %v2732_v56  ;;  %v2753_v37 = vmul.f32 %v2747_v15, %v2737_v53  ;;  %v2740_v34 = vadd.f32 %v3321_v23, %v2739_v48 }
 0x985   : > { %v3618_v61 = vpop.f32.mrf.mxu1 }
 0x986   : > { %v2770_v57 = vmul.f32 0.7978846, %v2764_v58  ;;  %v2759_v7 = vmul.f32 0.044715, %v2753_v37  ;;  %v2748_v28 = vmul.f32 %v2740_v34, %v2740_v34 }
 0x988   : > { %3891 = vtanh.f32 %v2770_v57  ;;  %v2765_v45 = vadd.f32 %v2759_v7, %v2737_v53  ;;  %v2754_v24 = vmul.f32 %v2748_v28, %v2740_v34 }
 0x98a   : > { %v2771_v43 = vmul.f32 0.7978846, %v2765_v45  ;;  %v2760_v46 = vmul.f32 0.044715, %v2754_v24 }
 0x98c   : > { %3893 = vtanh.f32 %v2771_v43  ;;  %v2766_v35 = vadd.f32 %v2760_v46, %v2740_v34 }
 0x98e   : > { %v2772_v21 = vmul.f32 0.7978846, %v2766_v35 }
 0x990   : > { %3895 = vtanh.f32 %v2772_v21 }
 0x991   : > { %v3890_v59 = vpop.eup %3889 }
 0x992   : > { %v2781_v27 = vadd.f32 1.0, %v3890_v59 }
 0x994   : > { %v2787_v36 = vmul.f32 0.5, %v2781_v27 }
 0x995   : > { %v3892_v1 = vpop.eup %3891 }
 0x996   : > { %v2782_v2 = vadd.f32 1.0, %v3892_v1  ;;  %v2793_v4 = vmul.f32 %v2787_v36, %v2729_v16 }
 0x998   : > { %v2788_v3 = vmul.f32 0.5, %v2782_v2 }
 0x999   : > { %v3894_v23 = vpop.eup %3893 }
 0x99a   : > { %v2794_v29 = vmul.f32 %v2788_v3, %v2732_v56  ;;  %v2783_v5 = vadd.f32 1.0, %v3894_v23 }
 0x99c   : > { %v2798_v26 = vpack.c.bf16 %v2794_v29, %v2793_v4  ;;  %v2789_v38 = vmul.f32 0.5, %v2783_v5 }
 0x99d   : > { %v3896_v9 = vpop.eup %3895 }
 0x99e   : > { %3640 = vmatmul.mubr.bf16.gmra.mxu0 %v2798_v26  ;;  %v2784_v44 = vadd.f32 1.0, %v3896_v9  ;;  %v2795_v6 = vmul.f32 %v2789_v38, %v2737_v53 }
 0x99f   : > { %3643 = vmatprep.mubr.msk.bf16.mxu0 %vm3940_vm2, %v3939_v49 }
 0x9a0   : > { %v2790_v13 = vmul.f32 0.5, %v2784_v44 }
 0x9a2   : > { %v2796_v60 = vmul.f32 %v2790_v13, %v2740_v34 }
 0x9a4   : > { %v2799_v0 = vpack.c.bf16 %v2796_v60, %v2795_v6 }
 0x9a6   : > { %3644 = vmatmul.mubr.bf16.gmra.mxu0 %v2799_v0 }
 0xa36   : > { %v2905_v10 = vpop.f32.mrf.mxu0 }
 0xa37   : > { %v2906_v17 = vadd.f32 %v3327_v40, %v2905_v10 }
 0xa38   : > { %v3637_v20 = vpop.f32.mrf.mxu0 }
 0xa39   : > { %v2928_v31 = vadd.f32 %v2906_v17, %v4758_v55 }
 0xa3a   : > { %v2908_v30 = vpop.f32.mrf.mxu0 }
 0xa3b   : > { %2934 = vst.msk [vmem:[#allocation2] sm:$0xff] %vm737_vm1, %v2928_v31  ;;  %v2909_v33 = vadd.f32 %v3327_v40, %v2908_v30 }
 0xa3c   : > { %v3638_v49 = vpop.f32.mrf.mxu0 }
 0xa3d   : > { %v2929_v39 = vadd.f32 %v2909_v33, %v4762_v63 }
 0xa3f   : > { %2935 = vst.msk [vmem:[#allocation2 + $0x8] sm:$0xff] %vm737_vm1, %v2929_v39 }
 0xa5e   : > { %v2913_v16 = vpop.f32.mrf.mxu0 }
 0xa5f   : > { %v2914_v42 = vadd.f32 %v3327_v40, %v2913_v16 }
 0xa60   : > { %v3641_v41 = vpop.f32.mrf.mxu0 }
 0xa61   : > { %v2930_v47 = vadd.f32 %v2914_v42, %v4766_v11 }
 0xa62   : > { %v2916_v25 = vpop.f32.mrf.mxu0 }
 0xa63   : > { %2936 = vst.msk [vmem:[#allocation2 + $0x10] sm:$0xff] %vm737_vm1, %v2930_v47  ;;  %v2917_v56 = vadd.f32 %v3327_v40, %v2916_v25 }
 0xa64   : > { %v3642_v62 = vpop.f32.mrf.mxu0 }
 0xa65   : > { %v2931_v55 = vadd.f32 %v2917_v56, %v4770_v18 }
 0xa66   : > { %v2921_v51 = vpop.f32.mrf.mxu0 }
 0xa67   : > { %2937 = vst.msk [vmem:[#allocation2 + $0x18] sm:$0xff] %vm737_vm1, %v2931_v55  ;;  %v2922_v19 = vadd.f32 %v3327_v40, %v2921_v51 }
 0xa68   : > { %v3645_v52 = vpop.f32.mrf.mxu0 }
 0xa69   : > { %v2932_v63 = vadd.f32 %v2922_v19, %v4774_v22 }
 0xa6a   : > { %v2924_v54 = vpop.f32.mrf.mxu0 }
 0xa6b   : > { %2938 = vst.msk [vmem:[#allocation2 + $0x20] sm:$0xff] %vm737_vm1, %v2932_v63  ;;  %v2925_v8 = vadd.f32 %v3327_v40, %v2924_v54  ;;  %2943 = sbr.rel (%p3336_p6) target bundleno = 2993 (0xbb1), region = 88 }
 0xa6c   : > { %v3646_v53 = vpop.f32.mrf.mxu0 }
 0xa6d   : > { %v2933_v11 = vadd.f32 %v2925_v8, %v4778_v12 }
 0xa6f   : > { %2939 = vst.msk [vmem:[#allocation2 + $0x28] sm:$0xff] %vm737_vm1, %v2933_v11 }
 0xa70   : > { %v2946_v18 = vsel %vm737_vm1, %v2928_v31, 0.0  ;;  %v2952_v50 = vsel %vm737_vm1, %v2930_v47, 0.0  ;;  %v2949_v22 = vsel %vm737_vm1, %v2929_v39, 0.0  ;;  %v2955_v14 = vsel %vm737_vm1, %v2931_v55, 0.0  ;;  %v3338_v19 = vld [vmem:[%s4959_s23] ss:$0 sm:$0xff] }
 0xa71   : > { %2947 = vadd.xlane.f32.xlu0 %v2946_v18  ;;  %2953 = vadd.xlane.f32.xlu1 %v2952_v50  ;;  %v2958_v32 = vsel %vm737_vm1, %v2932_v63, 0.0  ;;  %v2961_v12 = vsel %vm737_vm1, %v2933_v11, 0.0 }
 0xa75   : > { %2950 = vadd.xlane.f32.xlu0 %v2949_v22  ;;  %2956 = vadd.xlane.f32.xlu1 %v2955_v14 }
 0xa79   : > { %2959 = vadd.xlane.f32.xlu0 %v2958_v32  ;;  %2962 = vadd.xlane.f32.xlu1 %v2961_v12 }
 0xafa   : > { %v2948_v15 = vpop.xlane.xlu0 %2947  ;;  %v2954_v48 = vpop.xlane.xlu1 %2953 }
 0xafb   : > { %v2964_v58 = vmul.f32 0.03125, %v2948_v15  ;;  %v2966_v37 = vmul.f32 0.03125, %v2954_v48 }
 0xafd   : > { %v2970_v34 = vsub.f32 %v2928_v31, %v2964_v58  ;;  %v4867_v61 = vsub.f32 %v2930_v47, %v2966_v37 }
 0xafe   : > { %v2951_v57 = vpop.xlane.xlu0 %2950  ;;  %v2957_v7 = vpop.xlane.xlu1 %2956 }
 0xaff   : > { %v2965_v28 = vmul.f32 0.03125, %v2951_v57  ;;  %v2967_v45 = vmul.f32 0.03125, %v2957_v7  ;;  %v2976_v24 = vmul.f32 %v2970_v34, %v2970_v34  ;;  %v2978_v43 = vmul.f32 %v4867_v61, %v4867_v61 }
 0xb01   : > { %v2971_v46 = vsub.f32 %v2929_v39, %v2965_v28  ;;  %v4871_v35 = vsub.f32 %v2931_v55, %v2967_v45  ;;  %v2982_v21 = vsel %vm737_vm1, %v2976_v24, 0.0  ;;  %v2988_v1 = vsel %vm737_vm1, %v2978_v43, 0.0  ;;  %v3337_v55 = vld [vmem:[%s4958_s30] ss:$0 sm:$0xff] }
 0xb02   : > { %2983 = vadd.xlane.f32.xlu0 %v2982_v21  ;;  %v2960_v59 = vpop.xlane.xlu0 %2959  ;;  %v2963_v27 = vpop.xlane.xlu1 %2962 }
 0xb03   : > { %v2968_v2 = vmul.f32 0.03125, %v2960_v59  ;;  %v2969_v36 = vmul.f32 0.03125, %v2963_v27  ;;  %v2977_v3 = vmul.f32 %v2971_v46, %v2971_v46  ;;  %v2979_v23 = vmul.f32 %v4871_v35, %v4871_v35 }
 0xb05   : > { %v2974_v4 = vsub.f32 %v2932_v63, %v2968_v2  ;;  %v2975_v29 = vsub.f32 %v2933_v11, %v2969_v36  ;;  %v2985_v5 = vsel %vm737_vm1, %v2977_v3, 0.0  ;;  %v2991_v26 = vsel %vm737_vm1, %v2979_v23, 0.0 }
 0xb06   : > { %2989 = vadd.xlane.f32.xlu0 %v2988_v1  ;;  %2986 = vadd.xlane.f32.xlu1 %v2985_v5 }
 0xb07   : > { %v2980_v9 = vmul.f32 %v2974_v4, %v2974_v4  ;;  %v2981_v44 = vmul.f32 %v2975_v29, %v2975_v29 }
 0xb09   : > { %v2994_v38 = vsel %vm737_vm1, %v2980_v9, 0.0  ;;  %v2997_v13 = vsel %vm737_vm1, %v2981_v44, 0.0 }
 0xb0a   : > { %2992 = vadd.xlane.f32.xlu1 %v2991_v26  ;;  %2995 = vadd.xlane.f32.xlu0 %v2994_v38 }
 0xb0e   : > { %2998 = vadd.xlane.f32.xlu1 %v2997_v13 }
 0xb8b   : > { %v2984_v6 = vpop.xlane.xlu0 %2983 }
 0xb8c   : > { %v3000_v60 = vmul.f32 0.03125, %v2984_v6 }
 0xb8e   : > { %v3006_v0 = vadd.f32 1e-05, %v3000_v60 }
 0xb8f   : > { %v2987_v40 = vpop.xlane.xlu1 %2986  ;;  %v2990_v10 = vpop.xlane.xlu0 %2989 }
 0xb90   : > { %3903 = vrsqrt.f32 %v3006_v0  ;;  %v3001_v17 = vmul.f32 0.03125, %v2987_v40  ;;  %v3002_v20 = vmul.f32 0.03125, %v2990_v10 }
 0xb92   : > { %v3007_v31 = vadd.f32 1e-05, %v3001_v17  ;;  %v3008_v30 = vadd.f32 1e-05, %v3002_v20 }
 0xb93   : > { %v2993_v33 = vpop.xlane.xlu1 %2992  ;;  %v2996_v49 = vpop.xlane.xlu0 %2995 }
 0xb94   : > { %3905 = vrsqrt.f32 %v3007_v31  ;;  %v3003_v39 = vmul.f32 0.03125, %v2993_v33  ;;  %v3004_v16 = vmul.f32 0.03125, %v2996_v49 }
 0xb95   : > { %3907 = vrsqrt.f32 %v3008_v30 }
 0xb96   : > { %v3009_v42 = vadd.f32 1e-05, %v3003_v39  ;;  %v3010_v41 = vadd.f32 1e-05, %v3004_v16 }
 0xb97   : > { %v2999_v47 = vpop.xlane.xlu1 %2998 }
 0xb98   : > { %3909 = vrsqrt.f32 %v3009_v42  ;;  %v3005_v25 = vmul.f32 0.03125, %v2999_v47 }
 0xb99   : > { %3911 = vrsqrt.f32 %v3010_v41 }
 0xb9a   : > { %v3011_v56 = vadd.f32 1e-05, %v3005_v25 }
 0xb9c   : > { %3913 = vrsqrt.f32 %v3011_v56 }
 0xb9d   : > { %v3904_v62 = vpop.eup %3903 }
 0xb9e   : > { %v3018_v51 = vmul.f32 %v3904_v62, %v2970_v34 }
 0xba0   : > { %v3030_v52 = vmul.f32 %v3337_v55, %v3018_v51 }
 0xba1   : > { %v3906_v63 = vpop.eup %3905 }
 0xba2   : > { %v3908_v54 = vpop.eup %3907  ;;  %v3042_v8 = vadd.f32 %v3338_v19, %v3030_v52  ;;  %v3019_v53 = vmul.f32 %v3906_v63, %v2971_v46 }
 0xba3   : > { %v3020_v11 = vmul.f32 %v3908_v54, %v4867_v61 }
 0xba4   : > { %3048 = vst.msk [vmem:[%s4960_s20] sm:$0xff] %vm737_vm1, %v3042_v8  ;;  %v3031_v18 = vmul.f32 %v3337_v55, %v3019_v53 }
 0xba5   : > { %v3910_v50 = vpop.eup %3909  ;;  %v3032_v22 = vmul.f32 %v3337_v55, %v3020_v11 }
 0xba6   : > { %v3912_v14 = vpop.eup %3911  ;;  %v3043_v32 = vadd.f32 %v3338_v19, %v3031_v18  ;;  %v3021_v12 = vmul.f32 %v3910_v50, %v4871_v35 }
 0xba7   : > { %v3044_v15 = vadd.f32 %v3338_v19, %v3032_v22  ;;  %v3022_v48 = vmul.f32 %v3912_v14, %v2974_v4 }
 0xba8   : > { %3049 = vst.msk [vmem:[%s4961_s15 + $0x8] sm:$0xff] %vm737_vm1, %v3043_v32  ;;  %v3033_v58 = vmul.f32 %v3337_v55, %v3021_v12 }
 0xba9   : > { %v3914_v37 = vpop.eup %3913  ;;  %3050 = vst.msk [vmem:[%s4961_s15 + $0x10] sm:$0xff] %vm737_vm1, %v3044_v15  ;;  %v3034_v34 = vmul.f32 %v3337_v55, %v3022_v48 }
 0xbaa   : > { %v3045_v61 = vadd.f32 %v3338_v19, %v3033_v58  ;;  %v3023_v57 = vmul.f32 %v3914_v37, %v2975_v29 }
 0xbab   : > { %v3046_v7 = vadd.f32 %v3338_v19, %v3034_v34 }
 0xbac   : > { %3051 = vst.msk [vmem:[%s4961_s15 + $0x18] sm:$0xff] %vm737_vm1, %v3045_v61  ;;  %v3035_v28 = vmul.f32 %v3337_v55, %v3023_v57 }
 0xbad   : > { %3052 = vst.msk [vmem:[%s4961_s15 + $0x20] sm:$0xff] %vm737_vm1, %v3046_v7 }
 0xbae   : > { %v3047_v45 = vadd.f32 %v3338_v19, %v3035_v28 }
 0xbb0   : > { %3053 = vst.msk [vmem:[%s4961_s15 + $0x28] sm:$0xff] %vm737_vm1, %v3047_v45 }
 0xbb1 PF: > { %s4962_s18 = sld [smem:[#allocation4_spill]] }
 0xbb2   : > { %s4964_s19 = sld [smem:[#allocation5_spill]] }
 0xbb7   : > { %s25_s20 = sadd.s32 1, %s4962_s18   ;;  %s4963_s18 = sld [smem:[#allocation3_spill]] }
 0xbb8   : > { %p22_p7 = scmp.ge.s32.totalorder %s25_s20, 4  }
 0xbba   :  { %24 = sbr.rel (!%p22_p7) target bundleno = 6 (0x6), region = 154 }

</bundles_post_ra>
